<compile_context>
chip_gen: v6e
topology: v6e:2x2x1
jax: 0.10.0
libtpu: 0.0.40
codegen_flags: <defaults>
</compile_context>

<pallas_src>
import numpy as np
import jax
import jax.numpy as jnp
from jax.experimental import pallas as pl
from jax.experimental.pallas import tpu as pltpu


# ----------------------------------------------------------------------------
# Kernel factory: architecture (layer counts, activations, dtypes) is static.
# ----------------------------------------------------------------------------
def make_compression_kernel(n_b1, n_b2, hidden, input_size, has_freq,
                            act_present, compute_dtype):
    cd = compute_dtype
    f32 = jnp.float32

    def dot(a, w):  # MXU dot, cd inputs, f32 accumulation
        return jnp.dot(a.astype(cd), w, preferred_element_type=f32)

    def kernel(*refs):
        it = iter(refs[:-1])
        out_ref = refs[-1]

        # ---- inputs ---------------------------------------------------------
        if has_freq:
            xx = next(it)[...]          # (tb, input_size) f32 raw coords
            s_freq = next(it)[...]      # (input_size, d_freq) f32 freq matrix
            sin_mask = next(it)[...]    # (1, d_freq) f32: 1 -> sin col, 0 -> cos col
        hsh = next(it)[...]             # (tb, hash_size) compute dtype
        if has_freq:
            w_e_freq = next(it)[...]    # (d_freq, e_width) cd
        w_e_hash = next(it)[...]        # (hash_size, e_width) cd

        # ---- fused embedding projection: e @ [W_blk1 | We_blk2 | We_heads] --
        eproj = jnp.dot(hsh, w_e_hash, preferred_element_type=f32)
        if has_freq:
            # arg[:, k] = x[:, k // (2*nf)] * freq_band[k % nf]  (exact f32 VPU math)
            arg = xx[:, 0:1] * s_freq[0:1, :]
            for f in range(1, input_size):
                arg = arg + xx[:, f:f + 1] * s_freq[f:f + 1, :]
            e_freq = jnp.where(sin_mask > 0.5, jnp.sin(arg), jnp.cos(arg))
            eproj = eproj + dot(e_freq, w_e_freq)

        # ---- block1 ----------------------------------------------------------
        b = next(it)[...]
        h = jnp.maximum(eproj[:, :hidden] + b, 0.0)
        for _ in range(n_b1 - 1):
            W = next(it)[...]
            b = next(it)[...]
            h = jnp.maximum(dot(h, W) + b, 0.0)

        # ---- block2 (layer 1 consumes cat([h, e]) == h@Wh + e-part of eproj) -
        Wh = next(it)[...]
        b = next(it)[...]
        h = jnp.maximum(dot(h, Wh) + eproj[:, hidden:2 * hidden] + b, 0.0)
        for _ in range(n_b2 - 1):
            W = next(it)[...]
            b = next(it)[...]
            h = jnp.maximum(dot(h, W) + b, 0.0)

        # ---- output heads (fused): one wide hidden dot + block-diagonal W2 --
        Wh = next(it)[...]
        b = next(it)[...]
        t = jnp.maximum(dot(h, Wh) + eproj[:, 2 * hidden:] + b, 0.0)
        W2 = next(it)[...]
        b2 = next(it)[...]
        y = dot(t, W2) + b2             # (tb, output_size) f32

        # ---- per-activation-TYPE masking (one pass per type present) --------
        am = next(it)[...]              # (3, output_size) f32 masks
        out = y
        if "relu" in act_present:
            out = jnp.where(am[0:1, :] > 0.5, jnp.maximum(y, 0.0), out)
        if "sigmoid" in act_present:
            out = jnp.where(am[1:2, :] > 0.5, jax.nn.sigmoid(y), out)
        if "tanh" in act_present:
            out = jnp.where(am[2:3, :] > 0.5, jnp.tanh(y), out)

        out_ref[...] = out.astype(out_ref.dtype)   # single lane-contiguous store

    return kernel


# ----------------------------------------------------------------------------
# Parameter construction (deterministic, PyTorch-Linear-like uniform init).
# Weights stored as (in_features, out_features) = transpose of torch weight.
# ----------------------------------------------------------------------------
def build_params(key, input_size, hash_size, hidden, num_hidden_layers,
                 num_freq, splits, dtype=jnp.float32):
    d_emb = input_size * num_freq * 2 + hash_size
    n_b1 = 1 + num_hidden_layers // 2
    n_b2 = 1 + (num_hidden_layers - num_hidden_layers // 2)

    def linear(k, din, dout):
        kw, kb = jax.random.split(k)
        bound = 1.0 / float(np.sqrt(din))
        W = jax.random.uniform(kw, (din, dout), dtype, -bound, bound)
        b = jax.random.uniform(kb, (1, dout), dtype, -bound, bound)
        return W, b

    keys = iter(jax.random.split(key, n_b1 + n_b2 + 2 * len(splits)))
    raw = {"block1": [], "block2": [], "heads": []}

    dims1 = [d_emb] + [hidden] * n_b1
    for l in range(n_b1):
        raw["block1"].append(linear(next(keys), dims1[l], dims1[l + 1]))

    raw["block2"].append(linear(next(keys), hidden + d_emb, hidden))
    for _ in range(n_b2 - 1):
        raw["block2"].append(linear(next(keys), hidden, hidden))

    for s in splits:
        W1, b1 = linear(next(keys), hidden + d_emb, hidden // 2)
        W2, b2 = linear(next(keys), hidden // 2, s)
        raw["heads"].append((W1, b1, W2, b2))

    cfg = dict(d_emb=d_emb, n_b1=n_b1, n_b2=n_b2, hidden=hidden,
               num_freq=num_freq, input_size=input_size, hash_size=hash_size)
    return raw, cfg


# ----------------------------------------------------------------------------
# Pallas wrapper: fuses weights on the host, tiles the batch, calls the kernel.
# ----------------------------------------------------------------------------
def compression_net_forward(x, hash_encoding, raw, cfg, splits, activations,
                            output_size, *, tb=512,
                            compute_dtype=jnp.bfloat16, vmem_limit_bytes=None):
    f32 = jnp.float32
    cd = compute_dtype
    hidden = cfg["hidden"]
    input_size = cfg["input_size"]
    num_freq = cfg["num_freq"]
    has_freq = num_freq > 0
    hw2 = hidden // 2

    # ---- output-activation masks (one lane-mask row per type) ---------------
    act_mask = np.zeros((3, output_size), np.float32)
    present = set()
    for i in range(min(len(activations), output_size)):
        a = activations[i]
        if a == "relu":
            act_mask[0, i] = 1.0; present.add("relu")
        elif a == "sigmoid":
            act_mask[1, i] = 1.0; present.add("sigmoid")
        elif a == "tanh":
            act_mask[2, i] = 1.0; present.add("tanh")
        elif a == "none":
            pass
        else:
            # TODO(synk): 'softmax' over a single output column is ill-defined
            # (torch.softmax without dim errors) — not implemented.
            raise ValueError("Invalid activation function: %s" % a)

    # ---- fuse weights (host-side, once) --------------------------------------
    W1_blk1, b_blk1 = raw["block1"][0]
    Wb2_0, b_b2 = raw["block2"][0]
    e_cols = [W1_blk1, Wb2_0[hidden:]]
    wh_list, bh_list, w2_list, b2_list = [], [], [], []
    for (W1, b1, W2, b2) in raw["heads"]:
        e_cols.append(W1[hidden:])
        wh_list.append(W1[:hidden]); bh_list.append(b1)
        w2_list.append(W2); b2_list.append(b2)
    W_e_all = jnp.concatenate(e_cols, axis=1)          # (d_emb, 2*hidden + heads_w)
    Wh_heads = jnp.concatenate(wh_list, axis=1)        # (hidden, heads_w)
    b_heads = jnp.concatenate(bh_list, axis=1)
    heads_w = Wh_heads.shape[1]
    W2_bd = np.zeros((heads_w, output_size), np.float32)  # block-diagonal head W2
    r = c = 0
    for W2, s in zip(w2_list, splits):
        W2_bd[r:r + hw2, c:c + s] = np.asarray(W2)
        r += hw2; c += s
    b2_all = jnp.concatenate(b2_list, axis=1)

    if has_freq:
        d_freq = input_size * num_freq * 2
        fb = (2.0 ** np.linspace(0.0, num_freq - 1, num_freq)) * np.pi
        S = np.zeros((input_size, d_freq), np.float32)
        sin_mask = np.zeros((1, d_freq), np.float32)
        for f in range(input_size):
            base = f * 2 * num_freq
            S[f, base:base + num_freq] = fb
            S[f, base + num_freq:base + 2 * num_freq] = fb
            sin_mask[0, base:base + num_freq] = 1.0
        W_e_freq = W_e_all[:d_freq].astype(cd)
        W_e_hash = W_e_all[d_freq:].astype(cd)
    else:
        W_e_hash = W_e_all.astype(cd)

    # ---- batch tiling (pad to a multiple of tb; rows are independent) -------
    B = hash_encoding.shape[0]
    if tb is None or tb >= B:
        tb_eff, Bp = B, B
    else:
        tb_eff = max(8, (int(tb) // 8) * 8)
        Bp = ((B + tb_eff - 1) // tb_eff) * tb_eff

    def pad(a):
        if Bp == B:
            return a
        return jnp.concatenate(
            [a, jnp.zeros((Bp - B,) + a.shape[1:], a.dtype)], axis=0)

    operands, in_specs = [], []

    def add_tile(a):
        operands.append(a)
        in_specs.append(pl.BlockSpec((tb_eff, a.shape[1]), lambda i: (i, 0)))

    def add_full(a):
        operands.append(a)
        in_specs.append(pl.BlockSpec(a.shape, lambda i: (0, 0)))

    if has_freq:
        add_tile(pad(x.astype(f32)))
        add_full(jnp.asarray(S))
        add_full(jnp.asarray(sin_mask))
    add_tile(pad(hash_encoding.astype(cd)))
    if has_freq:
        add_full(W_e_freq)
    add_full(W_e_hash)
    add_full(b_blk1.astype(f32))
    for (W, b) in raw["block1"][1:]:
        add_full(W.astype(cd)); add_full(b.astype(f32))
    add_full(Wb2_0[:hidden].astype(cd)); add_full(b_b2.astype(f32))
    for (W, b) in raw["block2"][1:]:
        add_full(W.astype(cd)); add_full(b.astype(f32))
    add_full(Wh_heads.astype(cd)); add_full(b_heads.astype(f32))
    add_full(jnp.asarray(W2_bd).astype(cd)); add_full(b2_all.astype(f32))
    add_full(jnp.asarray(act_mask))

    kernel = make_compression_kernel(cfg["n_b1"], cfg["n_b2"], hidden,
                                     input_size, has_freq, frozenset(present),
                                     cd)

    cparams = dict(dimension_semantics=("parallel",))
    if vmem_limit_bytes is not None:
        cparams["vmem_limit_bytes"] = vmem_limit_bytes

    out = pl.pallas_call(
        kernel,
        out_shape=jax.ShapeDtypeStruct((Bp, output_size), f32),
        grid=(Bp // tb_eff,),
        in_specs=in_specs,
        out_specs=pl.BlockSpec((tb_eff, output_size), lambda i: (i, 0)),
        compiler_params=pltpu.CompilerParams(**cparams),
    )(*operands)
    return out[:B]


# ----------------------------------------------------------------------------
# Pure-JAX reference (mirrors torch semantics with explicit concatenation).
# `matmul_dtype` optionally casts matmul inputs (to mimic the bf16 kernel).
# ----------------------------------------------------------------------------
def embed(x, num_freq, dtype=jnp.float32):
    freq_bands = (2.0 ** jnp.linspace(0.0, num_freq - 1, num_freq,
                                      dtype=dtype)) * jnp.pi
    xb = x[:, :, None].astype(dtype) * freq_bands            # (B, in, nf)
    e = jnp.concatenate([jnp.sin(xb), jnp.cos(xb)], axis=-1)  # (B, in, 2nf)
    return e.reshape(x.shape[0], -1)


def reference_forward(x, hash_encoding, raw, cfg, splits, activations,
                      num_freq, matmul_dtype=None):
    f32 = jnp.float32

    def mm(a, w):
        if matmul_dtype is not None:
            a = a.astype(matmul_dtype)
            w = w.astype(matmul_dtype)
        return jnp.dot(a, w, preferred_element_type=f32)

    if num_freq > 0:
        e = jnp.concatenate([embed(x, num_freq, f32),
                             hash_encoding.astype(f32)], axis=1)
    else:
        e = hash_encoding.astype(f32)

    h = e
    for (W, b) in raw["block1"]:
        h = jnp.maximum(mm(h, W) + b, 0.0)
    h = jnp.concatenate([h, e], axis=1)
    first = True
    for (W, b) in raw["block2"]:
        h = jnp.maximum(mm(h, W) + b, 0.0) if not first else \
            jnp.maximum(mm(h, W) + b, 0.0)
        first = False
    he = jnp.concatenate([h, e], axis=1)
    outs = []
    for (W1, b1, W2, b2) in raw["heads"]:
        t = jnp.maximum(mm(he, W1) + b1, 0.0)
        outs.append(mm(t, W2) + b2)
    y = jnp.concatenate(outs, axis=1)
    cols = []
    for i in range(y.shape[1]):
        act = activations[i] if i < len(activations) else "none"
        c = y[:, i]
        if act == "relu":
            c = jnp.maximum(c, 0.0)
        elif act == "sigmoid":
            c = jax.nn.sigmoid(c)
        elif act == "tanh":
            c = jnp.tanh(c)
        cols.append(c)
    return jnp.stack(cols, axis=1)


# ----------------------------------------------------------------------------
if __name__ == "__main__":
    batch = 256                      # small but > tile -> exercises the 2-step grid
    input_size = 3
    num_freq = 4
    hash_encoding_size = 8           # d_emb = 3*4*2 + 8 = 32
    hidden_size = 32
    num_hidden_layers = 2
    output_split_size = [2, 2]
    output_size = int(np.sum(output_split_size))
    output_activation = ["sigmoid", "none", "relu", "tanh"]

    key = jax.random.PRNGKey(0)
    kx, kh, kp = jax.random.split(key, 3)
    x = jax.random.normal(kx, (batch, input_size), jnp.float32)
    hash_encoding = jax.random.normal(kh, (batch, hash_encoding_size),
                                      jnp.float32)

    raw, cfg = build_params(kp, input_size, hash_encoding_size, hidden_size,
                            num_hidden_layers, num_freq, output_split_size)

    ref_f32 = reference_forward(x, hash_encoding, raw, cfg, output_split_size,
                                output_activation, num_freq)

    # f32 compute path: tight structural check against exact torch semantics.
    out_f32 = compression_net_forward(x, hash_encoding, raw, cfg,
                                      output_split_size, output_activation,
                                      output_size, tb=128,
                                      compute_dtype=jnp.float32)
    out_f32 = jax.block_until_ready(out_f32)
    np.testing.assert_allclose(np.asarray(out_f32), np.asarray(ref_f32),
                               rtol=1e-3, atol=1e-3)

    # bf16 compute path (production config): check against bf16-matched ref.
    ref_bf16 = reference_forward(x, hash_encoding, raw, cfg, output_split_size,
                                 output_activation, num_freq,
                                 matmul_dtype=jnp.bfloat16)
    out_bf16 = compression_net_forward(x, hash_encoding, raw, cfg,
                                       output_split_size, output_activation,
                                       output_size, tb=128,
                                       compute_dtype=jnp.bfloat16)
    out_bf16 = jax.block_until_ready(out_bf16)
    np.testing.assert_allclose(np.asarray(out_bf16), np.asarray(ref_bf16),
                               rtol=2e-2, atol=2e-2)

    print("KERNEL_OK")
</pallas_src>

<mosaic_0001>
module attributes {stable_mosaic.version = 11 : i64} {
  func.func @kernel(%arg0: i32, %arg1: memref<128x3xf32, #tpu.memory_space<vmem>>, %arg2: memref<3x24xf32, #tpu.memory_space<vmem>>, %arg3: memref<1x24xf32, #tpu.memory_space<vmem>>, %arg4: memref<128x8xf32, #tpu.memory_space<vmem>>, %arg5: memref<24x96xf32, #tpu.memory_space<vmem>>, %arg6: memref<8x96xf32, #tpu.memory_space<vmem>>, %arg7: memref<1x32xf32, #tpu.memory_space<vmem>>, %arg8: memref<32x32xf32, #tpu.memory_space<vmem>>, %arg9: memref<1x32xf32, #tpu.memory_space<vmem>>, %arg10: memref<32x32xf32, #tpu.memory_space<vmem>>, %arg11: memref<1x32xf32, #tpu.memory_space<vmem>>, %arg12: memref<32x32xf32, #tpu.memory_space<vmem>>, %arg13: memref<1x32xf32, #tpu.memory_space<vmem>>, %arg14: memref<32x32xf32, #tpu.memory_space<vmem>>, %arg15: memref<1x32xf32, #tpu.memory_space<vmem>>, %arg16: memref<32x4xf32, #tpu.memory_space<vmem>>, %arg17: memref<1x4xf32, #tpu.memory_space<vmem>>, %arg18: memref<3x4xf32, #tpu.memory_space<vmem>>, %arg19: memref<128x4xf32, #tpu.memory_space<vmem>>) attributes {dimension_semantics = [#tpu.dimension_semantics<parallel>], iteration_bounds = array<i64: 2>, scalar_prefetch = 0 : i64, scratch_operands = 0 : i64, tpu.core_type = #tpu.core_type<tc>, window_params = [{transform_indices = @transform_0, window_bounds = array<i64: 128, 3>}, {pipeline_mode = #tpu.pipeline_mode<synchronous>, transform_indices = @transform_1, window_bounds = array<i64: 3, 24>}, {pipeline_mode = #tpu.pipeline_mode<synchronous>, transform_indices = @transform_2, window_bounds = array<i64: 1, 24>}, {transform_indices = @transform_3, window_bounds = array<i64: 128, 8>}, {pipeline_mode = #tpu.pipeline_mode<synchronous>, transform_indices = @transform_4, window_bounds = array<i64: 24, 96>}, {pipeline_mode = #tpu.pipeline_mode<synchronous>, transform_indices = @transform_5, window_bounds = array<i64: 8, 96>}, {pipeline_mode = #tpu.pipeline_mode<synchronous>, transform_indices = @transform_6, window_bounds = array<i64: 1, 32>}, {pipeline_mode = #tpu.pipeline_mode<synchronous>, transform_indices = @transform_7, window_bounds = array<i64: 32, 32>}, {pipeline_mode = #tpu.pipeline_mode<synchronous>, transform_indices = @transform_8, window_bounds = array<i64: 1, 32>}, {pipeline_mode = #tpu.pipeline_mode<synchronous>, transform_indices = @transform_9, window_bounds = array<i64: 32, 32>}, {pipeline_mode = #tpu.pipeline_mode<synchronous>, transform_indices = @transform_10, window_bounds = array<i64: 1, 32>}, {pipeline_mode = #tpu.pipeline_mode<synchronous>, transform_indices = @transform_11, window_bounds = array<i64: 32, 32>}, {pipeline_mode = #tpu.pipeline_mode<synchronous>, transform_indices = @transform_12, window_bounds = array<i64: 1, 32>}, {pipeline_mode = #tpu.pipeline_mode<synchronous>, transform_indices = @transform_13, window_bounds = array<i64: 32, 32>}, {pipeline_mode = #tpu.pipeline_mode<synchronous>, transform_indices = @transform_14, window_bounds = array<i64: 1, 32>}, {pipeline_mode = #tpu.pipeline_mode<synchronous>, transform_indices = @transform_15, window_bounds = array<i64: 32, 4>}, {pipeline_mode = #tpu.pipeline_mode<synchronous>, transform_indices = @transform_16, window_bounds = array<i64: 1, 4>}, {pipeline_mode = #tpu.pipeline_mode<synchronous>, transform_indices = @transform_17, window_bounds = array<i64: 3, 4>}, {transform_indices = @transform_18, window_bounds = array<i64: 128, 4>}]} {
    %c0 = arith.constant 0 : index
    %c0_0 = arith.constant 0 : index
    %0 = vector.load %arg1[%c0, %c0_0] : memref<128x3xf32, #tpu.memory_space<vmem>>, vector<128x3xf32>
    %c0_1 = arith.constant 0 : index
    %c0_2 = arith.constant 0 : index
    %1 = vector.load %arg2[%c0_1, %c0_2] : memref<3x24xf32, #tpu.memory_space<vmem>>, vector<3x24xf32>
    %c0_3 = arith.constant 0 : index
    %c0_4 = arith.constant 0 : index
    %2 = vector.load %arg3[%c0_3, %c0_4] : memref<1x24xf32, #tpu.memory_space<vmem>>, vector<1x24xf32>
    %c0_5 = arith.constant 0 : index
    %c0_6 = arith.constant 0 : index
    %3 = vector.load %arg4[%c0_5, %c0_6] : memref<128x8xf32, #tpu.memory_space<vmem>>, vector<128x8xf32>
    %c0_7 = arith.constant 0 : index
    %c0_8 = arith.constant 0 : index
    %4 = vector.load %arg5[%c0_7, %c0_8] : memref<24x96xf32, #tpu.memory_space<vmem>>, vector<24x96xf32>
    %c0_9 = arith.constant 0 : index
    %c0_10 = arith.constant 0 : index
    %5 = vector.load %arg6[%c0_9, %c0_10] : memref<8x96xf32, #tpu.memory_space<vmem>>, vector<8x96xf32>
    %cst = arith.constant dense<0.000000e+00> : vector<128x96xf32>
    %6 = tpu.matmul %3, %5, %cst {dimension_numbers = #tpu.dot_dimension_numbers<[1], [0], [0], [1], [0, 0, 1, 1], [], []>} : vector<128x8xf32>, vector<8x96xf32>, vector<128x96xf32> -> vector<128x96xf32>
    %7 = vector.extract_strided_slice %0 {offsets = [0, 0], sizes = [128, 1], strides = [1, 1]} : vector<128x3xf32> to vector<128x1xf32>
    %8 = vector.extract_strided_slice %1 {offsets = [0, 0], sizes = [1, 24], strides = [1, 1]} : vector<3x24xf32> to vector<1x24xf32>
    %9 = vector.broadcast %7 : vector<128x1xf32> to vector<128x24xf32>
    %10 = vector.broadcast %8 : vector<1x24xf32> to vector<128x24xf32>
    %11 = arith.mulf %9, %10 : vector<128x24xf32>
    %12 = vector.extract_strided_slice %0 {offsets = [0, 1], sizes = [128, 1], strides = [1, 1]} : vector<128x3xf32> to vector<128x1xf32>
    %13 = vector.extract_strided_slice %1 {offsets = [1, 0], sizes = [1, 24], strides = [1, 1]} : vector<3x24xf32> to vector<1x24xf32>
    %14 = vector.broadcast %12 : vector<128x1xf32> to vector<128x24xf32>
    %15 = vector.broadcast %13 : vector<1x24xf32> to vector<128x24xf32>
    %16 = arith.mulf %14, %15 : vector<128x24xf32>
    %17 = arith.addf %11, %16 : vector<128x24xf32>
    %18 = vector.extract_strided_slice %0 {offsets = [0, 2], sizes = [128, 1], strides = [1, 1]} : vector<128x3xf32> to vector<128x1xf32>
    %19 = vector.extract_strided_slice %1 {offsets = [2, 0], sizes = [1, 24], strides = [1, 1]} : vector<3x24xf32> to vector<1x24xf32>
    %20 = vector.broadcast %18 : vector<128x1xf32> to vector<128x24xf32>
    %21 = vector.broadcast %19 : vector<1x24xf32> to vector<128x24xf32>
    %22 = arith.mulf %20, %21 : vector<128x24xf32>
    %23 = arith.addf %17, %22 : vector<128x24xf32>
    %cst_11 = arith.constant 5.000000e-01 : f32
    %24 = vector.broadcast %cst_11 : f32 to vector<1x24xf32>
    %25 = arith.cmpf ogt, %2, %24 : vector<1x24xf32>
    %26 = math.sin %23 : vector<128x24xf32>
    %27 = math.cos %23 : vector<128x24xf32>
    %28 = vector.shape_cast %25 : vector<1x24xi1> to vector<1x24xi1>
    %29 = vector.broadcast %28 : vector<1x24xi1> to vector<128x24xi1>
    %30 = arith.select %29, %26, %27 : vector<128x24xi1>, vector<128x24xf32>
    %cst_12 = arith.constant dense<0.000000e+00> : vector<128x96xf32>
    %31 = tpu.matmul %30, %4, %cst_12 {dimension_numbers = #tpu.dot_dimension_numbers<[1], [0], [0], [1], [0, 0, 1, 1], [], []>} : vector<128x24xf32>, vector<24x96xf32>, vector<128x96xf32> -> vector<128x96xf32>
    %32 = arith.addf %6, %31 : vector<128x96xf32>
    %c0_13 = arith.constant 0 : index
    %c0_14 = arith.constant 0 : index
    %33 = vector.load %arg7[%c0_13, %c0_14] : memref<1x32xf32, #tpu.memory_space<vmem>>, vector<1x32xf32>
    %34 = vector.extract_strided_slice %32 {offsets = [0, 0], sizes = [128, 32], strides = [1, 1]} : vector<128x96xf32> to vector<128x32xf32>
    %35 = vector.broadcast %33 : vector<1x32xf32> to vector<128x32xf32>
    %36 = arith.addf %34, %35 : vector<128x32xf32>
    %cst_15 = arith.constant 0.000000e+00 : f32
    %37 = vector.broadcast %cst_15 : f32 to vector<128x32xf32>
    %38 = arith.maximumf %36, %37 : vector<128x32xf32>
    %c0_16 = arith.constant 0 : index
    %c0_17 = arith.constant 0 : index
    %39 = vector.load %arg8[%c0_16, %c0_17] : memref<32x32xf32, #tpu.memory_space<vmem>>, vector<32x32xf32>
    %c0_18 = arith.constant 0 : index
    %c0_19 = arith.constant 0 : index
    %40 = vector.load %arg9[%c0_18, %c0_19] : memref<1x32xf32, #tpu.memory_space<vmem>>, vector<1x32xf32>
    %cst_20 = arith.constant dense<0.000000e+00> : vector<128x32xf32>
    %41 = tpu.matmul %38, %39, %cst_20 {dimension_numbers = #tpu.dot_dimension_numbers<[1], [0], [0], [1], [0, 0, 1, 1], [], []>} : vector<128x32xf32>, vector<32x32xf32>, vector<128x32xf32> -> vector<128x32xf32>
    %42 = vector.broadcast %40 : vector<1x32xf32> to vector<128x32xf32>
    %43 = arith.addf %41, %42 : vector<128x32xf32>
    %cst_21 = arith.constant 0.000000e+00 : f32
    %44 = vector.broadcast %cst_21 : f32 to vector<128x32xf32>
    %45 = arith.maximumf %43, %44 : vector<128x32xf32>
    %c0_22 = arith.constant 0 : index
    %c0_23 = arith.constant 0 : index
    %46 = vector.load %arg10[%c0_22, %c0_23] : memref<32x32xf32, #tpu.memory_space<vmem>>, vector<32x32xf32>
    %c0_24 = arith.constant 0 : index
    %c0_25 = arith.constant 0 : index
    %47 = vector.load %arg11[%c0_24, %c0_25] : memref<1x32xf32, #tpu.memory_space<vmem>>, vector<1x32xf32>
    %cst_26 = arith.constant dense<0.000000e+00> : vector<128x32xf32>
    %48 = tpu.matmul %45, %46, %cst_26 {dimension_numbers = #tpu.dot_dimension_numbers<[1], [0], [0], [1], [0, 0, 1, 1], [], []>} : vector<128x32xf32>, vector<32x32xf32>, vector<128x32xf32> -> vector<128x32xf32>
    %49 = vector.extract_strided_slice %32 {offsets = [0, 32], sizes = [128, 32], strides = [1, 1]} : vector<128x96xf32> to vector<128x32xf32>
    %50 = arith.addf %48, %49 : vector<128x32xf32>
    %51 = vector.broadcast %47 : vector<1x32xf32> to vector<128x32xf32>
    %52 = arith.addf %50, %51 : vector<128x32xf32>
    %cst_27 = arith.constant 0.000000e+00 : f32
    %53 = vector.broadcast %cst_27 : f32 to vector<128x32xf32>
    %54 = arith.maximumf %52, %53 : vector<128x32xf32>
    %c0_28 = arith.constant 0 : index
    %c0_29 = arith.constant 0 : index
    %55 = vector.load %arg12[%c0_28, %c0_29] : memref<32x32xf32, #tpu.memory_space<vmem>>, vector<32x32xf32>
    %c0_30 = arith.constant 0 : index
    %c0_31 = arith.constant 0 : index
    %56 = vector.load %arg13[%c0_30, %c0_31] : memref<1x32xf32, #tpu.memory_space<vmem>>, vector<1x32xf32>
    %cst_32 = arith.constant dense<0.000000e+00> : vector<128x32xf32>
    %57 = tpu.matmul %54, %55, %cst_32 {dimension_numbers = #tpu.dot_dimension_numbers<[1], [0], [0], [1], [0, 0, 1, 1], [], []>} : vector<128x32xf32>, vector<32x32xf32>, vector<128x32xf32> -> vector<128x32xf32>
    %58 = vector.broadcast %56 : vector<1x32xf32> to vector<128x32xf32>
    %59 = arith.addf %57, %58 : vector<128x32xf32>
    %cst_33 = arith.constant 0.000000e+00 : f32
    %60 = vector.broadcast %cst_33 : f32 to vector<128x32xf32>
    %61 = arith.maximumf %59, %60 : vector<128x32xf32>
    %c0_34 = arith.constant 0 : index
    %c0_35 = arith.constant 0 : index
    %62 = vector.load %arg14[%c0_34, %c0_35] : memref<32x32xf32, #tpu.memory_space<vmem>>, vector<32x32xf32>
    %c0_36 = arith.constant 0 : index
    %c0_37 = arith.constant 0 : index
    %63 = vector.load %arg15[%c0_36, %c0_37] : memref<1x32xf32, #tpu.memory_space<vmem>>, vector<1x32xf32>
    %cst_38 = arith.constant dense<0.000000e+00> : vector<128x32xf32>
    %64 = tpu.matmul %61, %62, %cst_38 {dimension_numbers = #tpu.dot_dimension_numbers<[1], [0], [0], [1], [0, 0, 1, 1], [], []>} : vector<128x32xf32>, vector<32x32xf32>, vector<128x32xf32> -> vector<128x32xf32>
    %65 = vector.extract_strided_slice %32 {offsets = [0, 64], sizes = [128, 32], strides = [1, 1]} : vector<128x96xf32> to vector<128x32xf32>
    %66 = arith.addf %64, %65 : vector<128x32xf32>
    %67 = vector.broadcast %63 : vector<1x32xf32> to vector<128x32xf32>
    %68 = arith.addf %66, %67 : vector<128x32xf32>
    %cst_39 = arith.constant 0.000000e+00 : f32
    %69 = vector.broadcast %cst_39 : f32 to vector<128x32xf32>
    %70 = arith.maximumf %68, %69 : vector<128x32xf32>
    %c0_40 = arith.constant 0 : index
    %c0_41 = arith.constant 0 : index
    %71 = vector.load %arg16[%c0_40, %c0_41] : memref<32x4xf32, #tpu.memory_space<vmem>>, vector<32x4xf32>
    %c0_42 = arith.constant 0 : index
    %c0_43 = arith.constant 0 : index
    %72 = vector.load %arg17[%c0_42, %c0_43] : memref<1x4xf32, #tpu.memory_space<vmem>>, vector<1x4xf32>
    %cst_44 = arith.constant dense<0.000000e+00> : vector<128x4xf32>
    %73 = tpu.matmul %70, %71, %cst_44 {dimension_numbers = #tpu.dot_dimension_numbers<[1], [0], [0], [1], [0, 0, 1, 1], [], []>} : vector<128x32xf32>, vector<32x4xf32>, vector<128x4xf32> -> vector<128x4xf32>
    %74 = vector.broadcast %72 : vector<1x4xf32> to vector<128x4xf32>
    %75 = arith.addf %73, %74 : vector<128x4xf32>
    %c0_45 = arith.constant 0 : index
    %c0_46 = arith.constant 0 : index
    %76 = vector.load %arg18[%c0_45, %c0_46] : memref<3x4xf32, #tpu.memory_space<vmem>>, vector<3x4xf32>
    %77 = vector.extract_strided_slice %76 {offsets = [0, 0], sizes = [1, 4], strides = [1, 1]} : vector<3x4xf32> to vector<1x4xf32>
    %cst_47 = arith.constant 5.000000e-01 : f32
    %78 = vector.broadcast %cst_47 : f32 to vector<1x4xf32>
    %79 = arith.cmpf ogt, %77, %78 : vector<1x4xf32>
    %cst_48 = arith.constant 0.000000e+00 : f32
    %80 = vector.broadcast %cst_48 : f32 to vector<128x4xf32>
    %81 = arith.maximumf %75, %80 : vector<128x4xf32>
    %82 = vector.shape_cast %79 : vector<1x4xi1> to vector<1x4xi1>
    %83 = vector.broadcast %82 : vector<1x4xi1> to vector<128x4xi1>
    %84 = arith.select %83, %81, %75 : vector<128x4xi1>, vector<128x4xf32>
    %85 = vector.extract_strided_slice %76 {offsets = [1, 0], sizes = [1, 4], strides = [1, 1]} : vector<3x4xf32> to vector<1x4xf32>
    %cst_49 = arith.constant 5.000000e-01 : f32
    %86 = vector.broadcast %cst_49 : f32 to vector<1x4xf32>
    %87 = arith.cmpf ogt, %85, %86 : vector<1x4xf32>
    %88 = arith.negf %75 : vector<128x4xf32>
    %89 = math.exp %88 : vector<128x4xf32>
    %cst_50 = arith.constant 1.000000e+00 : f32
    %90 = vector.broadcast %cst_50 : f32 to vector<128x4xf32>
    %91 = arith.addf %90, %89 : vector<128x4xf32>
    %92 = arith.divf %90, %91 : vector<128x4xf32>
    %93 = vector.shape_cast %87 : vector<1x4xi1> to vector<1x4xi1>
    %94 = vector.broadcast %93 : vector<1x4xi1> to vector<128x4xi1>
    %95 = arith.select %94, %92, %84 : vector<128x4xi1>, vector<128x4xf32>
    %96 = vector.extract_strided_slice %76 {offsets = [2, 0], sizes = [1, 4], strides = [1, 1]} : vector<3x4xf32> to vector<1x4xf32>
    %cst_51 = arith.constant 5.000000e-01 : f32
    %97 = vector.broadcast %cst_51 : f32 to vector<1x4xf32>
    %98 = arith.cmpf ogt, %96, %97 : vector<1x4xf32>
    %99 = math.tanh %75 : vector<128x4xf32>
    %100 = vector.shape_cast %98 : vector<1x4xi1> to vector<1x4xi1>
    %101 = vector.broadcast %100 : vector<1x4xi1> to vector<128x4xi1>
    %102 = arith.select %101, %99, %95 : vector<128x4xi1>, vector<128x4xf32>
    %c0_52 = arith.constant 0 : index
    %c0_53 = arith.constant 0 : index
    %103 = vector.load %arg19[%c0_52, %c0_53] : memref<128x4xf32, #tpu.memory_space<vmem>>, vector<128x4xf32>
    tpu.vector_store %arg19[%c0_52, %c0_53], %102 {strides = array<i32>} : memref<128x4xf32, #tpu.memory_space<vmem>>, vector<128x4xf32>,
    return
  }
  func.func @transform_0(%arg0: i32) -> (i32, i32) {
    %c0_i32 = arith.constant 0 : i32
    %c0_i32_0 = arith.constant 0 : i32
    return %arg0, %c0_i32 : i32, i32
  }
  func.func @transform_1(%arg0: i32) -> (i32, i32) {
    %c0_i32 = arith.constant 0 : i32
    %c0_i32_0 = arith.constant 0 : i32
    %c0_i32_1 = arith.constant 0 : i32
    return %c0_i32, %c0_i32_0 : i32, i32
  }
  func.func @transform_2(%arg0: i32) -> (i32, i32) {
    %c0_i32 = arith.constant 0 : i32
    %c0_i32_0 = arith.constant 0 : i32
    %c0_i32_1 = arith.constant 0 : i32
    return %c0_i32, %c0_i32_0 : i32, i32
  }
  func.func @transform_3(%arg0: i32) -> (i32, i32) {
    %c0_i32 = arith.constant 0 : i32
    %c0_i32_0 = arith.constant 0 : i32
    return %arg0, %c0_i32 : i32, i32
  }
  func.func @transform_4(%arg0: i32) -> (i32, i32) {
    %c0_i32 = arith.constant 0 : i32
    %c0_i32_0 = arith.constant 0 : i32
    %c0_i32_1 = arith.constant 0 : i32
    return %c0_i32, %c0_i32_0 : i32, i32
  }
  func.func @transform_5(%arg0: i32) -> (i32, i32) {
    %c0_i32 = arith.constant 0 : i32
    %c0_i32_0 = arith.constant 0 : i32
    %c0_i32_1 = arith.constant 0 : i32
    return %c0_i32, %c0_i32_0 : i32, i32
  }
  func.func @transform_6(%arg0: i32) -> (i32, i32) {
    %c0_i32 = arith.constant 0 : i32
    %c0_i32_0 = arith.constant 0 : i32
    %c0_i32_1 = arith.constant 0 : i32
    return %c0_i32, %c0_i32_0 : i32, i32
  }
  func.func @transform_7(%arg0: i32) -> (i32, i32) {
    %c0_i32 = arith.constant 0 : i32
    %c0_i32_0 = arith.constant 0 : i32
    %c0_i32_1 = arith.constant 0 : i32
    return %c0_i32, %c0_i32_0 : i32, i32
  }
  func.func @transform_8(%arg0: i32) -> (i32, i32) {
    %c0_i32 = arith.constant 0 : i32
    %c0_i32_0 = arith.constant 0 : i32
    %c0_i32_1 = arith.constant 0 : i32
    return %c0_i32, %c0_i32_0 : i32, i32
  }
  func.func @transform_9(%arg0: i32) -> (i32, i32) {
    %c0_i32 = arith.constant 0 : i32
    %c0_i32_0 = arith.constant 0 : i32
    %c0_i32_1 = arith.constant 0 : i32
    return %c0_i32, %c0_i32_0 : i32, i32
  }
  func.func @transform_10(%arg0: i32) -> (i32, i32) {
    %c0_i32 = arith.constant 0 : i32
    %c0_i32_0 = arith.constant 0 : i32
    %c0_i32_1 = arith.constant 0 : i32
    return %c0_i32, %c0_i32_0 : i32, i32
  }
  func.func @transform_11(%arg0: i32) -> (i32, i32) {
    %c0_i32 = arith.constant 0 : i32
    %c0_i32_0 = arith.constant 0 : i32
    %c0_i32_1 = arith.constant 0 : i32
    return %c0_i32, %c0_i32_0 : i32, i32
  }
  func.func @transform_12(%arg0: i32) -> (i32, i32) {
    %c0_i32 = arith.constant 0 : i32
    %c0_i32_0 = arith.constant 0 : i32
    %c0_i32_1 = arith.constant 0 : i32
    return %c0_i32, %c0_i32_0 : i32, i32
  }
  func.func @transform_13(%arg0: i32) -> (i32, i32) {
    %c0_i32 = arith.constant 0 : i32
    %c0_i32_0 = arith.constant 0 : i32
    %c0_i32_1 = arith.constant 0 : i32
    return %c0_i32, %c0_i32_0 : i32, i32
  }
  func.func @transform_14(%arg0: i32) -> (i32, i32) {
    %c0_i32 = arith.constant 0 : i32
    %c0_i32_0 = arith.constant 0 : i32
    %c0_i32_1 = arith.constant 0 : i32
    return %c0_i32, %c0_i32_0 : i32, i32
  }
  func.func @transform_15(%arg0: i32) -> (i32, i32) {
    %c0_i32 = arith.constant 0 : i32
    %c0_i32_0 = arith.constant 0 : i32
    %c0_i32_1 = arith.constant 0 : i32
    return %c0_i32, %c0_i32_0 : i32, i32
  }
  func.func @transform_16(%arg0: i32) -> (i32, i32) {
    %c0_i32 = arith.constant 0 : i32
    %c0_i32_0 = arith.constant 0 : i32
    %c0_i32_1 = arith.constant 0 : i32
    return %c0_i32, %c0_i32_0 : i32, i32
  }
  func.func @transform_17(%arg0: i32) -> (i32, i32) {
    %c0_i32 = arith.constant 0 : i32
    %c0_i32_0 = arith.constant 0 : i32
    %c0_i32_1 = arith.constant 0 : i32
    return %c0_i32, %c0_i32_0 : i32, i32
  }
  func.func @transform_18(%arg0: i32) -> (i32, i32) {
    %c0_i32 = arith.constant 0 : i32
    %c0_i32_0 = arith.constant 0 : i32
    return %arg0, %c0_i32 : i32, i32
  }
}

</mosaic_0001>

<bundles_post_ra>
// kernel: tpu_custom_call.1
= control target key start
LH: loop header
LB: loop body
LE: loop exit
PB: predicated region body
PF: predicated region fallthrough
CT: control target
= control target key end

     0   :  { %s7223_s27 = smov 0   ;;  %s9803_s0 = inlined_call_operand.vmem [shape: f32[256,3], index: 0, kind: input, shape index: {}]   ;;  %s9804_s1 = inlined_call_operand.vmem [shape: f32[3,24], index: 1, kind: input, shape index: {}]   ;;  %s9805_s2 = inlined_call_operand.vmem [shape: f32[1,24], index: 2, kind: input, shape index: {}]   ;;  %s9806_s3 = inlined_call_operand.vmem [shape: f32[256,8], index: 3, kind: input, shape index: {}]   ;;  %s9807_s4 = inlined_call_operand.vmem [shape: f32[24,96], index: 4, kind: input, shape index: {}]   ;;  %s9808_s5 = inlined_call_operand.vmem [shape: f32[8,96], index: 5, kind: input, shape index: {}]   ;;  %s9809_s6 = inlined_call_operand.vmem [shape: f32[1,32], index: 6, kind: input, shape index: {}]   ;;  %s9810_s7 = inlined_call_operand.vmem [shape: f32[32,32], index: 7, kind: input, shape index: {}]   ;;  %s9811_s8 = inlined_call_operand.vmem [shape: f32[1,32], index: 8, kind: input, shape index: {}]   ;;  %s9812_s9 = inlined_call_operand.vmem [shape: f32[32,32], index: 9, kind: input, shape index: {}]   ;;  %s9813_s10 = inlined_call_operand.vmem [shape: f32[1,32], index: 10, kind: input, shape index: {}]   ;;  %s9814_s11 = inlined_call_operand.vmem [shape: f32[32,32], index: 11, kind: input, shape index: {}]   ;;  %s9815_s12 = inlined_call_operand.vmem [shape: f32[1,32], index: 12, kind: input, shape index: {}]   ;;  %s9816_s13 = inlined_call_operand.vmem [shape: f32[32,32], index: 13, kind: input, shape index: {}]   ;;  %s9817_s14 = inlined_call_operand.vmem [shape: f32[1,32], index: 14, kind: input, shape index: {}]   ;;  %s9818_s15 = inlined_call_operand.vmem [shape: f32[32,4], index: 15, kind: input, shape index: {}]   ;;  %s9819_s16 = inlined_call_operand.vmem [shape: f32[1,4], index: 16, kind: input, shape index: {}]   ;;  %s9820_s17 = inlined_call_operand.vmem [shape: f32[3,4], index: 17, kind: input, shape index: {}]   ;;  %s9821_s18 = inlined_call_operand.vmem [shape: f32[256,4], index: 18, kind: output, shape index: {}]  }
   0x1   :  { %9916 = sst [smem:[#allocation36_spill]] %s9803_s0 }
   0x2   :  { %9917 = sst [smem:[#allocation37_spill]] %s9804_s1 }
   0x3   :  { %9918 = sst [smem:[#allocation38_spill]] %s9805_s2 }
   0x4 LB: > { %s6209_s28 = sadd.s32 4294967295, %s7115_s27   ;;  %p6213_p0 = scmp.ge.s32.totalorder %s7115_s27, 1  ;;  %s7115_s27 = sphi %s7223_s27, %s28_s27  }
   0x5   : > { %p524_p1 = scmp.lt.s32.totalorder %s7115_s27, 3 }
   0x7   : > { %p525_p2 = pnand %p6213_p0, %p524_p1 }
   0x9   : > { %528 = sbr.rel (%p525_p2) target bundleno = 1928 (0x788), region = 92 }
   0xe   : > { %s6214_s29 = sshll.u32 %s6209_s28, 4  ;;  %v9824_v0 = vmov 0   ;;  %s9919_s1 = sld [smem:[#allocation36_spill]]  ;;  %v7118_v3 = vmov 1   ;;  %v7119_v5 = vmov 2   ;;  %v719_v18 = vlaneseq }
   0xf   : > { %6923 = vset.pattern.permute.xlu1 %v9824_v0  ;;  %6921 = vset.pattern.permute.xlu0 %v9824_v0  ;;  %p584_p3 = scmp.lt.s32.totalorder %s6214_s29, 31  ;;  %s9922_s2 = sld [smem:[#allocation37_spill]] }
  0x10   : > { %v7282_v19 = vshrl.u32 %v719_v18, 7  ;;  %s7126_s22 = smov 96  }
  0x11   : > { %s10110_s29 = smov (!%p584_p3, %s6214_s29), 31 }
  0x12   : > { %s7233_s30 = sshll.u32 %s10110_s29, 3  ;;  %9920 = vst [vmem:[#allocation2_spill] sm:$0xff] %v7282_v19  ;;  %v9823_v20 = vsub.s32 1, %v7282_v19  ;;  %v7286_v21 = vsub.s32 0, %v7282_v19  ;;  %v9822_v27 = vsub.s32 2, %v7282_v19 }
  0x13   : > { %s8858_s23 = scalar_lea.vmem %s9806_s3, %s7233_s30  ;;  %s9624_s19 = scalar_lea.vmem %s9821_s18, %s7233_s30 }
  0x14   : > { %s7239_s20 = scalar_lea.vmem %s9919_s1, %s7233_s30  ;;  %9921 = vst [vmem:[#allocation3_spill] sm:$0xff] %v7286_v21  ;;  %s9981_s1 = sld [smem:[#allocation38_spill]] }
  0x15   : > { %v602_v1 = vld [vmem:[%s7239_s20 + $0x8] sm:$0xff]  ;;  %v601_v2 = vld [vmem:[%s7239_s20] sm:$0xff]  ;;  %v604_v4 = vld [vmem:[%s7239_s20 + $0x18] sm:$0xff] }
  0x16   : > { %646 = vperm.xlu1 %6923, %v602_v1   ;;  %641 = vperm.xlu0 %6921, %v601_v2   ;;  %v606_v6 = vld [vmem:[%s7239_s20 + $0x28] sm:$0xff]  ;;  %v603_v7 = vld [vmem:[%s7239_s20 + $0x10] sm:$0xff]  ;;  %v608_v8 = vld [vmem:[%s7239_s20 + $0x38] sm:$0xff] }
  0x17   : > { %v610_v9 = vld [vmem:[%s7239_s20 + $0x48] sm:$0xff]  ;;  %v612_v10 = vld [vmem:[%s7239_s20 + $0x58] sm:$0xff]  ;;  %v605_v12 = vld [vmem:[%s7239_s20 + $0x20] sm:$0xff] }
  0x18   : > { %v614_v11 = vld [vmem:[%s7239_s20 + $0x68] sm:$0xff]  ;;  %v7259_v13 = vld [vmem:[%s7239_s20 + $0x78] sm:$0xff]  ;;  %v607_v14 = vld [vmem:[%s7239_s20 + $0x30] sm:$0xff] }
  0x19   : > { %v609_v15 = vld [vmem:[%s7239_s20 + $0x40] sm:$0xff]  ;;  %v611_v16 = vld [vmem:[%s7239_s20 + $0x50] sm:$0xff] }
  0x1a   : > { %6924 = vset.pattern.permute.xlu1 %v7118_v3  ;;  %6922 = vset.pattern.permute.xlu0 %v7118_v3  ;;  %v613_v17 = vld [vmem:[%s7239_s20 + $0x60] sm:$0xff]  ;;  %v615_v28 = vld [vmem:[%s7239_s20 + $0x70] sm:$0xff] }
  0x1b   : > { %744 = vperm.xlu1 %6924, %v602_v1   ;;  %740 = vperm.xlu0 %6922, %v601_v2   ;;  %v617_v22 = vld [vmem:[%s9922_s2] sm:$0x7]  ;;  %s7127_s2 = smov 64  }
  0x1c   : > { %v7294_v25 = vrot.slane %v617_v22, %v9823_v20  ;;  %v7297_v26 = vrot.slane %v617_v22, %v7286_v21  ;;  %v7308_v35 = vrot.slane %v617_v22, %v9822_v27 }
  0x1e   : > { %9923 = vst [vmem:[#allocation4_spill] sm:$0xff] %v7308_v35 }
  0x1f   : > { %6925 = vset.pattern.permute.xlu1 %v7119_v5  ;;  %6928 = vset.pattern.permute.xlu0 %v9824_v0 }
  0x20   : > { %840 = vperm.xlu1 %6925, %v601_v2   ;;  %656 = vperm.xlu0 %6928, %v604_v4  }
  0x24   : > { %6926 = vset.pattern.permute.xlu1 %v9824_v0  ;;  %666 = vperm.xlu0 %6928, %v606_v6  }
  0x25   : > { %651 = vperm.xlu1 %6926, %v603_v7  }
  0x28   : > { %676 = vperm.xlu0 %6928, %v608_v8  }
  0x29   : > { %6927 = vset.pattern.permute.xlu1 %v7118_v3 }
  0x2a   : > { %748 = vperm.xlu1 %6927, %v603_v7  }
  0x2c   : > { %686 = vperm.xlu0 %6928, %v610_v9  }
  0x2e   : > { %752 = vperm.xlu1 %6927, %v604_v4  }
  0x30   : > { %696 = vperm.xlu0 %6928, %v612_v10  }
  0x32   : > { %6929 = vset.pattern.permute.xlu1 %v7119_v5 }
  0x33   : > { %848 = vperm.xlu1 %6929, %v603_v7  }
  0x34   : > { %706 = vperm.xlu0 %6928, %v614_v11  }
  0x37   : > { %6930 = vset.pattern.permute.xlu1 %v9824_v0 }
  0x38   : > { %661 = vperm.xlu1 %6930, %v605_v12   ;;  %716 = vperm.xlu0 %6928, %v7259_v13  }
  0x3c   : > { %6931 = vset.pattern.permute.xlu1 %v7118_v3  ;;  %6947 = vset.pattern.permute.xlu0 %v7119_v5 }
  0x3d   : > { %756 = vperm.xlu1 %6931, %v605_v12   ;;  %844 = vperm.xlu0 %6947, %v602_v1  }
  0x41   : > { %760 = vperm.xlu1 %6931, %v606_v6   ;;  %852 = vperm.xlu0 %6947, %v604_v4  }
  0x45   : > { %6932 = vset.pattern.permute.xlu1 %v7119_v5  ;;  %860 = vperm.xlu0 %6947, %v606_v6  }
  0x46   : > { %856 = vperm.xlu1 %6932, %v605_v12  }
  0x49   : > { %868 = vperm.xlu0 %6947, %v608_v8  }
  0x4a   : > { %6933 = vset.pattern.permute.xlu1 %v9824_v0 }
  0x4b   : > { %671 = vperm.xlu1 %6933, %v607_v14  }
  0x4d   : > { %876 = vperm.xlu0 %6947, %v610_v9  }
  0x4f   : > { %6934 = vset.pattern.permute.xlu1 %v7118_v3 }
  0x50   : > { %764 = vperm.xlu1 %6934, %v607_v14  }
  0x51   : > { %884 = vperm.xlu0 %6947, %v612_v10  }
  0x54   : > { %768 = vperm.xlu1 %6934, %v608_v8  }
  0x55   : > { %892 = vperm.xlu0 %6947, %v614_v11  }
  0x58   : > { %6935 = vset.pattern.permute.xlu1 %v7119_v5 }
  0x59   : > { %864 = vperm.xlu1 %6935, %v607_v14   ;;  %900 = vperm.xlu0 %6947, %v7259_v13  }
  0x5d   : > { %6936 = vset.pattern.permute.xlu1 %v9824_v0 }
  0x5e   : > { %681 = vperm.xlu1 %6936, %v609_v15  }
  0x62   : > { %6937 = vset.pattern.permute.xlu1 %v7118_v3 }
  0x63   : > { %772 = vperm.xlu1 %6937, %v609_v15  }
  0x67   : > { %776 = vperm.xlu1 %6937, %v610_v9  }
  0x6b   : > { %6938 = vset.pattern.permute.xlu1 %v7119_v5 }
  0x6c   : > { %872 = vperm.xlu1 %6938, %v609_v15  }
  0x70   : > { %6939 = vset.pattern.permute.xlu1 %v9824_v0 }
  0x71   : > { %691 = vperm.xlu1 %6939, %v611_v16  }
  0x75   : > { %6940 = vset.pattern.permute.xlu1 %v7118_v3 }
  0x76   : > { %780 = vperm.xlu1 %6940, %v611_v16  }
  0x7a   : > { %784 = vperm.xlu1 %6940, %v612_v10  }
  0x7e   : > { %6941 = vset.pattern.permute.xlu1 %v7119_v5 }
  0x7f   : > { %880 = vperm.xlu1 %6941, %v611_v16  }
  0x83   : > { %6942 = vset.pattern.permute.xlu1 %v9824_v0 }
  0x84   : > { %701 = vperm.xlu1 %6942, %v613_v17  }
  0x88   : > { %6943 = vset.pattern.permute.xlu1 %v7118_v3 }
  0x89   : > { %788 = vperm.xlu1 %6943, %v613_v17  }
  0x8d   : > { %792 = vperm.xlu1 %6943, %v614_v11  }
  0x91   : > { %v647_v23 = vpop.permute.xlu1 %646  ;;  %6944 = vset.pattern.permute.xlu1 %v7119_v5  ;;  %v642_v24 = vpop.permute.xlu0 %641 }
  0x92   : > { %888 = vperm.xlu1 %6944, %v613_v17   ;;  %v723_v29 = vmul.f32 %v7297_v26, %v642_v24  ;;  %v724_v32 = vmul.f32 %v7297_v26, %v647_v23  ;;  %v9834_v17 = vmov 2102212464   ;;  %v9864_v24 = vmov 920167782  }
  0x96   : > { %v745_v30 = vpop.permute.xlu1 %744  ;;  %6945 = vset.pattern.permute.xlu1 %v9824_v0  ;;  %v741_v31 = vpop.permute.xlu0 %740 }
  0x97   : > { %v808_v33 = vmul.f32 %v7294_v25, %v745_v30  ;;  %711 = vperm.xlu1 %6945, %v615_v28   ;;  %v807_v34 = vmul.f32 %v7294_v25, %v741_v31 }
  0x99   : > { %v824_v36 = vadd.f32 %v808_v33, %v724_v32  ;;  %v823_v37 = vadd.f32 %v807_v34, %v723_v29  ;;  %v9836_v34 = vmov 683565275  }
  0x9b   : > { %6946 = vset.pattern.permute.xlu1 %v7118_v3  ;;  %v841_v38 = vpop.permute.xlu1 %840  ;;  %v657_v39 = vpop.permute.xlu0 %656 }
  0x9c   : > { %v907_v40 = vmul.f32 %v7308_v35, %v841_v38  ;;  %796 = vperm.xlu1 %6946, %v615_v28   ;;  %v726_v7 = vmul.f32 %v7297_v26, %v657_v39  ;;  %v9838_v38 = vmov 1326507024  }
  0x9e   : > { %v7312_v41 = vadd.f32 %v907_v40, %v823_v37 }
  0x9f   : > { %v667_v42 = vpop.permute.xlu0 %666 }
  0xa0   : > { %v943_v43 = vand.u32 2139095040, %v7312_v41  ;;  %800 = vperm.xlu1 %6946, %v7259_v13   ;;  %v652_v44 = vpop.permute.xlu1 %651  ;;  %v9826_v54 = vand.u32 2147483647, %v7312_v41  ;;  %v7336_v11 = vmul.f32 %v7297_v26, %v667_v42 }
  0xa1   : > { %v725_v55 = vmul.f32 %v7297_v26, %v652_v44  ;;  %v9832_v44 = vmov 2475754826  }
  0xa2   : > { %v944_v45 = vshrl.u32 %v943_v43, 23  ;;  %v947_v61 = vand.u32 8388607, %v9826_v54 }
  0xa3   : > { %v677_v46 = vpop.permute.xlu0 %676 }
  0xa4   : > { %v6220_v47 = vadd.s32 4294967169, %v944_v45  ;;  %6948 = vset.pattern.permute.xlu1 %v7119_v5  ;;  %v948_v4 = vor.u32 8388608, %v947_v61  ;;  %v7339_v12 = vmul.f32 %v7297_v26, %v677_v46 }
  0xa5   : > { %896 = vperm.xlu1 %6948, %v615_v28   ;;  %v749_v48 = vpop.permute.xlu1 %748 }
  0xa6   : > { %v950_v50 = vadd.s32 1, %v6220_v47  ;;  %v809_v52 = vmul.f32 %v7294_v25, %v749_v48  ;;  %v7344_v15 = vshll.u32 %v948_v4, 8  ;;  %v9830_v47 = vmov 2131351028  }
  0xa7   : > { %v687_v49 = vpop.permute.xlu0 %686 }
  0xa8   : > { %vm951_vm0 = vcmp.gt.s32.totalorder %v950_v50, 0  ;;  %v825_v58 = vadd.f32 %v809_v52, %v725_v55  ;;  %v7342_v13 = vmul.f32 %v7297_v26, %v687_v49 }
  0xa9   : > { %v753_v51 = vpop.permute.xlu1 %752  ;;  %v952_v57 = vsel %vm951_vm0, %v950_v50, 0 }
  0xaa   : > { %v954_v63 = vand.u32 31, %v952_v57  ;;  %v810_v8 = vmul.f32 %v7294_v25, %v753_v51  ;;  %v7346_v16 = vshrl.u32 %v952_v57, 5 }
  0xab   : > { %v697_v53 = vpop.permute.xlu0 %696 }
  0xac   : > { %v955_v6 = vsub.s32 32, %v954_v63  ;;  %v966_v18 = vshll.u32 %v9834_v17, %v954_v63  ;;  %v7352_v29 = vshll.u32 %v9864_v24, %v954_v63  ;;  %v7354_v30 = vadd.f32 %v810_v8, %v726_v7 }
  0xad   : > { %v7357_v32 = vmul.f32 %v7297_v26, %v697_v53  ;;  %v7362_v37 = vshll.u32 %v9836_v34, %v954_v63  ;;  %v7371_v45 = vshll.u32 %v9832_v44, %v954_v63  ;;  %v7376_v49 = vshll.u32 %v9830_v47, %v954_v63 }
  0xae   : > { %v849_v56 = vpop.permute.xlu1 %848  ;;  %v967_v28 = vshrl.u32 %v9864_v24, %v955_v6  ;;  %v7365_v39 = vshrl.u32 %v9838_v38, %v955_v6  ;;  %v7368_v43 = vshrl.u32 %v9836_v34, %v955_v6  ;;  %v961_v48 = vshrl.u32 %v9830_v47, %v955_v6 }
  0xaf   : > { %v909_v59 = vmul.f32 %v7308_v35, %v849_v56  ;;  %v7321_v60 = vpop.permute.xlu0 %706  ;;  %v964_v55 = vshrl.u32 %v9834_v17, %v955_v6  ;;  %vm975_vm4 = vcmp.lt.s32.totalorder %v7346_v16, 4  ;;  %vm972_vm10 = vcmp.lt.s32.totalorder %v7346_v16, 1 }
  0xb0   : > { %v7378_v50 = vor.u32 %v967_v28, %v966_v18  ;;  %vm973_vm14 = vcmp.lt.s32.totalorder %v7346_v16, 2  ;;  %vm974_vm15 = vcmp.lt.s32.totalorder %v7346_v16, 3 }
  0xb1   : > { %v7325_v62 = vadd.f32 %v909_v59, %v825_v58 }
  0xb3   : > { %9924 = vst [vmem:[#allocation5_spill] sm:$0xff] %v7325_v62  ;;  %v9829_v1 = vand.u32 2147483647, %v7325_v62  ;;  %v1151_v2 = vand.u32 2139095040, %v7325_v62  ;;  %v7329_v3 = vpop.permute.xlu0 %716  ;;  %v7382_v53 = vpop.permute.xlu1 %661 }
  0xb5   : > { %v1152_v5 = vshrl.u32 %v1151_v2, 23  ;;  %v1155_v9 = vand.u32 8388607, %v9829_v1 }
  0xb7   : > { %v6228_v10 = vadd.s32 4294967169, %v1152_v5  ;;  %v1156_v31 = vor.u32 8388608, %v1155_v9 }
  0xb8   : > { %v845_v14 = vpop.permute.xlu0 %844 }
  0xb9   : > { %v1158_v22 = vadd.s32 1, %v6228_v10  ;;  %v908_v23 = vmul.f32 %v7308_v35, %v845_v14  ;;  %v7380_v52 = vshll.u32 %v1156_v31, 8 }
  0xbb   : > { %vm1159_vm1 = vcmp.gt.s32.totalorder %v1158_v22, 0  ;;  %v7359_v33 = vadd.f32 %v908_v23, %v824_v36  ;;  %v958_v36 = vshrl.u32 %v9832_v44, %v955_v6 }
  0xbc   : > { %v1160_v40 = vsel %vm1159_vm1, %v1158_v22, 0  ;;  %v853_v42 = vpop.permute.xlu0 %852 }
  0xbd   : > { %v1162_v46 = vand.u32 31, %v1160_v40  ;;  %v1161_v51 = vshrl.u32 %v1160_v40, 5  ;;  %v9828_v57 = vand.u32 2147483647, %v7359_v33  ;;  %v1047_v58 = vand.u32 2139095040, %v7359_v33  ;;  %v7400_v40 = vpop.permute.xlu1 %756 }
  0xbe   : > { %v910_v59 = vmul.f32 %v7308_v35, %v853_v42 }
  0xbf   : > { %v1163_v56 = vsub.s32 32, %v1162_v46  ;;  %v1165_v61 = vshll.u32 %v9836_v34, %v1162_v46  ;;  %v1168_v63 = vshll.u32 %v9832_v44, %v1162_v46  ;;  %v1171_v2 = vshll.u32 %v9830_v47, %v1162_v46 }
  0xc0   : > { %v1174_v4 = vshll.u32 %v9834_v17, %v1162_v46  ;;  %v1177_v8 = vshll.u32 %v9864_v24, %v1162_v46  ;;  %vm1180_vm2 = vcmp.lt.s32.totalorder %v1161_v51, 1  ;;  %vm1181_vm3 = vcmp.lt.s32.totalorder %v1161_v51, 2 }
  0xc1   : > { %v1166_v5 = vshrl.u32 %v9832_v44, %v1163_v56  ;;  %v1169_v7 = vshrl.u32 %v9830_v47, %v1163_v56  ;;  %v1172_v6 = vshrl.u32 %v9834_v17, %v1163_v56  ;;  %v1175_v9 = vshrl.u32 %v9864_v24, %v1163_v56 }
  0xc2   : > { %v1178_v10 = vshrl.u32 %v9838_v38, %v1163_v56  ;;  %v1164_v14 = vshrl.u32 %v9836_v34, %v1163_v56  ;;  %vm1183_vm5 = vcmp.lt.s32.totalorder %v1161_v51, 4  ;;  %v1048_v42 = vshrl.u32 %v1047_v58, 23 }
  0xc3   : > { %v1167_v18 = vor.u32 %v1166_v5, %v1165_v61  ;;  %v1170_v22 = vor.u32 %v1169_v7, %v1168_v63  ;;  %v1173_v23 = vor.u32 %v1172_v6, %v1171_v2  ;;  %v1176_v28 = vor.u32 %v1175_v9, %v1174_v4 }
  0xc4   : > { %v1179_v31 = vor.u32 %v1178_v10, %v1177_v8  ;;  %v1051_v0 = vand.u32 8388607, %v9828_v57  ;;  %vm1182_vm6 = vcmp.lt.s32.totalorder %v1161_v51, 3  ;;  %v6224_v61 = vadd.s32 4294967169, %v1048_v42 }
  0xc5   : > { %v1185_v46 = vsel %vm1183_vm5, %v1173_v23, 2102212464  ;;  %v1188_v27 = vsel %vm1180_vm2, %v1167_v18, %v1170_v22  ;;  %v1192_v20 = vsel %vm1180_vm2, %v1170_v22, %v1173_v23  ;;  %v1189_v54 = vsel %vm1183_vm5, %v1176_v28, 920167782 }
  0xc6   : > { %v1193_v56 = vsel %vm1183_vm5, %v1179_v31, 1326507024  ;;  %v1184_v63 = vsel %vm1180_vm2, %v1164_v14, %v1167_v18  ;;  %v1186_v2 = vsel %vm1182_vm6, %v1170_v22, %v1185_v46  ;;  %v1190_v4 = vsel %vm1182_vm6, %v1173_v23, %v1189_v54  ;;  %v761_v18 = vpop.permute.xlu1 %760 }
  0xc7   : > { %v1194_v5 = vsel %vm1182_vm6, %v1176_v28, %v1193_v56  ;;  %v971_v58 = vor.u32 %v7365_v39, %v7352_v29  ;;  %v1191_v7 = vsel %vm1181_vm3, %v1188_v27, %v1190_v4  ;;  %v1054_v8 = vadd.s32 1, %v6224_v61 }
  0xc8   : > { %v1195_v6 = vsel %vm1181_vm3, %v1192_v20, %v1194_v5  ;;  %v7416_v31 = vmul.u32.u64.low %v7380_v52, %v1191_v7  ;;  %v7417_v42 = vmul.u32.u64.high %v7380_v52, %v1191_v7, %v7416_v31  ;;  %v1187_v54 = vsel %vm1181_vm3, %v1184_v63, %v1186_v2 }
  0xc9   : > { %v7412_v9 = vmul.u32.u64.low %v7380_v52, %v1195_v6  ;;  %v7413_v10 = vmul.u32.u64.high %v7380_v52, %v1195_v6, %v7412_v9  ;;  %v1052_v14 = vor.u32 8388608, %v1051_v0  ;;  %vm1055_vm7 = vcmp.gt.s32.totalorder %v1054_v8, 0 }
  0xca   : > { %v7422_v29 = vadd.f32 %v910_v59, %v7354_v30  ;;  %v7426_v20 = vmul.f32 %v7297_v26, %v7321_v60  ;;  %v1056_v27 = vsel %vm1055_vm7, %v1054_v8, 0  ;;  %v7429_v39 = vor.u32 %v958_v36, %v7362_v37 }
  0xcb   : > { %v7432_v22 = vor.u32 %v961_v48, %v7371_v45  ;;  %v7437_v0 = vsel %vm975_vm4, %v7378_v50, 920167782  ;;  %v7441_v30 = vsel %vm975_vm4, %v971_v58, 1326507024  ;;  %v1058_v51 = vand.u32 31, %v1056_v27 }
  0xcc   : > { %9925 = vst [vmem:[#allocation6_spill] sm:$0xff] %v7426_v20  ;;  %v7444_v60 = vor.u32 %v964_v55, %v7376_v49  ;;  %v1203_v59 = vmul.u32 %v7380_v52, %v1187_v54  ;;  %vm1205_vm8 = vc.u32 %v7413_v10, %v7416_v31  ;;  %v1206_v37 = vadd.s32 1, %v7417_v42 }
  0xcd   : > { %v812_v45 = vmul.f32 %v7294_v25, %v761_v18  ;;  %v1057_v36 = vshrl.u32 %v1056_v27, 5  ;;  %v1059_v48 = vsub.s32 32, %v1058_v51  ;;  %v7451_v23 = vshll.u32 %v1052_v14, 8 }
  0xce   : > { %v1255_v28 = vand.u32 2139095040, %v7422_v29  ;;  %v1207_v46 = vsel %vm1205_vm8, %v1206_v37, %v7417_v42  ;;  %v1061_v49 = vshll.u32 %v9836_v34, %v1058_v51  ;;  %v1064_v55 = vshll.u32 %v9832_v44, %v1058_v51 }
  0xcf   : > { %v1067_v52 = vshll.u32 %v9830_v47, %v1058_v51  ;;  %v1208_v56 = vadd.s32 %v1207_v46, %v1203_v59  ;;  %v1062_v61 = vshrl.u32 %v9832_v44, %v1059_v48  ;;  %v1065_v63 = vshrl.u32 %v9830_v47, %v1059_v48 }
  0xd0   : > { %v1070_v2 = vshll.u32 %v9834_v17, %v1058_v51  ;;  %v1068_v4 = vshrl.u32 %v9834_v17, %v1059_v48  ;;  %v1071_v5 = vshrl.u32 %v9864_v24, %v1059_v48  ;;  %v1073_v58 = vshll.u32 %v9864_v24, %v1058_v51 }
  0xd1   : > { %v1074_v7 = vshrl.u32 %v9838_v38, %v1059_v48  ;;  %v1209_v6 = vadd.s32 536870912, %v1208_v56  ;;  %v1063_v8 = vor.u32 %v1062_v61, %v1061_v49  ;;  %v1066_v9 = vor.u32 %v1065_v63, %v1064_v55 }
  0xd2   : > { %vm1076_vm9 = vcmp.lt.s32.totalorder %v1057_v36, 1  ;;  %v1060_v42 = vshrl.u32 %v9836_v34, %v1059_v48  ;;  %v1069_v54 = vor.u32 %v1068_v4, %v1067_v52  ;;  %v1072_v14 = vor.u32 %v1071_v5, %v1070_v2  ;;  %v861_v5 = vpop.permute.xlu0 %860 }
  0xd3   : > { %v1075_v18 = vor.u32 %v1074_v7, %v1073_v58  ;;  %v7467_v27 = vshrl.u32 %v1209_v6, 30  ;;  %vm1078_vm11 = vcmp.lt.s32.totalorder %v1057_v36, 3  ;;  %vm1079_vm12 = vcmp.lt.s32.totalorder %v1057_v36, 4 }
  0xd4   : > { %v1084_v59 = vsel %vm1076_vm9, %v1063_v8, %v1066_v9  ;;  %v1081_v51 = vsel %vm1079_vm12, %v1069_v54, 2102212464  ;;  %v1085_v37 = vsel %vm1079_vm12, %v1072_v14, 920167782  ;;  %v1088_v46 = vsel %vm1076_vm9, %v1066_v9, %v1069_v54 }
  0xd5   : > { %9926 = vst [vmem:[#allocation7_spill] sm:$0xff] %v7467_v27  ;;  %v1089_v49 = vsel %vm1079_vm12, %v1075_v18, 1326507024  ;;  %v1211_v55 = vshll.u32 %v7467_v27, 30  ;;  %vm1077_vm13 = vcmp.lt.s32.totalorder %v1057_v36, 2  ;;  %v1086_v61 = vsel %vm1078_vm11, %v1069_v54, %v1085_v37 }
  0xd6   : > { %v1090_v48 = vsel %vm1078_vm11, %v1072_v14, %v1089_v49  ;;  %v1080_v52 = vsel %vm1076_vm9, %v1060_v42, %v1063_v8  ;;  %v1087_v63 = vsel %vm1077_vm13, %v1084_v59, %v1086_v61  ;;  %v1256_v4 = vshrl.u32 %v1255_v28, 23 }
  0xd7   : > { %v1091_v2 = vsel %vm1077_vm13, %v1088_v46, %v1090_v48  ;;  %v7477_v58 = vsub.s32 %v1208_v56, %v1211_v55  ;;  %v1082_v7 = vsel %vm1078_vm11, %v1066_v9, %v1081_v51  ;;  %v9827_v8 = vand.u32 2147483647, %v7422_v29 }
  0xd8   : > { %v7481_v6 = vmul.u32.u64.low %v7451_v23, %v1091_v2  ;;  %v7482_v18 = vmul.u32.u64.high %v7451_v23, %v1091_v2, %v7481_v6  ;;  %v7485_v54 = vmul.u32.u64.low %v7451_v23, %v1087_v63  ;;  %v7486_v37 = vmul.u32.u64.high %v7451_v23, %v1087_v63, %v7485_v54 }
  0xd9   : > { %v6232_v42 = vadd.s32 4294967169, %v1256_v4  ;;  %v1214_v14 = vsub.s32 0, %v7477_v58  ;;  %v912_v28 = vmul.f32 %v7308_v35, %v861_v5  ;;  %v727_v56 = vmul.f32 %v7297_v26, %v7382_v53 }
  0xda   : > { %v1083_v9 = vsel %vm1077_vm13, %v1080_v52, %v1082_v7  ;;  %v7501_v51 = vsel %vm972_vm10, %v7368_v43, %v7429_v39  ;;  %vm1101_vm0 = vc.u32 %v7482_v18, %v7485_v54  ;;  %v828_v49 = vadd.f32 %v812_v45, %v7336_v11 }
  0xdb   : > { %v1262_v59 = vadd.s32 1, %v6232_v42  ;;  %v6229_v46 = vmin.u32 %v1214_v14, %v7477_v58  ;;  %v984_v53 = vsel %vm972_vm10, %v7432_v22, %v7444_v60  ;;  %v1102_v36 = vadd.s32 1, %v7486_v37 }
  0xdc   : > { %v1259_v55 = vand.u32 8388607, %v9827_v8  ;;  %v986_v43 = vsel %vm974_vm15, %v7378_v50, %v7441_v30  ;;  %v1099_v48 = vmul.u32 %v7451_v23, %v1083_v9  ;;  %v7519_v45 = vadd.f32 %v912_v28, %v828_v49 }
  0xdd   : > { %vm1263_vm1 = vcmp.gt.s32.totalorder %v1262_v59, 0  ;;  %v1216_v61 = vclz %v6229_v46  ;;  %v7523_v52 = vmul.f32 %v7297_v26, %v7329_v3  ;;  %v1103_v63 = vsel %vm1101_vm0, %v1102_v36, %v7486_v37 }
  0xde   : > { %v1264_v11 = vsel %vm1263_vm1, %v1262_v59, 0  ;;  %v7529_v4 = vsel %vm975_vm4, %v7444_v60, 2102212464  ;;  %v1104_v50 = vadd.s32 %v1103_v63, %v1099_v48  ;;  %v7535_v30 = vsel %vm972_vm10, %v7429_v39, %v7432_v22 }
  0xdf   : > { %9927 = vst [vmem:[#allocation8_spill] sm:$0xff] %v7523_v52  ;;  %v1266_v2 = vand.u32 31, %v1264_v11  ;;  %v6230_v5 = vadd.s32 4294967294, %v1216_v61  ;;  %v7541_v3 = vsel %vm974_vm15, %v7444_v60, %v7437_v0  ;;  %v811_v23 = vmul.f32 %v7294_v25, %v7400_v40 }
  0xe0   : > { %v1260_v7 = vor.u32 8388608, %v1259_v55  ;;  %v7547_v37 = vsel %vm973_vm14, %v984_v53, %v986_v43  ;;  %v1105_v42 = vadd.s32 536870912, %v1104_v50  ;;  %v7549_v14 = vshrl.u32 %v1264_v11, 5  ;;  %v857_v53 = vpop.permute.xlu1 %856 }
  0xe1   : > { %v1267_v6 = vsub.s32 32, %v1266_v2  ;;  %vm6231_vm2 = vcmp.lt.s32.totalorder %v6230_v5, 0  ;;  %v1463_v39 = vand.u32 2139095040, %v7519_v45  ;;  %v1269_v0 = vshll.u32 %v9836_v34, %v1266_v2 }
  0xe2   : > { %v7552_v28 = vsel %vm6231_vm2, 0, %v6230_v5  ;;  %v7557_v9 = vshrl.u32 %v1105_v42, 30  ;;  %v1272_v59 = vshll.u32 %v9832_v44, %v1266_v2  ;;  %v1275_v46 = vshll.u32 %v9830_v47, %v1266_v2 }
  0xe3   : > { %v1270_v60 = vshrl.u32 %v9832_v44, %v1267_v6  ;;  %v1273_v40 = vshrl.u32 %v9830_v47, %v1267_v6  ;;  %v1278_v49 = vshll.u32 %v9834_v17, %v1266_v2  ;;  %v1224_v36 = vsub.s32 4294967266, %v7552_v28 }
  0xe4   : > { %9928 = vst [vmem:[#allocation9_spill] sm:$0xff] %v7557_v9  ;;  %v1276_v55 = vshrl.u32 %v9834_v17, %v1267_v6  ;;  %v1279_v43 = vshrl.u32 %v9864_v24, %v1267_v6  ;;  %v1281_v61 = vshll.u32 %v9864_v24, %v1266_v2  ;;  %v1107_v48 = vshll.u32 %v7557_v9, 30 }
  0xe5   : > { %v1271_v11 = vor.u32 %v1270_v60, %v1269_v0  ;;  %v1274_v63 = vor.u32 %v1273_v40, %v1272_v59  ;;  %v1282_v5 = vshrl.u32 %v9838_v38, %v1267_v6  ;;  %v827_v42 = vadd.f32 %v811_v23, %v727_v56 }
  0xe6   : > { %v1277_v8 = vor.u32 %v1276_v55, %v1275_v46  ;;  %v1280_v57 = vor.u32 %v1279_v43, %v1278_v49  ;;  %v911_v1 = vmul.f32 %v7308_v35, %v857_v53  ;;  %v1204_v47 = vadd.s32 %v7416_v31, %v7413_v10 }
  0xe7   : > { %v7571_v44 = vsub.s32 %v1104_v50, %v1107_v48  ;;  %v1283_v17 = vor.u32 %v1282_v5, %v1281_v61  ;;  %v9840_v34 = vand.u32 2147483647, %v7519_v45  ;;  %v1220_v2 = vsub.s32 32, %v7552_v28 }
  0xe8   : > { %vm1284_vm3 = vcmp.lt.s32.totalorder %v7549_v14, 1  ;;  %v1300_v0 = vshll.u32 %v1260_v7, 8  ;;  %v1464_v60 = vshrl.u32 %v1463_v39, 23  ;;  %v1225_v40 = vadd.s32 127, %v1224_v36 }
  0xe9   : > { %v1110_v56 = vsub.s32 0, %v7571_v44  ;;  %vm1287_vm4 = vcmp.lt.s32.totalorder %v7549_v14, 4  ;;  %v1292_v23 = vsel %vm1284_vm3, %v1271_v11, %v1274_v63  ;;  %vm1286_vm5 = vcmp.lt.s32.totalorder %v7549_v14, 3 }
  0xea   : > { %v1293_v10 = vsel %vm1287_vm4, %v1280_v57, 920167782  ;;  %v1296_v31 = vsel %vm1284_vm3, %v1274_v63, %v1277_v8  ;;  %v1297_v50 = vsel %vm1287_vm4, %v1283_v17, 1326507024  ;;  %v9929_v46 = vmov 683565275  }
  0xeb   : > { %v6225_v59 = vmin.u32 %v1110_v56, %v7571_v44  ;;  %v1268_v7 = vshrl.u32 %v9929_v46, %v1267_v6  ;;  %vm1285_vm6 = vcmp.lt.s32.totalorder %v7549_v14, 2  ;;  %v1294_v39 = vsel %vm1286_vm5, %v1277_v8, %v1293_v10 }
  0xec   : > { %v1289_v49 = vsel %vm1287_vm4, %v1277_v8, 2102212464  ;;  %v1295_v53 = vsel %vm1285_vm6, %v1292_v23, %v1294_v39  ;;  %v1298_v36 = vsel %vm1286_vm5, %v1280_v57, %v1297_v50  ;;  %v6240_v55 = vadd.s32 4294967169, %v1464_v60 }
  0xed   : > { %v1222_v43 = vshrl.u32 %v1204_v47, %v1220_v2  ;;  %v1226_v61 = vshll.u32 %v1225_v40, 23  ;;  %v1112_v17 = vclz %v6225_v59  ;;  %v1299_v48 = vsel %vm1285_vm6, %v1296_v31, %v1298_v36 }
  0xee   : > { %v7594_v6 = vmul.u32.u64.low %v1300_v0, %v1299_v48  ;;  %v7595_v5 = vmul.u32.u64.high %v1300_v0, %v1299_v48, %v7594_v6  ;;  %v7597_v56 = vmul.u32.u64.low %v1300_v0, %v1295_v53  ;;  %v7598_v38 = vmul.u32.u64.high %v1300_v0, %v1295_v53, %v7597_v56 }
  0xef   : > { %v6226_v8 = vadd.s32 4294967294, %v1112_v17  ;;  %v1288_v23 = vsel %vm1284_vm3, %v1268_v7, %v1271_v11  ;;  %v1290_v57 = vsel %vm1286_vm5, %v1274_v63, %v1289_v49  ;;  %v1470_v47 = vadd.s32 1, %v6240_v55 }
  0xf0   : > { %v1221_v2 = vshll.u32 %v7477_v58, %v7552_v28  ;;  %v7611_v60 = vsel %vm973_vm14, %v7535_v30, %v7541_v3  ;;  %v7615_v40 = vmul.u32.u64.low %v7344_v15, %v7547_v37  ;;  %v7616_v10 = vmul.u32.u64.high %v7344_v15, %v7547_v37, %v7615_v40  ;;  %v672_v3 = vpop.permute.xlu1 %671 }
  0xf1   : > { %vm6227_vm7 = vcmp.lt.s32.totalorder %v6226_v8, 0  ;;  %vm1471_vm8 = vcmp.gt.s32.totalorder %v1470_v47, 0  ;;  %v7619_v11 = vadd.f32 %v911_v1, %v827_v42  ;;  %v978_v58 = vsel %vm974_vm15, %v7432_v22, %v7529_v4 }
  0xf2   : > { %v1223_v28 = vor.u32 %v1222_v43, %v1221_v2  ;;  %v1227_v63 = vor.u32 4788187, %v1226_v61  ;;  %v7625_v31 = vsel %vm6227_vm7, 0, %v6226_v8  ;;  %v1291_v30 = vsel %vm1285_vm6, %v1288_v23, %v1290_v57 }
  0xf3   : > { %vm1309_vm9 = vc.u32 %v7595_v5, %v7597_v56  ;;  %v1467_v1 = vand.u32 8388607, %v9840_v34  ;;  %v7635_v37 = vmul.u32.u64.low %v7344_v15, %v7611_v60  ;;  %v7636_v42 = vmul.u32.u64.high %v7344_v15, %v7611_v60, %v7635_v37 }
  0xf4   : > { %v1120_v22 = vsub.s32 4294967266, %v7625_v31  ;;  %v1310_v4 = vadd.s32 1, %v7598_v38  ;;  %v1472_v50 = vsel %vm1471_vm8, %v1470_v47, 0  ;;  %v7644_v14 = vsel %vm973_vm14, %v7501_v51, %v978_v58  ;;  %v765_v27 = vpop.permute.xlu1 %764 }
  0xf5   : > { %v1100_v59 = vadd.s32 %v7485_v54, %v7482_v18  ;;  %v1307_v7 = vmul.u32 %v1300_v0, %v1291_v30  ;;  %v1474_v39 = vand.u32 31, %v1472_v50  ;;  %v7649_v49 = vmul.f32 %v7297_v26, %v672_v3 }
  0xf6   : > { %v1228_v53 = vand.u32 2147483647, %v1227_v63  ;;  %v1230_v36 = vcvt.s32.f32 %v1223_v28  ;;  %v1311_v55 = vsel %vm1309_vm9, %v1310_v4, %v7598_v38  ;;  %v1468_v17 = vor.u32 8388608, %v1467_v1 }
  0xf7   : > { %v1312_v61 = vadd.s32 %v1311_v55, %v1307_v7  ;;  %v1475_v48 = vsub.s32 32, %v1474_v39  ;;  %v1359_v16 = vand.u32 2139095040, %v7619_v11  ;;  %v1116_v51 = vsub.s32 32, %v7625_v31 }
  0xf8   : > { %v1121_v6 = vadd.s32 127, %v1120_v22  ;;  %v7655_v18 = vshrl.u32 %v1472_v50, 5  ;;  %v1477_v54 = vshll.u32 %v9929_v46, %v1474_v39  ;;  %v9930_v8 = vmov 2475754826  }
  0xf9   : > { %v1313_v0 = vadd.s32 536870912, %v1312_v61  ;;  %v1480_v23 = vshll.u32 %v9930_v8, %v1474_v39  ;;  %v9931_v57 = vmov 2131351028   ;;  %v9932_v38 = vmov 2102212464  }
  0xfa   : > { %v1483_v47 = vshll.u32 %v9931_v57, %v1474_v39  ;;  %v1486_v2 = vshll.u32 %v9932_v38, %v1474_v39  ;;  %v1478_v60 = vshrl.u32 %v9930_v8, %v1475_v48  ;;  %v1481_v40 = vshrl.u32 %v9931_v57, %v1475_v48 }
  0xfb   : > { %v1484_v58 = vshrl.u32 %v9932_v38, %v1475_v48  ;;  %v1487_v28 = vshrl.u32 %v9864_v24, %v1475_v48  ;;  %v7665_v63 = vshrl.u32 %v1313_v0, 30  ;;  %v1489_v30 = vshll.u32 %v9864_v24, %v1474_v39 }
  0xfc   : > { %v9934_v3 = vmov 1326507024   ;;  %v1360_v22 = vshrl.u32 %v1359_v16, 23  ;;  %v1479_v4 = vor.u32 %v1478_v60, %v1477_v54  ;;  %v1482_v50 = vor.u32 %v1481_v40, %v1480_v23  ;;  %v769_v60 = vpop.permute.xlu1 %768 }
  0xfd   : > { %9933 = vst [vmem:[#allocation10_spill] sm:$0xff] %v7665_v63  ;;  %v1490_v1 = vshrl.u32 %v9934_v3, %v1475_v48  ;;  %v1485_v7 = vor.u32 %v1484_v58, %v1483_v47  ;;  %v1488_v55 = vor.u32 %v1487_v28, %v1486_v2  ;;  %v7669_v34 = vmul.f32 %v1230_v36, %v1228_v53 }
  0xfe   : > { %v1315_v43 = vshll.u32 %v7665_v63, 30  ;;  %v1508_v52 = vshll.u32 %v1468_v17, 8  ;;  %v1117_v0 = vshll.u32 %v7571_v44, %v7625_v31  ;;  %v1118_v9 = vshrl.u32 %v1100_v59, %v1116_v51 }
  0xff   : > { %v1491_v19 = vor.u32 %v1490_v1, %v1489_v30  ;;  %v1122_v20 = vshll.u32 %v1121_v6, 23  ;;  %vm1492_vm10 = vcmp.lt.s32.totalorder %v7655_v18, 1  ;;  %vm1495_vm11 = vcmp.lt.s32.totalorder %v7655_v18, 4 }
 0x100   : > { %v7675_v39 = vsub.s32 %v1312_v61, %v1315_v43  ;;  %v1500_v53 = vsel %vm1492_vm10, %v1479_v4, %v1482_v50  ;;  %v6236_v36 = vadd.s32 4294967169, %v1360_v22  ;;  %vm1494_vm12 = vcmp.lt.s32.totalorder %v7655_v18, 3 }
 0x101   : > { %v1501_v16 = vsel %vm1495_vm11, %v1488_v55, 920167782  ;;  %v1504_v17 = vsel %vm1492_vm10, %v1482_v50, %v1485_v7  ;;  %v1505_v54 = vsel %vm1495_vm11, %v1491_v19, 1326507024  ;;  %vm1493_vm13 = vcmp.lt.s32.totalorder %v7655_v18, 2 }
 0x102   : > { %v1318_v44 = vsub.s32 0, %v7675_v39  ;;  %v1497_v31 = vsel %vm1495_vm11, %v1485_v7, 2102212464  ;;  %v1502_v59 = vsel %vm1494_vm12, %v1485_v7, %v1501_v16  ;;  %v1123_v43 = vor.u32 4788187, %v1122_v20 }
 0x103   : > { %v1476_v61 = vshrl.u32 %v9929_v46, %v1475_v48  ;;  %v1503_v51 = vsel %vm1493_vm13, %v1500_v53, %v1502_v59  ;;  %v1506_v6 = vsel %vm1494_vm12, %v1488_v55, %v1505_v54  ;;  %v1119_v23 = vor.u32 %v1118_v9, %v1117_v0  ;;  %v869_v9 = vpop.permute.xlu0 %868 }
 0x104   : > { %v6233_v19 = vmin.u32 %v1318_v44, %v7675_v39  ;;  %v1507_v47 = vsel %vm1493_vm13, %v1504_v17, %v1506_v6  ;;  %v1366_v2 = vadd.s32 1, %v6236_v36  ;;  %v1498_v20 = vsel %vm1494_vm12, %v1482_v50, %v1497_v31 }
 0x105   : > { %v1496_v40 = vsel %vm1492_vm10, %v1476_v61, %v1479_v4  ;;  %v7699_v48 = vmul.u32.u64.low %v1508_v52, %v1507_v47  ;;  %v7700_v58 = vmul.u32.u64.high %v1508_v52, %v1507_v47, %v7699_v48  ;;  %v1124_v22 = vand.u32 2147483647, %v1123_v43 }
 0x106   : > { %v1320_v28 = vclz %v6233_v19  ;;  %v7702_v30 = vmul.u32.u64.low %v1508_v52, %v1503_v51  ;;  %v7703_v1 = vmul.u32.u64.high %v1508_v52, %v1503_v51, %v7702_v30  ;;  %vm1367_vm14 = vcmp.gt.s32.totalorder %v1366_v2, 0 }
 0x107   : > { %v9935_v7 = vand.u32 2147483647, %v7619_v11  ;;  %v1368_v0 = vsel %vm1367_vm14, %v1366_v2, 0  ;;  %v814_v4 = vmul.f32 %v7294_v25, %v769_v60  ;;  %v1499_v50 = vsel %vm1493_vm13, %v1496_v40, %v1498_v20 }
 0x108   : > { %v6234_v53 = vadd.s32 4294967294, %v1320_v28  ;;  %v1370_v36 = vand.u32 31, %v1368_v0  ;;  %v7712_v16 = vmul.f32 %v7294_v25, %v765_v27  ;;  %v1232_v17 = vxor.u32 2147483648, %v7669_v34 }
 0x109   : > { %v1363_v55 = vand.u32 8388607, %v9935_v7  ;;  %v1126_v54 = vcvt.s32.f32 %v1119_v23  ;;  %vm1517_vm15 = vc.u32 %v7700_v58, %v7702_v30  ;;  %v914_v44 = vmul.f32 %v7308_v35, %v869_v9 }
 0x10a   : > { %v7720_v31 = vadd.s32 %v7597_v56, %v7595_v5  ;;  %vm6235_vm0 = vcmp.lt.s32.totalorder %v6234_v53, 0  ;;  %v1518_v18 = vadd.s32 1, %v7703_v1  ;;  %v1371_v59 = vsub.s32 32, %v1370_v36 }
 0x10b   : > { %v7723_v43 = vmul.f32 %v1126_v54, %v1124_v22  ;;  %v1515_v27 = vmul.u32 %v1508_v52, %v1499_v50  ;;  %v1364_v61 = vor.u32 8388608, %v1363_v55  ;;  %v830_v51 = vadd.f32 %v814_v4, %v7339_v12  ;;  %v865_v22 = vpop.permute.xlu1 %864 }
 0x10c   : > { %v7726_v6 = vsel %vm6235_vm0, 0, %v6234_v53  ;;  %v1519_v23 = vsel %vm1517_vm15, %v1518_v18, %v7703_v1  ;;  %v1369_v19 = vshrl.u32 %v1368_v0, 5  ;;  %v1373_v47 = vshll.u32 %v9929_v46, %v1370_v36 }
 0x10d   : > { %v1520_v2 = vadd.s32 %v1519_v23, %v1515_v27  ;;  %v1374_v5 = vshrl.u32 %v9930_v8, %v1371_v59  ;;  %v1376_v56 = vshll.u32 %v9930_v8, %v1370_v36  ;;  %v1377_v60 = vshrl.u32 %v9931_v57, %v1371_v59 }
 0x10e   : > { %v1379_v40 = vshll.u32 %v9931_v57, %v1370_v36  ;;  %v1380_v52 = vshrl.u32 %v9932_v38, %v1371_v59  ;;  %v1382_v12 = vshll.u32 %v9932_v38, %v1370_v36  ;;  %v1383_v20 = vshrl.u32 %v9864_v24, %v1371_v59 }
 0x10f   : > { %v1128_v48 = vxor.u32 2147483648, %v7723_v43  ;;  %v1328_v28 = vsub.s32 4294967266, %v7726_v6  ;;  %v1521_v1 = vadd.s32 536870912, %v1520_v2  ;;  %v7739_v9 = vshll.u32 %v1364_v61, 8 }
 0x110   : > { %v1375_v7 = vor.u32 %v1374_v5, %v1373_v47  ;;  %v1378_v55 = vor.u32 %v1377_v60, %v1376_v56  ;;  %v1381_v0 = vor.u32 %v1380_v52, %v1379_v40  ;;  %v1384_v4 = vor.u32 %v1383_v20, %v1382_v12 }
 0x111   : > { %vm9882_vm1 = vcmp.lt.s32.totalorder %v7325_v62, 0  ;;  %v7742_v53 = vshrl.u32 %v1521_v1, 30  ;;  %v1385_v50 = vshll.u32 %v9864_v24, %v1370_v36  ;;  %v1386_v54 = vshrl.u32 %v9934_v3, %v1371_v59 }
 0x112   : > { %v7746_v18 = vadd.f32 %v914_v44, %v830_v51  ;;  %v1324_v27 = vsub.s32 32, %v7726_v6  ;;  %v1372_v61 = vshrl.u32 %v9929_v46, %v1371_v59  ;;  %vm1391_vm2 = vcmp.lt.s32.totalorder %v1369_v19, 4 }
 0x113   : > { %9936 = vst [vmem:[#allocation11_spill] sm:$0xff] %v7742_v53  ;;  %v913_v23 = vmul.f32 %v7308_v35, %v865_v22  ;;  %v1523_v47 = vshll.u32 %v7742_v53, 30  ;;  %v1387_v5 = vor.u32 %v1386_v54, %v1385_v50  ;;  %vm1388_vm3 = vcmp.lt.s32.totalorder %v1369_v19, 1 }
 0x114   : > { %9937 = vst [vmem:[#allocation12_spill] sm:$0xff] %v7746_v18  ;;  %v1393_v56 = vsel %vm1391_vm2, %v1381_v0, 2102212464  ;;  %v1329_v60 = vadd.s32 127, %v1328_v28  ;;  %vm1390_vm4 = vcmp.lt.s32.totalorder %v1369_v19, 3  ;;  %v1396_v36 = vsel %vm1388_vm3, %v1375_v7, %v1378_v55 }
 0x115   : > { %v1397_v40 = vsel %vm1391_vm2, %v1384_v4, 920167782  ;;  %v7754_v44 = vsub.s32 %v1520_v2, %v1523_v47  ;;  %vm1389_vm5 = vcmp.lt.s32.totalorder %v1369_v19, 2  ;;  %v1400_v52 = vsel %vm1388_vm3, %v1378_v55, %v1381_v0 }
 0x116   : > { %v1398_v51 = vsel %vm1390_vm4, %v1381_v0, %v1397_v40  ;;  %v9938_v59 = vand.u32 2147483647, %v7325_v62  ;;  %v9939_v12 = vmov 0  ;;  %v1392_v20 = vsel %vm1388_vm3, %v1372_v61, %v1375_v7 }
 0x117   : > { %v1394_v1 = vsel %vm1390_vm4, %v1378_v55, %v1393_v56  ;;  %v1399_v22 = vsel %vm1389_vm5, %v1396_v36, %v1398_v51  ;;  %v1401_v28 = vsel %vm1391_vm2, %v1387_v5, 1326507024  ;;  %v1526_v50 = vsub.s32 0, %v7754_v44 }
 0x118   : > { %vm7758_vm6 = vcmp.le.f32.partialorder %v9938_v59, 0.7853982  ;;  %v1402_v54 = vsel %vm1390_vm4, %v1384_v4, %v1401_v28  ;;  %v7766_v2 = vmul.u32.u64.low %v7739_v9, %v1399_v22  ;;  %v7767_v47 = vmul.u32.u64.high %v7739_v9, %v1399_v22, %v7766_v2 }
 0x119   : > { %v9940_v12 = vsel %vm7758_vm6, 4294967295, %v9939_v12  ;;  %v1330_v0 = vshll.u32 %v1329_v60, 23  ;;  %v1403_v40 = vsel %vm1389_vm5, %v1400_v52, %v1402_v54  ;;  %v9848_v59 = vand.u32 2147483647, %v7746_v18  ;;  %v7820_v54 = vpop.permute.xlu1 %681 }
 0x11a   : > { %9941 = vst [vmem:[#allocation13_spill] sm:$0xff] %v9940_v12  ;;  %v1671_v7 = vand.u32 2139095040, %v7746_v18  ;;  %v6241_v55 = vmin.u32 %v1526_v50, %v7754_v44  ;;  %v1395_v61 = vsel %vm1389_vm5, %v1392_v20, %v1394_v1  ;;  %v1233_v4 = vsel %vm9882_vm1, %v1232_v17, %v7669_v34 }
 0x11b   : > { %v7776_v5 = vmul.u32.u64.low %v7739_v9, %v1403_v40  ;;  %v7777_v56 = vmul.u32.u64.high %v7739_v9, %v1403_v40, %v7776_v5  ;;  %vm9887_vm7 = vcmp.lt.s32.totalorder %v7359_v33, 0  ;;  %v829_v60 = vadd.f32 %v7712_v16, %v7649_v49 }
 0x11c   : > { %v1672_v36 = vshrl.u32 %v1671_v7, 23  ;;  %v1129_v19 = vsel %vm9887_vm7, %v1128_v48, %v7723_v43  ;;  %v1326_v51 = vshrl.u32 %v7720_v31, %v1324_v27  ;;  %v1528_v52 = vclz %v6241_v55 }
 0x11d   : > { %v1414_v20 = vadd.s32 1, %v7767_v47  ;;  %v1325_v1 = vshll.u32 %v7675_v39, %v7726_v6  ;;  %v1331_v22 = vor.u32 4788187, %v1330_v0  ;;  %v1411_v34 = vmul.u32 %v7739_v9, %v1395_v61 }
 0x11e   : > { %v6248_v17 = vadd.s32 4294967169, %v1672_v36  ;;  %v6242_v28 = vadd.s32 4294967294, %v1528_v52  ;;  %vm1413_vm8 = vc.u32 %v7777_v56, %v7766_v2  ;;  %v1675_v49 = vand.u32 8388607, %v9848_v59 }
 0x11f   : > { %v7799_v16 = vadd.f32 %v913_v23, %v829_v60  ;;  %v1415_v31 = vsel %vm1413_vm8, %v1414_v20, %v7767_v47  ;;  %vm997_vm9 = vc.u32 %v7616_v10, %v7635_v37  ;;  %v1236_v39 = vsel %vm7758_vm6, %v7325_v62, %v1233_v4 }
 0x120   : > { %v1678_v43 = vadd.s32 1, %v6248_v17  ;;  %v9943_v6 = vand.u32 2147483647, %v7359_v33  ;;  %v9944_v9 = vmov 0  ;;  %v1327_v27 = vor.u32 %v1326_v51, %v1325_v1 }
 0x121   : > { %9942 = vst [vmem:[#allocation14_spill] sm:$0xff] %v7799_v16  ;;  %v1416_v23 = vadd.s32 %v1415_v31, %v1411_v34  ;;  %vm6243_vm11 = vcmp.lt.s32.totalorder %v6242_v28, 0  ;;  %v998_v47 = vadd.s32 1, %v7636_v42  ;;  %v1332_v0 = vand.u32 2147483647, %v1331_v22  ;;  %v773_v31 = vpop.permute.xlu1 %772 }
 0x122   : > { %vm7811_vm10 = vcmp.le.f32.partialorder %v9943_v6, 0.7853982  ;;  %vm1679_vm12 = vcmp.gt.s32.totalorder %v1678_v43, 0  ;;  %v1676_v7 = vor.u32 8388608, %v1675_v49  ;;  %v9847_v55 = vand.u32 2147483647, %v7799_v16 }
 0x123   : > { %v9945_v9 = vsel %vm7811_vm10, 4294967295, %v9944_v9  ;;  %v7818_v50 = vsel %vm7811_vm10, %v7359_v33, %v1129_v19  ;;  %v1417_v40 = vadd.s32 536870912, %v1416_v23  ;;  %6949 = vcosq.f32 %v1236_v39 }
 0x124   : > { %9946 = vst [vmem:[#allocation15_spill] sm:$0xff] %v9945_v9  ;;  %v1680_v61 = vsel %vm1679_vm12, %v1678_v43, 0  ;;  %v1567_v5 = vand.u32 2139095040, %v7799_v16  ;;  %v7827_v4 = vadd.s32 %v7635_v37, %v7616_v10  ;;  %6951 = vsinq.f32 %v1236_v39 }
 0x125   : > { %v1334_v60 = vcvt.s32.f32 %v1327_v27  ;;  %v7829_v36 = vsel %vm6243_vm11, 0, %v6242_v28  ;;  %v7831_v19 = vshrl.u32 %v1417_v40, 30  ;;  %6953 = vcosq.f32 %v7818_v50  ;;  %v777_v12 = vpop.permute.xlu1 %776 }
 0x126   : > { %v1516_v51 = vadd.s32 %v7702_v30, %v7700_v58  ;;  %v1682_v52 = vand.u32 31, %v1680_v61  ;;  %v7840_v20 = vsel %vm997_vm9, %v998_v47, %v7636_v42  ;;  %v7845_v34 = vshll.u32 %v1676_v7, 8 }
 0x127   : > { %9947 = vst [vmem:[#allocation16_spill] sm:$0xff] %v7831_v19  ;;  %v7842_v1 = vmul.f32 %v1334_v60, %v1332_v0  ;;  %v1419_v22 = vshll.u32 %v7831_v19, 30  ;;  %v7849_v17 = vand.u32 8388607, %v9847_v55  ;;  %v1532_v28 = vsub.s32 32, %v7829_v36 }
 0x128   : > { %v1536_v58 = vsub.s32 4294967266, %v7829_v36  ;;  %v1683_v30 = vsub.s32 32, %v1682_v52  ;;  %v1568_v49 = vshrl.u32 %v1567_v5, 23  ;;  %v1681_v37 = vshrl.u32 %v1680_v61, 5 }
 0x129   : > { %v7853_v10 = vsub.s32 %v1416_v23, %v1419_v22  ;;  %v1685_v42 = vshll.u32 %v9929_v46, %v1682_v52  ;;  %v1688_v43 = vshll.u32 %v9930_v8, %v1682_v52  ;;  %v1691_v27 = vshll.u32 %v9931_v57, %v1682_v52 }
 0x12a   : > { %v1686_v39 = vshrl.u32 %v9930_v8, %v1683_v30  ;;  %v1689_v6 = vshrl.u32 %v9931_v57, %v1683_v30  ;;  %v1692_v47 = vshrl.u32 %v9932_v38, %v1683_v30  ;;  %v1694_v40 = vshll.u32 %v9932_v38, %v1682_v52 }
 0x12b   : > { %v1422_v0 = vsub.s32 0, %v7853_v10  ;;  %v1695_v23 = vshrl.u32 %v9864_v24, %v1683_v30  ;;  %v1697_v7 = vshll.u32 %v9864_v24, %v1682_v52  ;;  %v1698_v22 = vshrl.u32 %v9934_v3, %v1683_v30 }
 0x12c   : > { %v1687_v61 = vor.u32 %v1686_v39, %v1685_v42  ;;  %v1690_v5 = vor.u32 %v1689_v6, %v1688_v43  ;;  %v1693_v60 = vor.u32 %v1692_v47, %v1691_v27  ;;  %v1534_v55 = vshrl.u32 %v1516_v51, %v1532_v28 }
 0x12d   : > { %v1537_v59 = vadd.s32 127, %v1536_v58  ;;  %v6237_v48 = vmin.u32 %v1422_v0, %v7853_v10  ;;  %v1696_v53 = vor.u32 %v1695_v23, %v1694_v40  ;;  %v1699_v19 = vor.u32 %v1698_v22, %v1697_v7 }
 0x12e   : > { %vm1700_vm13 = vcmp.lt.s32.totalorder %v1681_v37, 1  ;;  %vm1703_vm14 = vcmp.lt.s32.totalorder %v1681_v37, 4  ;;  %v6244_v63 = vadd.s32 4294967169, %v1568_v49  ;;  %v1684_v9 = vshrl.u32 %v9929_v46, %v1683_v30 }
 0x12f   : > { %v1424_v62 = vclz %v6237_v48  ;;  %vm1702_vm15 = vcmp.lt.s32.totalorder %v1681_v37, 3  ;;  %v1705_v52 = vsel %vm1703_vm14, %v1693_v60, 2102212464  ;;  %v1708_v42 = vsel %vm1700_vm13, %v1687_v61, %v1690_v5 }
 0x130   : > { %v1709_v43 = vsel %vm1703_vm14, %v1696_v53, 920167782  ;;  %v1712_v39 = vsel %vm1700_vm13, %v1690_v5, %v1693_v60  ;;  %v1713_v51 = vsel %vm1703_vm14, %v1699_v19, 1326507024  ;;  %v7870_v28 = vpop.eup %6949  ;;  %v1538_v58 = vshll.u32 %v1537_v59, 23 }
 0x131   : > { %9948 = vst [vmem:[#allocation17_spill] sm:$0xff] %v7870_v28  ;;  %v6238_v6 = vadd.s32 4294967294, %v1424_v62  ;;  %v1710_v27 = vsel %vm1702_vm15, %v1693_v60, %v1709_v43  ;;  %v816_v49 = vmul.f32 %v7294_v25, %v777_v12  ;;  %v7874_v47 = vpop.eup %6951  ;;  %v1533_v48 = vshll.u32 %v7754_v44, %v7829_v36  ;;  %v877_v36 = vpop.permute.xlu0 %876 }
 0x132   : > { %9949 = vst [vmem:[#allocation18_spill] sm:$0xff] %v7874_v47  ;;  %vm1701_vm0 = vcmp.lt.s32.totalorder %v1681_v37, 2  ;;  %v1704_v30 = vsel %vm1700_vm13, %v1684_v9, %v1687_v61  ;;  %v1714_v0 = vsel %vm1702_vm15, %v1696_v53, %v1713_v51  ;;  %v7880_v40 = vpop.eup %6953  ;;  %v1706_v19 = vsel %vm1702_vm15, %v1690_v5, %v1705_v52 }
 0x133   : > { %9950 = vst [vmem:[#allocation19_spill] sm:$0xff] %v7880_v40  ;;  %v1711_v62 = vsel %vm1701_vm0, %v1708_v42, %v1710_v27  ;;  %v1715_v59 = vsel %vm1701_vm0, %v1712_v39, %v1714_v0  ;;  %v1574_v23 = vadd.s32 1, %v6244_v63  ;;  %v1535_v12 = vor.u32 %v1534_v55, %v1533_v48 }
 0x134   : > { %vm6239_vm2 = vcmp.lt.s32.totalorder %v6238_v6, 0  ;;  %v7886_v7 = vmul.u32.u64.low %v7845_v34, %v1715_v59  ;;  %v7887_v60 = vmul.u32.u64.high %v7845_v34, %v1715_v59, %v7886_v7  ;;  %v1539_v44 = vor.u32 4788187, %v1538_v58 }
 0x135   : > { %vm1575_vm3 = vcmp.gt.s32.totalorder %v1574_v23, 0  ;;  %v7891_v53 = vmul.f32 %v7297_v26, %v7820_v54  ;;  %v7894_v9 = vmul.f32 %v7294_v25, %v773_v31  ;;  %v1707_v61 = vsel %vm1701_vm0, %v1704_v30, %v1706_v19 }
 0x136   : > { %v7898_v63 = vmul.u32.u64.low %v7845_v34, %v1711_v62  ;;  %v7899_v55 = vmul.u32.u64.high %v7845_v34, %v1711_v62, %v7898_v63  ;;  %v1576_v5 = vsel %vm1575_vm3, %v1574_v23, 0  ;;  %v1412_v52 = vadd.s32 %v7766_v2, %v7777_v56 }
 0x137   : > { %v7905_v42 = vsel %vm6239_vm2, 0, %v6238_v6  ;;  %v1578_v54 = vand.u32 31, %v1576_v5  ;;  %v1542_v43 = vcvt.s32.f32 %v1535_v12  ;;  %v1572_v31 = vor.u32 8388608, %v7849_v17 }
 0x138   : > { %v832_v37 = vadd.f32 %v816_v49, %v7342_v13  ;;  %v916_v39 = vmul.f32 %v7308_v35, %v877_v36  ;;  %v1540_v51 = vand.u32 2147483647, %v1539_v44  ;;  %v1723_v58 = vmul.u32 %v7845_v34, %v1707_v61 }
 0x139   : > { %vm1725_vm4 = vc.u32 %v7887_v60, %v7898_v63  ;;  %v1579_v27 = vsub.s32 32, %v1578_v54  ;;  %v1432_v48 = vsub.s32 4294967266, %v7905_v42  ;;  %v1726_v2 = vadd.s32 1, %v7899_v55 }
 0x13a   : > { %v7915_v56 = vshrl.u32 %v1576_v5, 5  ;;  %v1581_v6 = vshll.u32 %v9929_v46, %v1578_v54  ;;  %v1584_v13 = vshll.u32 %v9930_v8, %v1578_v54  ;;  %v1587_v49 = vshll.u32 %v9931_v57, %v1578_v54 }
 0x13b   : > { %v1582_v17 = vshrl.u32 %v9930_v8, %v1579_v27  ;;  %v1590_v34 = vshll.u32 %v9932_v38, %v1578_v54  ;;  %v1727_v30 = vsel %vm1725_vm4, %v1726_v2, %v7899_v55  ;;  %v1585_v0 = vshrl.u32 %v9931_v57, %v1579_v27 }
 0x13c   : > { %v1588_v19 = vshrl.u32 %v9932_v38, %v1579_v27  ;;  %v1591_v62 = vshrl.u32 %v9864_v24, %v1579_v27  ;;  %v1428_v59 = vsub.s32 32, %v7905_v42  ;;  %v1728_v23 = vadd.s32 %v1727_v30, %v1723_v58  ;;  %v635_v30 = vld [vmem:[%s9807_s4] sm:$0xff] }
 0x13d   : > { %v1583_v12 = vor.u32 %v1582_v17, %v1581_v6  ;;  %v1593_v7 = vshll.u32 %v9864_v24, %v1578_v54  ;;  %v1586_v44 = vor.u32 %v1585_v0, %v1584_v13  ;;  %v1594_v5 = vshrl.u32 %v9934_v3, %v1579_v27  ;;  %v637_v54 = vld [vmem:[%s9807_s4 + $0x10] sm:$0xff] }
 0x13e   : > { %v1589_v36 = vor.u32 %v1588_v19, %v1587_v49  ;;  %v1592_v61 = vor.u32 %v1591_v62, %v1590_v34  ;;  %v7929_v22 = vmul.f32 %v1542_v43, %v1540_v51  ;;  %v1729_v55 = vadd.s32 536870912, %v1728_v23  ;;  %6620 = vmatprep.subr.mxu0 %v637_v54  ;;  %v873_v62 = vpop.permute.xlu1 %872 }
 0x13f   : > { %v7931_v2 = vshll.u32 %v1572_v31, 8  ;;  %v7933_v28 = vadd.f32 %v916_v39, %v832_v37  ;;  %v1429_v47 = vshll.u32 %v7853_v10, %v7905_v42  ;;  %v1433_v40 = vadd.s32 127, %v1432_v48  ;;  %6621 = vmatpush3.msra.mxu0 %v637_v54 }
 0x140   : > { %v1595_v58 = vor.u32 %v1594_v5, %v1593_v7  ;;  %vm1596_vm5 = vcmp.lt.s32.totalorder %v7915_v56, 1  ;;  %v1430_v6 = vshrl.u32 %v1412_v52, %v1428_v59  ;;  %v7941_v17 = vshrl.u32 %v1729_v55, 30  ;;  %v636_v52 = vld [vmem:[%s9807_s4 + $0x8] sm:$0xff] }
 0x141   : > { %9951 = vst [vmem:[#allocation20_spill] sm:$0xff] %v7933_v28  ;;  %vm1599_vm8 = vcmp.lt.s32.totalorder %v7915_v56, 4  ;;  %v1604_v43 = vsel %vm1596_vm5, %v1583_v12, %v1586_v44  ;;  %vm1598_vm9 = vcmp.lt.s32.totalorder %v7915_v56, 3  ;;  %v1608_v42 = vsel %vm1596_vm5, %v1586_v44, %v1589_v36  ;;  %6622 = vmatprep.subr.mxu0 %v636_v52 }
 0x142   : > { %9952 = vst [vmem:[#allocation21_spill] sm:$0xff] %v7941_v17  ;;  %v1605_v10 = vsel %vm1599_vm8, %v1592_v61, 920167782  ;;  %v1609_v31 = vsel %vm1599_vm8, %v1595_v58, 1326507024  ;;  %vm9881_vm11 = vcmp.lt.s32.totalorder %v7422_v29, 0  ;;  %v1580_v13 = vshrl.u32 %v9929_v46, %v1579_v27  ;;  %6623 = vmatpush3.msra.mxu0 %v636_v52 }
 0x143   : > { %v1731_v37 = vshll.u32 %v7941_v17, 30  ;;  %vm1597_vm12 = vcmp.lt.s32.totalorder %v7915_v56, 2  ;;  %v1601_v39 = vsel %vm1599_vm8, %v1589_v36, 2102212464  ;;  %v1606_v51 = vsel %vm1598_vm9, %v1589_v36, %v1605_v10  ;;  %6624 = vmatprep.subr.mxu0 %v635_v30 }
 0x144   : > { %v1434_v48 = vshll.u32 %v1433_v40, 23  ;;  %v1607_v49 = vsel %vm1597_vm12, %v1604_v43, %v1606_v51  ;;  %v1610_v34 = vsel %vm1598_vm9, %v1592_v61, %v1609_v31  ;;  %v9862_v40 = vand.u32 2147483647, %v7933_v28  ;;  %6625 = vmatpush3.msra.mxu0 %v635_v30 }
 0x145   : > { %v7965_v0 = vsub.s32 %v1728_v23, %v1731_v37  ;;  %v1611_v19 = vsel %vm1597_vm12, %v1608_v42, %v1610_v34  ;;  %v1879_v27 = vand.u32 2139095040, %v7933_v28  ;;  %v9953_v59 = vand.u32 2147483647, %v7422_v29 }
 0x146   : > { %v1600_v36 = vsel %vm1596_vm5, %v1580_v13, %v1583_v12  ;;  %v1602_v23 = vsel %vm1598_vm9, %v1586_v44, %v1601_v39  ;;  %v7982_v61 = vmul.u32.u64.low %v7931_v2, %v1611_v19  ;;  %v7983_v5 = vmul.u32.u64.high %v7931_v2, %v1611_v19, %v7982_v61 }
 0x147   : > { %vm7973_vm13 = vcmp.le.f32.partialorder %v9953_v59, 0.7853982  ;;  %v1734_v55 = vsub.s32 0, %v7965_v0  ;;  %v7987_v58 = vmul.u32.u64.low %v7931_v2, %v1607_v49  ;;  %v7988_v54 = vmul.u32.u64.high %v7931_v2, %v1607_v49, %v7987_v58 }
 0x148   : > { %v1880_v43 = vshrl.u32 %v1879_v27, 23  ;;  %v1431_v10 = vor.u32 %v1430_v6, %v1429_v47  ;;  %v1435_v42 = vor.u32 4788187, %v1434_v48  ;;  %v831_v12 = vadd.f32 %v7894_v9, %v7891_v53 }
 0x149   : > { %v915_v44 = vmul.f32 %v7308_v35, %v873_v62  ;;  %v6249_v31 = vmin.u32 %v1734_v55, %v7965_v0  ;;  %v1603_v52 = vsel %vm1597_vm12, %v1600_v36, %v1602_v23  ;;  %v1883_v39 = vand.u32 8388607, %v9862_v40 }
 0x14a   : > { %v6256_v37 = vadd.s32 4294967169, %v1880_v43  ;;  %6955 = vsinq.f32 %v7818_v50  ;;  %vm9868_vm14 = vcmp.lt.s32.totalorder %v7519_v45, 0  ;;  %vm1621_vm15 = vc.u32 %v7983_v5, %v7987_v58 }
 0x14b   : > { %v8003_v47 = vadd.f32 %v915_v44, %v831_v12  ;;  %v1544_v53 = vxor.u32 2147483648, %v7929_v22  ;;  %v1736_v9 = vclz %v6249_v31  ;;  %v1622_v6 = vadd.s32 1, %v7988_v54 }
 0x14c   : > { %v1886_v56 = vadd.s32 1, %v6256_v37  ;;  %v9957_v51 = vxor.u32 2147483648, %v7842_v1  ;;  %v1436_v50 = vand.u32 2147483647, %v1435_v42  ;;  %v1438_v13 = vcvt.s32.f32 %v1431_v10 }
 0x14d   : > { %9956 = vst [vmem:[#allocation22_spill] sm:$0xff] %v8003_v47  ;;  %v1619_v49 = vmul.u32 %v7931_v2, %v1603_v52  ;;  %v6250_v34 = vadd.s32 4294967294, %v1736_v9  ;;  %v1623_v30 = vsel %vm1621_vm15, %v1622_v6, %v7988_v54  ;;  %v1884_v19 = vor.u32 8388608, %v1883_v39 }
 0x14e   : > { %v1337_v48 = vsel %vm9881_vm11, %v9957_v51, %v7842_v1  ;;  %vm1887_vm0 = vcmp.gt.s32.totalorder %v1886_v56, 0  ;;  %v1775_v59 = vand.u32 2139095040, %v8003_v47  ;;  %v9958_v36 = vmul.u32 %v7344_v15, %v7644_v14 }
 0x14f   : > { %v1624_v27 = vadd.s32 %v1623_v30, %v1619_v49  ;;  %v1888_v62 = vsel %vm1887_vm0, %v1886_v56, 0  ;;  %v8024_v1 = vsel %vm7973_vm13, %v7422_v29, %v1337_v48  ;;  %v8029_v2 = vsel %vm9868_vm14, %v1544_v53, %v7929_v22 }
 0x150   : > { %v8019_v23 = vadd.s32 %v7840_v20, %v9958_v36  ;;  %vm6251_vm2 = vcmp.lt.s32.totalorder %v6250_v34, 0  ;;  %v1890_v61 = vand.u32 31, %v1888_v62  ;;  %v8031_v55 = vmul.f32 %v1438_v13, %v1436_v50 }
 0x151   : > { %v1724_v15 = vadd.s32 %v7898_v63, %v7887_v60  ;;  %v8035_v14 = vsel %vm6251_vm2, 0, %v6250_v34  ;;  %v1625_v20 = vadd.s32 536870912, %v1624_v27  ;;  %v8038_v10 = vshll.u32 %v1884_v19, 8 }
 0x152   : > { %v1744_v54 = vsub.s32 4294967266, %v8035_v14  ;;  %v1891_v43 = vsub.s32 32, %v1890_v61  ;;  %v9863_v42 = vand.u32 2147483647, %v8003_v47  ;;  %v1740_v22 = vsub.s32 32, %v8035_v14 }
 0x153   : > { %v8042_v12 = vshrl.u32 %v1625_v20, 30  ;;  %v1776_v44 = vshrl.u32 %v1775_v59, 23  ;;  %v1001_v31 = vadd.s32 536870912, %v8019_v23  ;;  %v1893_v52 = vshll.u32 %v9929_v46, %v1890_v61 }
 0x154   : > { %v1894_v60 = vshrl.u32 %v9930_v8, %v1891_v43  ;;  %v1896_v63 = vshll.u32 %v9930_v8, %v1890_v61  ;;  %v1899_v37 = vshll.u32 %v9931_v57, %v1890_v61  ;;  %v1745_v39 = vadd.s32 127, %v1744_v54 }
 0x155   : > { %9959 = vst [vmem:[#allocation23_spill] sm:$0xff] %v8042_v12  ;;  %v1627_v53 = vshll.u32 %v8042_v12, 30  ;;  %v1897_v9 = vshrl.u32 %v9931_v57, %v1891_v43  ;;  %v1900_v6 = vshrl.u32 %v9932_v38, %v1891_v43  ;;  %v1889_v56 = vshrl.u32 %v1888_v62, 5 }
 0x156   : > { %v1902_v51 = vshll.u32 %v9932_v38, %v1890_v61  ;;  %v1903_v48 = vshrl.u32 %v9864_v24, %v1891_v43  ;;  %v8056_v50 = vand.u32 8388607, %v9863_v42  ;;  %v1895_v49 = vor.u32 %v1894_v60, %v1893_v52 }
 0x157   : > { %v8058_v13 = vsub.s32 %v1624_v27, %v1627_v53  ;;  %v1898_v34 = vor.u32 %v1897_v9, %v1896_v63  ;;  %v1901_v30 = vor.u32 %v1900_v6, %v1899_v37  ;;  %v8060_v19 = vpop.eup %6955  ;;  %v1905_v36 = vshll.u32 %v9864_v24, %v1890_v61 }
 0x158   : > { %v1904_v59 = vor.u32 %v1903_v48, %v1902_v51  ;;  %v1906_v62 = vshrl.u32 %v9934_v3, %v1891_v43  ;;  %v6252_v20 = vadd.s32 4294967169, %v1776_v44  ;;  %v9960_v54 = vand.u32 2147483647, %v7519_v45 }
 0x159   : > { %v1742_v42 = vshrl.u32 %v1724_v15, %v1740_v22  ;;  %v1746_v27 = vshll.u32 %v1745_v39, 23  ;;  %v1630_v52 = vsub.s32 0, %v8058_v13  ;;  %v1892_v60 = vshrl.u32 %v9929_v46, %v1891_v43 }
 0x15a   : > { %vm8066_vm3 = vcmp.le.f32.partialorder %v9960_v54, 0.7853982  ;;  %v1907_v63 = vor.u32 %v1906_v62, %v1905_v36  ;;  %vm1908_vm4 = vcmp.lt.s32.totalorder %v1889_v56, 1  ;;  %vm1910_vm5 = vcmp.lt.s32.totalorder %v1889_v56, 3 }
 0x15b   : > { %vm1911_vm8 = vcmp.lt.s32.totalorder %v1889_v56, 4  ;;  %v6245_v61 = vmin.u32 %v1630_v52, %v8058_v13  ;;  %v1916_v44 = vsel %vm1908_vm4, %v1895_v49, %v1898_v34  ;;  %vm1909_vm9 = vcmp.lt.s32.totalorder %v1889_v56, 2 }
 0x15c   : > { %v1913_v37 = vsel %vm1911_vm8, %v1901_v30, 2102212464  ;;  %v1917_v53 = vsel %vm1911_vm8, %v1904_v59, 920167782  ;;  %v1912_v9 = vsel %vm1908_vm4, %v1892_v60, %v1895_v49  ;;  %v1920_v51 = vsel %vm1908_vm4, %v1898_v34, %v1901_v30 }
 0x15d   : > { %v1918_v6 = vsel %vm1910_vm5, %v1901_v30, %v1917_v53  ;;  %v1632_v48 = vclz %v6245_v61  ;;  %v1914_v15 = vsel %vm1910_vm5, %v1898_v34, %v1913_v37  ;;  %v1921_v39 = vsel %vm1911_vm8, %v1907_v63, 1326507024 }
 0x15e   : > { %v1919_v22 = vsel %vm1909_vm9, %v1916_v44, %v1918_v6  ;;  %v1922_v54 = vsel %vm1910_vm5, %v1904_v59, %v1921_v39  ;;  %v8078_v62 = vshrl.u32 %v1001_v31, 30  ;;  %v1741_v52 = vshll.u32 %v7965_v0, %v8035_v14 }
 0x15f   : > { %v8074_v43 = vmul.u32.u64.low %v8038_v10, %v1919_v22  ;;  %v8075_v36 = vmul.u32.u64.high %v8038_v10, %v1919_v22, %v8074_v43  ;;  %v1747_v24 = vor.u32 4788187, %v1746_v27  ;;  %v6246_v56 = vadd.s32 4294967294, %v1632_v48 }
 0x160   : > { %v1923_v49 = vsel %vm1909_vm9, %v1920_v51, %v1922_v54  ;;  %v1915_v60 = vsel %vm1909_vm9, %v1912_v9, %v1914_v15  ;;  %v1782_v63 = vadd.s32 1, %v6252_v20  ;;  %6957 = vcosq.f32 %v8024_v1 }
 0x161   : > { %v8083_v30 = vmul.u32.u64.low %v8038_v10, %v1923_v49  ;;  %v8084_v34 = vmul.u32.u64.high %v8038_v10, %v1923_v49, %v8083_v30  ;;  %vm9880_vm12 = vcmp.lt.s32.totalorder %v7619_v11, 0  ;;  %v1743_v59 = vor.u32 %v1742_v42, %v1741_v52 }
 0x162   : > { %vm6247_vm15 = vcmp.lt.s32.totalorder %v6246_v56, 0  ;;  %v8092_v0 = vsel %vm8066_vm3, %v7519_v45, %v8029_v2  ;;  %v1934_v31 = vadd.s32 1, %v8075_v36  ;;  %vm1783_vm0 = vcmp.gt.s32.totalorder %v1782_v63, 0 }
 0x163   : > { %v8094_v14 = vsel %vm6247_vm15, 0, %v6246_v56  ;;  %v1440_v27 = vxor.u32 2147483648, %v8031_v55  ;;  %v1748_v20 = vand.u32 2147483647, %v1747_v24  ;;  %v1931_v61 = vmul.u32 %v8038_v10, %v1915_v60 }
 0x164   : > { %v1780_v37 = vor.u32 8388608, %v8056_v50  ;;  %v1636_v42 = vsub.s32 32, %v8094_v14  ;;  %vm1933_vm2 = vc.u32 %v8084_v34, %v8074_v43  ;;  %v1784_v44 = vsel %vm1783_vm0, %v1782_v63, 0 }
 0x165   : > { %v1003_v2 = vshll.u32 %v8078_v62, 30  ;;  %6959 = vsinq.f32 %v8024_v1  ;;  %v1750_v53 = vcvt.s32.f32 %v1743_v59  ;;  %v1640_v9 = vsub.s32 4294967266, %v8094_v14 }
 0x166   : > { %v1935_v6 = vsel %vm1933_vm2, %v1934_v31, %v8075_v36  ;;  %6961 = vcosq.f32 %v8092_v0  ;;  %v1620_v24 = vadd.s32 %v7987_v58, %v7983_v5  ;;  %v1786_v50 = vand.u32 31, %v1784_v44 }
 0x167   : > { %v1936_v10 = vadd.s32 %v1935_v6, %v1931_v61  ;;  %v1441_v51 = vsel %vm9880_vm12, %v1440_v27, %v8031_v55  ;;  %v8113_v48 = vmul.f32 %v1750_v53, %v1748_v20  ;;  %v1637_v1 = vshll.u32 %v8058_v13, %v8094_v14  ;;  %v8139_v20 = vpop.permute.xlu1 %691 }
 0x168   : > { %v8117_v15 = vshll.u32 %v1780_v37, 8  ;;  %v1638_v22 = vshrl.u32 %v1620_v24, %v1636_v42  ;;  %v1787_v54 = vsub.s32 32, %v1786_v50  ;;  %v8120_v36 = vsub.s32 %v8019_v23, %v1003_v2 }
 0x169   : > { %v1937_v39 = vadd.s32 536870912, %v1936_v10  ;;  %v1641_v5 = vadd.s32 127, %v1640_v9  ;;  %v1785_v58 = vshrl.u32 %v1784_v44, 5  ;;  %v1789_v52 = vshll.u32 %v9929_v46, %v1786_v50 }
 0x16a   : > { %v1792_v56 = vshll.u32 %v9930_v8, %v1786_v50  ;;  %v9963_v55 = vand.u32 2147483647, %v7619_v11  ;;  %v1790_v60 = vshrl.u32 %v9930_v8, %v1787_v54  ;;  %v1793_v30 = vshrl.u32 %v9931_v57, %v1787_v54 }
 0x16b   : > { %v8130_v13 = vshrl.u32 %v1937_v39, 30  ;;  %v1795_v23 = vshll.u32 %v9931_v57, %v1786_v50  ;;  %v1796_v63 = vshrl.u32 %v9932_v38, %v1787_v54  ;;  %v1798_v59 = vshll.u32 %v9932_v38, %v1786_v50 }
 0x16c   : > { %vm8126_vm4 = vcmp.le.f32.partialorder %v9963_v55, 0.7853982  ;;  %v9967_v14 = vmov 920167782   ;;  %v1791_v37 = vor.u32 %v1790_v60, %v1789_v52  ;;  %v1794_v42 = vor.u32 %v1793_v30, %v1792_v56 }
 0x16d   : > { %9966 = vst [vmem:[#allocation24_spill] sm:$0xff] %v8130_v13  ;;  %v1799_v31 = vshrl.u32 %v9967_v14, %v1787_v54  ;;  %v1801_v27 = vshll.u32 %v9967_v14, %v1786_v50  ;;  %v1939_v61 = vshll.u32 %v8130_v13, 30  ;;  %v1802_v44 = vshrl.u32 %v9934_v3, %v1787_v54  ;;  %v8143_v6 = vpop.eup %6957 }
 0x16e   : > { %v1642_v2 = vshll.u32 %v1641_v5, 23  ;;  %v1797_v53 = vor.u32 %v1796_v63, %v1795_v23  ;;  %vm1804_vm5 = vcmp.lt.s32.totalorder %v1785_v58, 1  ;;  %vm1805_vm8 = vcmp.lt.s32.totalorder %v1785_v58, 2  ;;  %v781_v63 = vpop.permute.xlu1 %780 }
 0x16f   : > { %v1800_v9 = vor.u32 %v1799_v31, %v1798_v59  ;;  %v8145_v24 = vsub.s32 %v1936_v10, %v1939_v61  ;;  %v1803_v39 = vor.u32 %v1802_v44, %v1801_v27  ;;  %vm1807_vm9 = vcmp.lt.s32.totalorder %v1785_v58, 4 }
 0x170   : > { %vm1806_vm15 = vcmp.lt.s32.totalorder %v1785_v58, 3  ;;  %v1809_v50 = vsel %vm1807_vm9, %v1797_v53, 2102212464  ;;  %v1812_v55 = vsel %vm1804_vm5, %v1791_v37, %v1794_v42  ;;  %v1788_v56 = vshrl.u32 %v9929_v46, %v1787_v54 }
 0x171   : > { %v1813_v13 = vsel %vm1807_vm9, %v1800_v9, 920167782  ;;  %v1942_v52 = vsub.s32 0, %v8145_v24  ;;  %v1816_v60 = vsel %vm1804_vm5, %v1794_v42, %v1797_v53  ;;  %v1643_v30 = vor.u32 4788187, %v1642_v2 }
 0x172   : > { %v1814_v5 = vsel %vm1806_vm15, %v1797_v53, %v1813_v13  ;;  %v1817_v23 = vsel %vm1807_vm9, %v1803_v39, 1326507024  ;;  %v1006_v59 = vsub.s32 0, %v8120_v36  ;;  %v8154_v31 = vpop.eup %6959  ;;  %v1808_v61 = vsel %vm1804_vm5, %v1788_v56, %v1791_v37 }
 0x173   : > { %v1815_v10 = vsel %vm1805_vm8, %v1812_v55, %v1814_v5  ;;  %v6257_v27 = vmin.u32 %v1942_v52, %v8145_v24  ;;  %v1810_v44 = vsel %vm1806_vm15, %v1794_v42, %v1809_v50  ;;  %v1818_v54 = vsel %vm1806_vm15, %v1800_v9, %v1817_v23  ;;  %v8160_v13 = vpop.eup %6961  ;;  %v785_v23 = vpop.permute.xlu1 %784 }
 0x174   : > { %9968 = vst [vmem:[#allocation25_spill] sm:$0xff] %v8160_v13  ;;  %v1444_v2 = vsel %vm8126_vm4, %v7619_v11, %v1441_v51  ;;  %v1819_v53 = vsel %vm1805_vm8, %v1816_v60, %v1818_v54  ;;  %v8167_v39 = vmul.u32.u64.low %v8117_v15, %v1815_v10  ;;  %v8168_v55 = vmul.u32.u64.high %v8117_v15, %v1815_v10, %v8167_v39 }
 0x175   : > { %v1639_v52 = vor.u32 %v1638_v22, %v1637_v1  ;;  %v1944_v5 = vclz %v6257_v27  ;;  %v8172_v37 = vmul.u32.u64.low %v8117_v15, %v1819_v53  ;;  %v8173_v42 = vmul.u32.u64.high %v8117_v15, %v1819_v53, %v8172_v37 }
 0x176   : > { %6963 = vsinq.f32 %v8092_v0  ;;  %v1752_v9 = vxor.u32 2147483648, %v8113_v48  ;;  %v1811_v50 = vsel %vm1805_vm8, %v1808_v61, %v1810_v44  ;;  %v6221_v51 = vmin.u32 %v1006_v59, %v8120_v36 }
 0x177   : > { %6965 = vcosq.f32 %v1444_v2  ;;  %vm9874_vm0 = vcmp.lt.s32.totalorder %v7746_v18, 0  ;;  %v1644_v56 = vand.u32 2147483647, %v1643_v30  ;;  %v6258_v60 = vadd.s32 4294967294, %v1944_v5 }
 0x178   : > { %6967 = vsinq.f32 %v1444_v2  ;;  %v9969_v1 = vand.u32 2147483647, %v7746_v18  ;;  %v9970_v22 = vmov 0  ;;  %v1830_v0 = vadd.s32 1, %v8168_v55 }
 0x179   : > { %v1008_v10 = vclz %v6221_v51  ;;  %v1646_v58 = vcvt.s32.f32 %v1639_v52  ;;  %vm6259_vm5 = vcmp.lt.s32.totalorder %v6258_v60, 0  ;;  %v1827_v59 = vmul.u32 %v8117_v15, %v1811_v50 }
 0x17a   : > { %vm8182_vm2 = vcmp.le.f32.partialorder %v9969_v1, 0.7853982  ;;  %vm1829_vm8 = vc.u32 %v8173_v42, %v8167_v39  ;;  %v1753_v30 = vsel %vm9874_vm0, %v1752_v9, %v8113_v48  ;;  %vm9875_vm9 = vcmp.lt.s32.totalorder %v7799_v16, 0 }
 0x17b   : > { %v9971_v22 = vsel %vm8182_vm2, 4294967295, %v9970_v22  ;;  %v1947_v27 = vsel %vm6259_vm5, 0, %v6258_v60  ;;  %v1831_v61 = vsel %vm1829_vm8, %v1830_v0, %v8168_v55  ;;  %v6222_v44 = vadd.s32 4294967294, %v1008_v10  ;;  %v885_v0 = vpop.permute.xlu0 %884  ;;  %v881_v10 = vpop.permute.xlu1 %880 }
 0x17c   : > { %9972 = vst [vmem:[#allocation26_spill] sm:$0xff] %v9971_v22  ;;  %v1647_v54 = vmul.f32 %v1646_v58, %v1644_v56  ;;  %v1948_v2 = vsub.s32 32, %v1947_v27  ;;  %v1952_v53 = vsub.s32 4294967266, %v1947_v27  ;;  %v1832_v52 = vadd.s32 %v1831_v61, %v1827_v59 }
 0x17d   : > { %v733_v15 = vmul.f32 %v7297_v26, %v8139_v20  ;;  %v817_v5 = vmul.f32 %v7294_v25, %v781_v63  ;;  %vm942_vm15 = vcmp.lt.s32.totalorder %v7312_v41, 0  ;;  %vm6223_vm14 = vcmp.lt.s32.totalorder %v6222_v44, 0 }
 0x17e   : > { %v818_v48 = vmul.f32 %v7294_v25, %v785_v23  ;;  %v9973_v37 = vand.u32 2147483647, %v7799_v16  ;;  %v9974_v9 = vmov 0  ;;  %v1932_v55 = vadd.s32 %v8074_v43, %v8084_v34 }
 0x17f   : > { %v1953_v50 = vadd.s32 127, %v1952_v53  ;;  %v1833_v51 = vadd.s32 536870912, %v1832_v52  ;;  %v1011_v56 = vsel %vm6223_vm14, 0, %v6222_v44  ;;  %v1756_v20 = vsel %vm8182_vm2, %v7746_v18, %v1753_v30 }
 0x180   : > { %vm8202_vm5 = vcmp.le.f32.partialorder %v9973_v37, 0.7853982  ;;  %v1012_v63 = vsub.s32 32, %v1011_v56  ;;  %v1016_v60 = vsub.s32 4294967266, %v1011_v56  ;;  %v1026_v1 = vsub.s32 4, %v8078_v62 }
 0x181   : > { %v9975_v9 = vsel %vm8202_vm5, 4294967295, %v9974_v9  ;;  %v1648_v23 = vxor.u32 2147483648, %v1647_v54  ;;  %v1950_v58 = vshrl.u32 %v1932_v55, %v1948_v2  ;;  %v1954_v59 = vshll.u32 %v1953_v50, 23  ;;  %v618_v55 = vld [vmem:[%s9981_s1] sm:$0x1] }
 0x182   : > { %9976 = vst [vmem:[#allocation27_spill] sm:$0xff] %v9975_v9  ;;  %v8212_v61 = vshrl.u32 %v1833_v51, 30  ;;  %v9978_v43 = vand.u32 2147483647, %v7312_v41  ;;  %v1013_v44 = vshll.u32 %v8120_v36, %v1011_v56  ;;  %v1014_v30 = vshrl.u32 %v7827_v4, %v1012_v63 }
 0x183   : > { %v1017_v53 = vadd.s32 127, %v1016_v60  ;;  %v834_v37 = vadd.f32 %v818_v48, %v7357_v32  ;;  %v1949_v22 = vshll.u32 %v8145_v24, %v1947_v27  ;;  %v1955_v18 = vor.u32 4788187, %v1954_v59  ;;  %v8230_v4 = vpop.eup %6963 }
 0x184   : > { %9977 = vst [vmem:[#allocation28_spill] sm:$0xff] %v8212_v61  ;;  %vm8216_vm8 = vcmp.le.f32.partialorder %v9978_v43, 0.7853982  ;;  %v1835_v2 = vshll.u32 %v8212_v61, 30  ;;  %v918_v50 = vmul.f32 %v7308_v35, %v885_v0  ;;  %v833_v51 = vadd.f32 %v817_v5, %v733_v15  ;;  %9982 = vst [vmem:[#allocation29_spill] sm:$0xff] %v8230_v4  ;;  %v8238_v56 = vpop.eup %6965  ;;  %v702_v5 = vpop.permute.xlu1 %701 }
 0x185   : > { %v1015_v43 = vor.u32 %v1014_v30, %v1013_v44  ;;  %v1018_v17 = vshll.u32 %v1017_v53, 23  ;;  %v917_v36 = vmul.f32 %v7308_v35, %v881_v10  ;;  %v1649_v32 = vsel %vm9875_vm9, %v1648_v23, %v1647_v54  ;;  %v8242_v60 = vpop.eup %6967 }
 0x186   : > { %v1951_v24 = vor.u32 %v1950_v58, %v1949_v22  ;;  %v8234_v27 = vsub.s32 %v1832_v52, %v1835_v2  ;;  %v8236_v48 = vadd.f32 %v918_v50, %v834_v37  ;;  %6969 = vcosq.f32 %v1756_v20 }
 0x187   : > { %vm939_vm14 = vcmp.gt.f32.partialorder %v618_v55, 0.5  ;;  %v1019_v63 = vor.u32 4788187, %v1018_v17  ;;  %v8240_v15 = vadd.f32 %v917_v36, %v833_v51  ;;  %v1956_v0 = vand.u32 2147483647, %v1955_v18 }
 0x188   : > { %v1838_v10 = vsub.s32 0, %v8234_v27  ;;  %v1027_v22 = vsel %vm942_vm15, %v1026_v1, %v8078_v62  ;;  %v9876_v54 = vand.u32 2147483647, %v8236_v48  ;;  %v8252_v52 = vsel %vm8202_vm5, %v7799_v16, %v1649_v32  ;;  %v789_v32 = vpop.permute.xlu1 %788 }
 0x189   : > { %v1020_v17 = vand.u32 2147483647, %v1019_v63  ;;  %v1022_v23 = vcvt.s32.f32 %v1015_v43  ;;  %v2087_v58 = vand.u32 2139095040, %v8236_v48  ;;  %6971 = vsinq.f32 %v1756_v20 }
 0x18a   : > { %v1958_v59 = vcvt.s32.f32 %v1951_v24  ;;  %v6253_v18 = vmin.u32 %v1838_v10, %v8234_v27  ;;  %v9983_v44 = vmov 0   ;;  %v1029_v1 = vsel %vm8216_vm8, 0, %v1027_v22 }
 0x18b   : > { %v8258_v30 = vsel %vm939_vm14, 1, %v9983_v44  ;;  %v1023_v62 = vmul.f32 %v1022_v23, %v1020_v17  ;;  %v2088_v53 = vshrl.u32 %v2087_v58, 23  ;;  %v1983_v37 = vand.u32 2139095040, %v8240_v15 }
 0x18c   : > { %6973 = vcosq.f32 %v8252_v52  ;;  %vm9879_vm0 = vcmp.lt.s32.totalorder %v7933_v28, 0  ;;  %v1959_v2 = vmul.f32 %v1958_v59, %v1956_v0  ;;  %v1840_v20 = vclz %v6253_v18 }
 0x18d   : > { %v2091_v50 = vand.u32 8388607, %v9876_v54  ;;  %v1024_v51 = vxor.u32 2147483648, %v1023_v62  ;;  %v6264_v55 = vadd.s32 4294967169, %v2088_v53  ;;  %v9877_v43 = vand.u32 2147483647, %v8240_v15 }
 0x18e   : > { %v1984_v36 = vshrl.u32 %v1983_v37, 23  ;;  %v6254_v24 = vadd.s32 4294967294, %v1840_v20  ;;  %v1033_v63 = vadd.s32 3, %v1029_v1  ;;  %v8268_v10 = vand.u32 3, %v1029_v1 }
 0x18f   : > { %v4256_v22 = vrot.slane %v8258_v30, %v7286_v21  ;;  %v1828_v0 = vadd.s32 %v8167_v39, %v8173_v42  ;;  %v1025_v17 = vsel %vm942_vm15, %v1024_v51, %v1023_v62  ;;  %v2094_v23 = vadd.s32 1, %v6264_v55  ;;  %v893_v62 = vpop.permute.xlu0 %892 }
 0x190   : > { %v6260_v58 = vadd.s32 4294967169, %v1984_v36  ;;  %v1960_v59 = vxor.u32 2147483648, %v1959_v2  ;;  %vm6255_vm14 = vcmp.lt.s32.totalorder %v6254_v24, 0  ;;  %v1028_v18 = vsel %vm8216_vm8, %v7312_v41, %v1025_v17 }
 0x191   : > { %v2092_v53 = vor.u32 8388608, %v2091_v50  ;;  %v1843_v1 = vsel %vm6255_vm14, 0, %v6254_v24  ;;  %6975 = vcosq.f32 %v1028_v18  ;;  %vm2095_vm9 = vcmp.gt.s32.totalorder %v2094_v23, 0  ;;  %v793_v50 = vpop.permute.xlu1 %792 }
 0x192   : > { %v1987_v30 = vand.u32 8388607, %v9877_v43  ;;  %v1844_v37 = vsub.s32 32, %v1843_v1  ;;  %v1848_v39 = vsub.s32 4294967266, %v1843_v1  ;;  %6977 = vsinq.f32 %v1028_v18 }
 0x193   : > { %v1990_v42 = vadd.s32 1, %v6260_v58  ;;  %v8281_v20 = vand.u32 3, %v1033_v63  ;;  %v2096_v51 = vsel %vm2095_vm9, %v2094_v23, 0  ;;  %v735_v55 = vmul.f32 %v7297_v26, %v702_v5  ;;  %v8287_v36 = vpop.eup %6969 }
 0x194   : > { %v8285_v34 = vmul.f32 %v7308_v35, %v893_v62  ;;  %9984 = vst [vmem:[#allocation30_spill] sm:$0xff] %v8287_v36  ;;  %v1846_v24 = vshrl.u32 %v1828_v0, %v1844_v37  ;;  %v1849_v17 = vadd.s32 127, %v1848_v39  ;;  %v2098_v54 = vand.u32 31, %v2096_v51 }
 0x195   : > { %v819_v43 = vmul.f32 %v7294_v25, %v789_v32  ;;  %v8292_v58 = vsel %vm9879_vm0, %v1960_v59, %v1959_v2  ;;  %v1845_v63 = vshll.u32 %v8234_v27, %v1843_v1  ;;  %v8295_v23 = vshll.u32 %v2092_v53, 8 }
 0x196   : > { %v1988_v5 = vor.u32 8388608, %v1987_v30  ;;  %v8297_v18 = vshrl.u32 %v2096_v51, 5  ;;  %v2099_v62 = vsub.s32 32, %v2098_v54  ;;  %vm1991_vm9 = vcmp.gt.s32.totalorder %v1990_v42, 0  ;;  %v8300_v0 = vpop.eup %6971 }
 0x197   : > { %v820_v21 = vmul.f32 %v7294_v25, %v793_v50  ;;  %9985 = vst [vmem:[#allocation31_spill] sm:$0xff] %v8300_v0  ;;  %v8302_v37 = vor.u32 %v1846_v24, %v1845_v63  ;;  %v1850_v32 = vshll.u32 %v1849_v17, 23  ;;  %v2101_v39 = vshll.u32 %v9929_v46, %v2098_v54  ;;  %v889_v63 = vpop.permute.xlu1 %888 }
 0x198   : > { %v2104_v2 = vshll.u32 %v9930_v8, %v2098_v54  ;;  %vm1039_vm15 = vcmp.eq.s32.totalorder %v8281_v20, 2  ;;  %vm2702_vm8 = vcmp.eq.s32.totalorder %v8268_v10, 2  ;;  %v2102_v27 = vshrl.u32 %v9930_v8, %v2099_v62 }
 0x199   : > { %v2107_v59 = vshll.u32 %v9931_v57, %v2098_v54  ;;  %v2110_v53 = vshll.u32 %v9932_v38, %v2098_v54  ;;  %v2113_v1 = vshll.u32 %v9967_v14, %v2098_v54  ;;  %v8312_v30 = vpop.eup %6973  ;;  %vm1036_vm14 = vcmp.eq.s32.totalorder %v8281_v20, 0  ;;  %v4704_v54 = vld [vmem:[%s9810_s7 + $0x18] sm:$0xff] }
 0x19a   : > { %9986 = vst [vmem:[#allocation32_spill] sm:$0xff] %v8312_v30  ;;  %v2105_v51 = vshrl.u32 %v9931_v57, %v2099_v62  ;;  %v2108_v50 = vshrl.u32 %v9932_v38, %v2099_v62  ;;  %v2111_v24 = vshrl.u32 %v9967_v14, %v2099_v62  ;;  %v2114_v17 = vshrl.u32 %v9934_v3, %v2099_v62 }
 0x19b   : > { %vm1035_vm12 = vcmp.lt.s32.totalorder %v8281_v20, 2  ;;  %vm8322_vm1 = vcmp.eq.s32.totalorder %v4256_v22, 1  ;;  %v2103_v44 = vor.u32 %v2102_v27, %v2101_v39  ;;  %v1992_v61 = vsel %vm1991_vm9, %v1990_v42, 0  ;;  %v9989_v22 = vld [vmem:[#allocation6_spill] sm:$0xff] }
 0x19c   : > { %v8327_v36 = vshll.u32 %v1988_v5, 8  ;;  %v8329_v0 = vadd.f32 %v819_v43, %v735_v55  ;;  %v2106_v30 = vor.u32 %v2105_v51, %v2104_v2  ;;  %v2109_v9 = vor.u32 %v2108_v50, %v2107_v59 }
 0x19d   : > { %v2112_v16 = vor.u32 %v2111_v24, %v2110_v53  ;;  %v2115_v12 = vor.u32 %v2114_v17, %v2113_v1  ;;  %v1851_v13 = vor.u32 4788187, %v1850_v32  ;;  %vm2119_vm11 = vcmp.lt.s32.totalorder %v8297_v18, 4 }
 0x19e   : > { %v8334_v4 = vadd.f32 %v820_v21, %v9989_v22  ;;  %v8337_v39 = vmul.f32 %v7308_v35, %v889_v63  ;;  %v1854_v42 = vcvt.s32.f32 %v8302_v37  ;;  %vm2116_vm9 = vcmp.lt.s32.totalorder %v8297_v18, 1  ;;  %v6976_v5 = vpop.eup %6975 }
 0x19f   : > { %v2121_v43 = vsel %vm2119_vm11, %v2109_v9, 2102212464  ;;  %v2125_v55 = vsel %vm2119_vm11, %v2112_v16, 920167782  ;;  %v2100_v2 = vshrl.u32 %v9929_v46, %v2099_v62  ;;  %vm2118_vm0 = vcmp.lt.s32.totalorder %v8297_v18, 3  ;;  %v6978_v59 = vpop.eup %6977 }
 0x1a0   : > { %v2128_v32 = vsel %vm2116_vm9, %v2106_v30, %v2109_v9  ;;  %v2129_v27 = vsel %vm2119_vm11, %v2115_v12, 1326507024  ;;  %v1040_v53 = vxor.u32 2147483648, %v6976_v5  ;;  %v2124_v21 = vsel %vm2116_vm9, %v2103_v44, %v2106_v30 }
 0x1a1   : > { %v2126_v1 = vsel %vm2118_vm0, %v2109_v9, %v2125_v55  ;;  %v2130_v51 = vsel %vm2118_vm0, %v2112_v16, %v2129_v27  ;;  %v1037_v50 = vxor.u32 2147483648, %v6978_v59  ;;  %vm2117_vm7 = vcmp.lt.s32.totalorder %v8297_v18, 2 }
 0x1a2   : > { %v2120_v37 = vsel %vm2116_vm9, %v2100_v2, %v2103_v44  ;;  %v2122_v24 = vsel %vm2118_vm0, %v2106_v30, %v2121_v43  ;;  %v1852_v17 = vand.u32 2147483647, %v1851_v13  ;;  %v1041_v63 = vsel %vm1039_vm15, %v1040_v53, %v6978_v59 }
 0x1a3   : > { %v2704_v62 = vsel %vm2702_vm8, %v1040_v53, %v6978_v59  ;;  %v2131_v22 = vsel %vm2117_vm7, %v2128_v32, %v2130_v51  ;;  %v1038_v12 = vsel %vm1036_vm14, %v6976_v5, %v1037_v50  ;;  %vm9990_vm11 = vcmp.eq.s32.totalorder %v8268_v10, 0 }
 0x1a4   : > { %v2701_v9 = vsel %vm9990_vm11, %v6976_v5, %v1037_v50  ;;  %v2127_v16 = vsel %vm2117_vm7, %v2124_v21, %v2126_v1  ;;  %v1994_v55 = vand.u32 31, %v1992_v61  ;;  %v1042_v44 = vsel %vm1035_vm12, %v1038_v12, %v1041_v63 }
 0x1a5   : > { %vm9991_vm0 = vcmp.lt.s32.totalorder %v8268_v10, 2  ;;  %v2123_v18 = vsel %vm2117_vm7, %v2120_v37, %v2122_v24  ;;  %v8356_v30 = vshrl.u32 %v1992_v61, 5  ;;  %vm9992_vm15 = vweird.f32 %v7312_v41 }
 0x1a6   : > { %v2705_v13 = vsel %vm9991_vm0, %v2701_v9, %v2704_v62  ;;  %v1043_v43 = vsel %vm9992_vm15, nan, %v1042_v44  ;;  %vm9993_vm8 = vmmov %vm9992_vm15  ;;  %v8363_v32 = vmul.u32.u64.low %v8295_v23, %v2131_v22  ;;  %v8364_v5 = vmul.u32.u64.high %v8295_v23, %v2131_v22, %v8363_v32 }
 0x1a7   : > { %v2706_v2 = vsel %vm9993_vm8, nan, %v2705_v13  ;;  %v8369_v27 = vmul.u32.u64.low %v8295_v23, %v2127_v16  ;;  %v8370_v10 = vmul.u32.u64.high %v8295_v23, %v2127_v16, %v8369_v27  ;;  %v1995_v61 = vsub.s32 32, %v1994_v55 }
 0x1a8   : > { %v4258_v20 = vsel %vm8322_vm1, %v1043_v43, %v2706_v2  ;;  %v8373_v59 = vmul.f32 %v1854_v42, %v1852_v17  ;;  %vm9994_vm7 = vcmask 195584   ;;  %v2139_v41 = vmul.u32 %v8295_v23, %v2123_v18 }
 0x1a9   : > { %6626 = vmatprep.mubr.msk.f32.mxu0 %vm9994_vm7, %v4258_v20  ;;  %v1997_v53 = vshll.u32 %v9929_v46, %v1994_v55  ;;  %v2000_v21 = vshll.u32 %v9930_v8, %v1994_v55  ;;  %v1998_v1 = vshrl.u32 %v9930_v8, %v1995_v61  ;;  %v2001_v51 = vshrl.u32 %v9931_v57, %v1995_v61 }
 0x1aa   : > { %v2003_v50 = vshll.u32 %v9931_v57, %v1994_v55  ;;  %v2004_v37 = vshrl.u32 %v9932_v38, %v1995_v61  ;;  %vm2141_vm12 = vc.u32 %v8364_v5, %v8369_v27  ;;  %v2006_v42 = vshll.u32 %v9932_v38, %v1994_v55 }
 0x1ab   : > { %v2007_v24 = vshrl.u32 %v9967_v14, %v1995_v61  ;;  %vm2012_vm14 = vcmp.lt.s32.totalorder %v8356_v30, 1  ;;  %v9995_v23 = vand.u32 2147483647, %v7933_v28  ;;  %v9996_v17 = vmov 0 }
 0x1ac   : > { %v2142_v63 = vadd.s32 1, %v8370_v10  ;;  %v1999_v62 = vor.u32 %v1998_v1, %v1997_v53  ;;  %v2002_v22 = vor.u32 %v2001_v51, %v2000_v21  ;;  %v2005_v12 = vor.u32 %v2004_v37, %v2003_v50 }
 0x1ad   : > { %vm8390_vm9 = vcmp.le.f32.partialorder %v9995_v23, 0.7853982  ;;  %v1996_v9 = vshrl.u32 %v9929_v46, %v1995_v61  ;;  %v2008_v16 = vor.u32 %v2007_v24, %v2006_v42  ;;  %v2009_v44 = vshll.u32 %v9967_v14, %v1994_v55 }
 0x1ae   : > { %v9997_v17 = vsel %vm8390_vm9, 4294967295, %v9996_v17  ;;  %v2010_v13 = vshrl.u32 %v9934_v3, %v1995_v61  ;;  %vm9912_vm11 = vcmp.lt.s32.totalorder %v8003_v47, 0  ;;  %v2143_v18 = vsel %vm2141_vm12, %v2142_v63, %v8370_v10 }
 0x1af   : > { %9998 = vst [vmem:[#allocation6_spill] sm:$0xff] %v9997_v17  ;;  %vm2014_vm0 = vcmp.lt.s32.totalorder %v8356_v30, 3  ;;  %vm2015_vm15 = vcmp.lt.s32.totalorder %v8356_v30, 4  ;;  %v2020_v43 = vsel %vm2012_vm14, %v1999_v62, %v2002_v22  ;;  %v2144_v2 = vadd.s32 %v2143_v18, %v2139_v41 }
 0x1b0   : > { %v2011_v32 = vor.u32 %v2010_v13, %v2009_v44  ;;  %v2017_v20 = vsel %vm2015_vm15, %v2005_v12, 2102212464  ;;  %v2021_v53 = vsel %vm2015_vm15, %v2008_v16, 920167782  ;;  %vm2013_vm8 = vcmp.lt.s32.totalorder %v8356_v30, 2 }
 0x1b1   : > { %v2022_v55 = vsel %vm2014_vm0, %v2005_v12, %v2021_v53  ;;  %v2024_v61 = vsel %vm2012_vm14, %v2002_v22, %v2005_v12  ;;  %v8411_v10 = vadd.f32 %v8285_v34, %v8334_v4  ;;  %v10000_v21 = vand.u32 2147483647, %v8003_v47 }
 0x1b2   : > { %v10001_v1 = vmov 0  ;;  %v2145_v41 = vadd.s32 536870912, %v2144_v2  ;;  %v2016_v51 = vsel %vm2012_vm14, %v1996_v9, %v1999_v62  ;;  %v2023_v50 = vsel %vm2013_vm8, %v2020_v43, %v2022_v55 }
 0x1b3   : > { %9999 = vst [vmem:[#allocation33_spill] sm:$0xff] %v8411_v10  ;;  %vm8415_vm7 = vcmp.le.f32.partialorder %v10000_v21, 0.7853982  ;;  %v2025_v37 = vsel %vm2015_vm15, %v2011_v32, 1326507024  ;;  %v2018_v42 = vsel %vm2014_vm0, %v2002_v22, %v2017_v20  ;;  %v1856_v23 = vxor.u32 2147483648, %v8373_v59 }
 0x1b4   : > { %v10002_v1 = vsel %vm8415_vm7, 4294967295, %v10001_v1  ;;  %v2026_v4 = vsel %vm2014_vm0, %v2008_v16, %v2025_v37  ;;  %v8428_v34 = vmul.u32.u64.low %v8327_v36, %v2023_v50  ;;  %v8429_v24 = vmul.u32.u64.high %v8327_v36, %v2023_v50, %v8428_v34  ;;  %v10005_v32 = vld [vmem:[#allocation9_spill] sm:$0xff] }
 0x1b5   : > { %10003 = vst [vmem:[#allocation34_spill] sm:$0xff] %v10002_v1  ;;  %v8432_v63 = vshrl.u32 %v2145_v41, 30  ;;  %v2027_v62 = vsel %vm2013_vm8, %v2024_v61, %v2026_v4  ;;  %v9896_v12 = vand.u32 2147483647, %v8411_v10  ;;  %v2295_v22 = vand.u32 2139095040, %v8411_v10 }
 0x1b6   : > { %v8438_v9 = vmul.u32.u64.low %v8327_v36, %v2027_v62  ;;  %v8439_v44 = vmul.u32.u64.high %v8327_v36, %v2027_v62, %v8438_v9  ;;  %v8444_v16 = vadd.f32 %v8337_v39, %v8329_v0  ;;  %v1964_v13 = vsel %vm8390_vm9, %v7933_v28, %v8292_v58 }
 0x1b7   : > { %10004 = vst [vmem:[#allocation35_spill] sm:$0xff] %v8432_v63  ;;  %v2147_v18 = vshll.u32 %v8432_v63, 30  ;;  %v2019_v43 = vsel %vm2013_vm8, %v2016_v51, %v2018_v42  ;;  %v1130_v20 = vsub.s32 4, %v10005_v32  ;;  %6979 = vsinq.f32 %v8252_v52  ;;  %v901_v52 = vpop.permute.xlu0 %900 }
 0x1b8   : > { %v2038_v53 = vadd.s32 1, %v8429_v24  ;;  %v2296_v55 = vshrl.u32 %v2295_v22, 23  ;;  %v2299_v0 = vand.u32 8388607, %v9896_v12  ;;  %v1857_v39 = vsel %vm9912_vm11, %v1856_v23, %v8373_v59 }
 0x1b9   : > { %v8461_v58 = vsub.s32 %v2144_v2, %v2147_v18  ;;  %v9897_v61 = vand.u32 2147483647, %v8444_v16  ;;  %v2191_v30 = vand.u32 2139095040, %v8444_v16  ;;  %6981 = vcosq.f32 %v1964_v13 }
 0x1ba   : > { %v2035_v21 = vmul.u32 %v8327_v36, %v2019_v43  ;;  %vm2037_vm12 = vc.u32 %v8439_v44, %v8428_v34  ;;  %v6272_v41 = vadd.s32 4294967169, %v2296_v55  ;;  %vm10006_vm14 = vcmp.lt.s32.totalorder %v7359_v33, 0 }
 0x1bb   : > { %v2150_v51 = vsub.s32 0, %v8461_v58  ;;  %v2039_v50 = vsel %vm2037_vm12, %v2038_v53, %v8429_v24  ;;  %v2192_v37 = vshrl.u32 %v2191_v30, 23  ;;  %v1131_v59 = vsel %vm10006_vm14, %v1130_v20, %v10005_v32 }
 0x1bc   : > { %v8475_v2 = vsel %vm8415_vm7, %v8003_v47, %v1857_v39  ;;  %v2040_v42 = vadd.s32 %v2039_v50, %v2035_v21  ;;  %v2300_v36 = vor.u32 8388608, %v2299_v0  ;;  %v2302_v4 = vadd.s32 1, %v6272_v41 }
 0x1bd   : > { %6983 = vsinq.f32 %v1964_v13  ;;  %v6265_v23 = vmin.u32 %v2150_v51, %v8461_v58  ;;  %v8479_v62 = vmul.f32 %v7308_v35, %v901_v52  ;;  %v8483_v24 = vand.u32 8388607, %v9897_v61 }
 0x1be   : > { %v2041_v9 = vadd.s32 536870912, %v2040_v42  ;;  %vm2303_vm0 = vcmp.gt.s32.totalorder %v2302_v4, 0  ;;  %v6268_v22 = vadd.s32 4294967169, %v2192_v37  ;;  %v8487_v43 = vsel %vm7811_vm10, 0, %v1131_v59 }
 0x1bf   : > { %6985 = vcosq.f32 %v8475_v2  ;;  %v2140_v13 = vadd.s32 %v8369_v27, %v8364_v5  ;;  %v2152_v32 = vclz %v6265_v23  ;;  %v2304_v20 = vsel %vm2303_vm0, %v2302_v4, 0 }
 0x1c0   : > { %v8493_v53 = vadd.s32 %v8428_v34, %v8439_v44  ;;  %v8495_v55 = vshrl.u32 %v2041_v9, 30  ;;  %v2306_v0 = vand.u32 31, %v2304_v20  ;;  %v8497_v39 = vshll.u32 %v2300_v36, 8 }
 0x1c1   : > { %v6266_v30 = vadd.s32 4294967294, %v2152_v32  ;;  %v8501_v52 = vadd.s32 3, %v8487_v43  ;;  %v8505_v27 = vshrl.u32 %v2304_v20, 5  ;;  %v2198_v34 = vadd.s32 1, %v6268_v22 }
 0x1c2   : > { %10008 = vst [vmem:[#allocation9_spill] sm:$0xff] %v8495_v55  ;;  %v2043_v5 = vshll.u32 %v8495_v55, 30  ;;  %v2307_v51 = vsub.s32 32, %v2306_v0  ;;  %v2309_v44 = vshll.u32 %v9929_v46, %v2306_v0  ;;  %v2312_v50 = vshll.u32 %v9930_v8, %v2306_v0 }
 0x1c3   : > { %vm6267_vm10 = vcmp.lt.s32.totalorder %v6266_v30, 0  ;;  %v2315_v37 = vshll.u32 %v9931_v57, %v2306_v0  ;;  %v2318_v23 = vshll.u32 %v9932_v38, %v2306_v0  ;;  %v2321_v20 = vshll.u32 %v9967_v14, %v2306_v0 }
 0x1c4   : > { %v2155_v59 = vsel %vm6267_vm10, 0, %v6266_v30  ;;  %v8510_v36 = vsub.s32 %v2040_v42, %v2043_v5  ;;  %v2310_v4 = vshrl.u32 %v9930_v8, %v2307_v51  ;;  %v8514_v9 = vpop.eup %6979  ;;  %v2313_v22 = vshrl.u32 %v9931_v57, %v2307_v51 }
 0x1c5   : > { %10009 = vst [vmem:[#allocation15_spill] sm:$0xff] %v8514_v9  ;;  %v2156_v18 = vsub.s32 32, %v2155_v59  ;;  %v2160_v32 = vsub.s32 4294967266, %v2155_v59  ;;  %v2157_v12 = vshll.u32 %v8461_v58, %v2155_v59  ;;  %v2316_v30 = vshrl.u32 %v9932_v38, %v2307_v51 }
 0x1c6   : > { %v2046_v61 = vsub.s32 0, %v8510_v36  ;;  %v2319_v42 = vshrl.u32 %v9967_v14, %v2307_v51  ;;  %v8522_v5 = vpop.eup %6981  ;;  %v2311_v63 = vor.u32 %v2310_v4, %v2309_v44  ;;  %v2322_v55 = vshrl.u32 %v9934_v3, %v2307_v51 }
 0x1c7   : > { %v2158_v41 = vshrl.u32 %v2140_v13, %v2156_v18  ;;  %v2161_v21 = vadd.s32 127, %v2160_v32  ;;  %v2314_v28 = vor.u32 %v2313_v22, %v2312_v50  ;;  %v2317_v1 = vor.u32 %v2316_v30, %v2315_v37 }
 0x1c8   : > { %v6261_v17 = vmin.u32 %v2046_v61, %v8510_v36  ;;  %v2320_v0 = vor.u32 %v2319_v42, %v2318_v23  ;;  %v2308_v58 = vshrl.u32 %v9929_v46, %v2307_v51  ;;  %v2323_v59 = vor.u32 %v2322_v55, %v2321_v20 }
 0x1c9   : > { %v2162_v47 = vshll.u32 %v2161_v21, 23  ;;  %vm2199_vm15 = vcmp.gt.s32.totalorder %v2198_v34, 0  ;;  %v2159_v10 = vor.u32 %v2158_v41, %v2157_v12  ;;  %vm2324_vm8 = vcmp.lt.s32.totalorder %v8505_v27, 1 }
 0x1ca   : > { %v8527_v9 = vpop.eup %6983  ;;  %v2048_v35 = vclz %v6261_v17  ;;  %vm2327_vm12 = vcmp.lt.s32.totalorder %v8505_v27, 4  ;;  %vm2326_vm14 = vcmp.lt.s32.totalorder %v8505_v27, 3  ;;  %v2328_v61 = vsel %vm2324_vm8, %v2308_v58, %v2311_v63 }
 0x1cb   : > { %v2163_v13 = vor.u32 4788187, %v2162_v47  ;;  %v2329_v44 = vsel %vm2327_vm12, %v2317_v1, 2102212464  ;;  %v2332_v37 = vsel %vm2324_vm8, %v2311_v63, %v2314_v28  ;;  %v2333_v51 = vsel %vm2327_vm12, %v2320_v0, 920167782 }
 0x1cc   : > { %v8532_v50 = vpop.eup %6985  ;;  %v6262_v21 = vadd.s32 4294967294, %v2048_v35  ;;  %v2336_v55 = vsel %vm2324_vm8, %v2314_v28, %v2317_v1  ;;  %v2330_v23 = vsel %vm2326_vm14, %v2314_v28, %v2329_v44  ;;  %v2334_v18 = vsel %vm2326_vm14, %v2317_v1, %v2333_v51 }
 0x1cd   : > { %v2164_v4 = vand.u32 2147483647, %v2163_v13  ;;  %v2337_v12 = vsel %vm2327_vm12, %v2323_v59, 1326507024  ;;  %v2166_v17 = vcvt.s32.f32 %v2159_v10  ;;  %vm2325_vm10 = vcmp.lt.s32.totalorder %v8505_v27, 2 }
 0x1ce   : > { %vm6263_vm0 = vcmp.lt.s32.totalorder %v6262_v21, 0  ;;  %v2338_v41 = vsel %vm2326_vm14, %v2320_v0, %v2337_v12  ;;  %v2335_v32 = vsel %vm2325_vm10, %v2332_v37, %v2334_v18  ;;  %v2200_v20 = vsel %vm2199_vm15, %v2198_v34, 0 }
 0x1cf   : > { %v2051_v47 = vsel %vm6263_vm0, 0, %v6262_v21  ;;  %v2339_v22 = vsel %vm2325_vm10, %v2336_v55, %v2338_v41  ;;  %v8536_v30 = vmul.f32 %v2166_v17, %v2164_v4  ;;  %v2331_v42 = vsel %vm2325_vm10, %v2328_v61, %v2330_v23  ;;  %v10010_v61 = vld [vmem:[#allocation19_spill] sm:$0xff] }
 0x1d0   : > { %v2052_v35 = vsub.s32 32, %v2051_v47  ;;  %v2056_v63 = vsub.s32 4294967266, %v2051_v47  ;;  %v2053_v58 = vshll.u32 %v8510_v36, %v2051_v47  ;;  %v2202_v10 = vand.u32 31, %v2200_v20 }
 0x1d1   : > { %v8540_v28 = vmul.u32.u64.low %v8497_v39, %v2339_v22  ;;  %v8541_v1 = vmul.u32.u64.high %v8497_v39, %v2339_v22, %v8540_v28  ;;  %v8545_v59 = vmul.u32.u64.low %v8497_v39, %v2335_v32  ;;  %v8546_v13 = vmul.u32.u64.high %v8497_v39, %v2335_v32, %v8545_v59  ;;  %v8577_v22 = vld [vmem:[%s9808_s5] sm:$0xff] }
 0x1d2   : > { %v2054_v27 = vshrl.u32 %v8493_v53, %v2052_v35  ;;  %v2057_v0 = vadd.s32 127, %v2056_v63  ;;  %v2203_v34 = vsub.s32 32, %v2202_v10  ;;  %v8550_v44 = vand.u32 3, %v8501_v52  ;;  %6836 = vmatprep.subr.mxu1 %v8577_v22  ;;  %6650 = vmatprep.subr.mxu0 %v8577_v22 }
 0x1d3   : > { %v8554_v36 = vand.u32 3, %v8487_v43  ;;  %v2347_v55 = vmul.u32 %v8497_v39, %v2331_v42  ;;  %v10011_v53 = vor.u32 8388608, %v8483_v24  ;;  %v2168_v23 = vxor.u32 2147483648, %v8536_v30  ;;  %6837 = vmatpush3.msra.mxu1 %v8577_v22 }
 0x1d4   : > { %v2055_v37 = vor.u32 %v2054_v27, %v2053_v58  ;;  %v2058_v51 = vshll.u32 %v2057_v0, 23  ;;  %vm2349_vm8 = vc.u32 %v8541_v1, %v8545_v59  ;;  %v8565_v52 = vshrl.u32 %v2200_v20, 5  ;;  %6676 = vmatprep.subr.mxu1 %v4704_v54 }
 0x1d5   : > { %v8559_v4 = vshll.u32 %v10011_v53, 8  ;;  %v2205_v43 = vshll.u32 %v9929_v46, %v2202_v10  ;;  %v2350_v12 = vadd.s32 1, %v8546_v13  ;;  %v2208_v39 = vshll.u32 %v9930_v8, %v2202_v10 }
 0x1d6   : > { %v2059_v18 = vor.u32 4788187, %v2058_v51  ;;  %v2211_v24 = vshll.u32 %v9931_v57, %v2202_v10  ;;  %v2062_v17 = vcvt.s32.f32 %v2055_v37  ;;  %v2206_v41 = vshrl.u32 %v9930_v8, %v2203_v34 }
 0x1d7   : > { %v2209_v47 = vshrl.u32 %v9931_v57, %v2203_v34  ;;  %v2212_v32 = vshrl.u32 %v9932_v38, %v2203_v34  ;;  %v10012_v20 = vand.u32 2147483647, %v8236_v48  ;;  %v10013_v35 = vmov 0 }
 0x1d8   : > { %v2060_v63 = vand.u32 2147483647, %v2059_v18  ;;  %v2351_v42 = vsel %vm2349_vm8, %v2350_v12, %v8546_v13  ;;  %v2214_v58 = vshll.u32 %v9932_v38, %v2202_v10  ;;  %v2215_v28 = vshrl.u32 %v9967_v14, %v2203_v34 }
 0x1d9   : > { %vm8581_vm12 = vcmp.le.f32.partialorder %v10012_v20, 0.7853982  ;;  %v2352_v27 = vadd.s32 %v2351_v42, %v2347_v55  ;;  %v2207_v0 = vor.u32 %v2206_v41, %v2205_v43  ;;  %v2210_v37 = vor.u32 %v2209_v47, %v2208_v39 }
 0x1da   : > { %v10014_v35 = vsel %vm8581_vm12, 4294967295, %v10013_v35  ;;  %v2213_v51 = vor.u32 %v2212_v32, %v2211_v24  ;;  %v2063_v53 = vmul.f32 %v2062_v17, %v2060_v63  ;;  %v2216_v20 = vor.u32 %v2215_v28, %v2214_v58 }
 0x1db   : > { %v2217_v18 = vshll.u32 %v9967_v14, %v2202_v10  ;;  %v2218_v13 = vshrl.u32 %v9934_v3, %v2203_v34  ;;  %v2353_v12 = vadd.s32 536870912, %v2352_v27  ;;  %v2204_v21 = vshrl.u32 %v9929_v46, %v2203_v34 }
 0x1dc   : > { %vm2220_vm0 = vcmp.lt.s32.totalorder %v8565_v52, 1  ;;  %v2064_v55 = vxor.u32 2147483648, %v2063_v53  ;;  %vm2222_vm11 = vcmp.lt.s32.totalorder %v8565_v52, 3  ;;  %vm2223_vm14 = vcmp.lt.s32.totalorder %v8565_v52, 4 }
 0x1dd   : > { %v2219_v43 = vor.u32 %v2218_v13, %v2217_v18  ;;  %v8601_v10 = vshrl.u32 %v2353_v12, 30  ;;  %v2225_v39 = vsel %vm2223_vm14, %v2213_v51, 2102212464  ;;  %v2228_v34 = vsel %vm2220_vm0, %v2207_v0, %v2210_v37 }
 0x1de   : > { %v2229_v24 = vsel %vm2223_vm14, %v2216_v20, 920167782  ;;  %vm10015_vm10 = vcmp.lt.s32.totalorder %v8236_v48, 0  ;;  %vm2221_vm8 = vcmp.lt.s32.totalorder %v8565_v52, 2  ;;  %v2232_v47 = vsel %vm2220_vm0, %v2210_v37, %v2213_v51 }
 0x1df   : > { %v2169_v17 = vsel %vm10015_vm10, %v2168_v23, %v8536_v30  ;;  %v2230_v41 = vsel %vm2222_vm11, %v2213_v51, %v2229_v24  ;;  %v2355_v32 = vshll.u32 %v8601_v10, 30  ;;  %v2224_v63 = vsel %vm2220_vm0, %v2204_v21, %v2207_v0 }
 0x1e0   : > { %v2231_v42 = vsel %vm2221_vm8, %v2228_v34, %v2230_v41  ;;  %v2233_v58 = vsel %vm2223_vm14, %v2219_v43, 1326507024  ;;  %v10016_v28 = vand.u32 2147483647, %v8240_v15  ;;  %v10017_v30 = vmov 0 }
 0x1e1   : > { %v2226_v23 = vsel %vm2222_vm11, %v2210_v37, %v2225_v39  ;;  %v2234_v51 = vsel %vm2222_vm11, %v2216_v20, %v2233_v58  ;;  %v8629_v18 = vmul.u32.u64.low %v8559_v4, %v2231_v42  ;;  %v8630_v13 = vmul.u32.u64.high %v8559_v4, %v2231_v42, %v8629_v18 }
 0x1e2   : > { %vm8620_vm10 = vcmp.le.f32.partialorder %v10016_v28, 0.7853982  ;;  %v2172_v21 = vsel %vm8581_vm12, %v8236_v48, %v2169_v17  ;;  %vm10019_vm14 = vcmp.lt.s32.totalorder %v8240_v15, 0  ;;  %v8638_v12 = vsub.s32 %v2352_v27, %v2355_v32 }
 0x1e3   : > { %v10018_v30 = vsel %vm8620_vm10, 4294967295, %v10017_v30  ;;  %v2065_v0 = vsel %vm10019_vm14, %v2064_v55, %v2063_v53  ;;  %v2235_v37 = vsel %vm2221_vm8, %v2232_v47, %v2234_v51  ;;  %v10020_v39 = vxor.u32 2147483648, %v8060_v19 }
 0x1e4   : > { %v8643_v43 = vmul.u32.u64.low %v8559_v4, %v2235_v37  ;;  %v8644_v20 = vmul.u32.u64.high %v8559_v4, %v2235_v37, %v8643_v43  ;;  %vm10021_vm11 = vcmp.eq.s32.totalorder %v8550_v44, 0  ;;  %vm1143_vm0 = vcmp.eq.s32.totalorder %v8550_v44, 2 }
 0x1e5   : > { %v1142_v34 = vsel %vm10021_vm11, %v10010_v61, %v10020_v39  ;;  %v2358_v24 = vsub.s32 0, %v8638_v12  ;;  %v2227_v27 = vsel %vm2221_vm8, %v2224_v63, %v2226_v23  ;;  %v10022_v53 = vxor.u32 2147483648, %v10010_v61  ;;  %v10027_v23 = vld [vmem:[#allocation7_spill] sm:$0xff] }
 0x1e6   : > { %vm2802_vm14 = vcmp.eq.s32.totalorder %v8554_v36, 0  ;;  %v2246_v17 = vadd.s32 1, %v8630_v13  ;;  %vm10023_vm15 = vcmp.lt.s32.totalorder %v8550_v44, 2  ;;  %v10024_v47 = vmov %v10020_v39 }
 0x1e7   : > { %v1145_v55 = vsel %vm1143_vm0, %v10022_v53, %v8060_v19  ;;  %v2804_v32 = vsel %vm2802_vm14, %v10010_v61, %v10024_v47  ;;  %vm2805_vm11 = vcmp.eq.s32.totalorder %v8554_v36, 2  ;;  %v6273_v52 = vmin.u32 %v2358_v24, %v8638_v12  ;;  %v10029_v61 = vld [vmem:[#allocation5_spill] sm:$0xff]  ;;  %v10033_v24 = vld [vmem:[#allocation10_spill] sm:$0xff] }
 0x1e8   : > { %v1146_v41 = vsel %vm10023_vm15, %v1142_v34, %v1145_v55  ;;  %vm10025_vm8 = vweird.f32 %v7359_v33  ;;  %vm2801_vm0 = vcmp.lt.s32.totalorder %v8554_v36, 2  ;;  %v10026_v42 = vmov %v10022_v53 }
 0x1e9   : > { %v1147_v63 = vsel %vm10025_vm8, nan, %v1146_v41  ;;  %v2807_v58 = vsel %vm2805_vm11, %v10026_v42, %v8060_v19  ;;  %v2243_v44 = vmul.u32 %v8559_v4, %v2227_v27  ;;  %vm2245_vm15 = vc.u32 %v8644_v20, %v8629_v18  ;;  %vm10028_vm14 = vmmov %vm10025_vm8 }
 0x1ea   : > { %v2808_v28 = vsel %vm2801_vm0, %v2804_v32, %v2807_v58  ;;  %v1234_v51 = vsub.s32 4, %v10027_v23  ;;  %6987 = vsinq.f32 %v8475_v2  ;;  %v2360_v37 = vclz %v6273_v52  ;;  %v10035_v32 = vld [vmem:[#allocation17_spill] sm:$0xff] }
 0x1eb   : > { %v2247_v43 = vsel %vm2245_vm15, %v2246_v17, %v8630_v13  ;;  %v2809_v36 = vsel %vm10028_vm14, nan, %v2808_v28  ;;  %6989 = vcosq.f32 %v2172_v21  ;;  %vm10030_vm11 = vcmp.lt.s32.totalorder %v10029_v61, 0  ;;  %v712_v17 = vpop.permute.xlu1 %711 }
 0x1ec   : > { %v2248_v39 = vadd.s32 %v2247_v43, %v2243_v44  ;;  %v4259_v19 = vsel %vm8322_vm1, %v1147_v63, %v2809_v36  ;;  %v1235_v4 = vsel %vm10030_vm11, %v1234_v51, %v10027_v23  ;;  %v8689_v34 = vsel %vm8620_vm10, %v8240_v15, %v2065_v0  ;;  %v10034_v0 = vld [vmem:[#allocation18_spill] sm:$0xff] }
 0x1ed   : > { %v6274_v2 = vadd.s32 4294967294, %v2360_v37  ;;  %vm10031_vm8 = vcmask 195584   ;;  %v1237_v33 = vsel %vm7758_vm6, 0, %v1235_v4  ;;  %v1338_v27 = vsub.s32 4, %v10033_v24 }
 0x1ee   : > { %6627 = vmatmul.mubr.msk.f32.vlgmr.msra.gmra.mxu0 %vm10031_vm8, %v4259_v19  ;;  %6991 = vsinq.f32 %v2172_v21  ;;  %v2348_v53 = vadd.s32 %v8545_v59, %v8541_v1  ;;  %v2249_v55 = vadd.s32 536870912, %v2248_v39  ;;  %v1241_v41 = vadd.s32 3, %v1237_v33 }
 0x1ef   : > { %6651 = vmatpush3.msra.mxu0 %v8577_v22  ;;  %vm6275_vm0 = vcmp.lt.s32.totalorder %v6274_v2, 0  ;;  %v1245_v47 = vxor.u32 2147483648, %v10034_v0  ;;  %v1248_v52 = vxor.u32 2147483648, %v10035_v32  ;;  %v2903_v63 = vand.u32 3, %v1237_v33 }
 0x1f0   : > { %6993 = vcosq.f32 %v8689_v34  ;;  %v2363_v42 = vsel %vm6275_vm0, 0, %v6274_v2  ;;  %v8701_v58 = vshrl.u32 %v2249_v55, 30  ;;  %v1242_v21 = vand.u32 3, %v1241_v41 }
 0x1f1   : > { %v2364_v44 = vsub.s32 32, %v2363_v42  ;;  %v8704_v1 = vmul.f32 %v7297_v26, %v712_v17  ;;  %vm10036_vm15 = vcmp.lt.s32.totalorder %v7422_v29, 0  ;;  %v2368_v22 = vsub.s32 4294967266, %v2363_v42 }
 0x1f2   : > { %v1339_v59 = vsel %vm10036_vm15, %v1338_v27, %v10033_v24  ;;  %v2251_v28 = vshll.u32 %v8701_v58, 30  ;;  %vm1244_vm14 = vcmp.eq.s32.totalorder %v1242_v21, 0  ;;  %vm1247_vm11 = vcmp.eq.s32.totalorder %v1242_v21, 2 }
 0x1f3   : > { %vm1243_vm8 = vcmp.lt.s32.totalorder %v1242_v21, 2  ;;  %v1246_v23 = vsel %vm1244_vm14, %v10035_v32, %v1245_v47  ;;  %v1249_v51 = vsel %vm1247_vm11, %v1248_v52, %v10034_v0  ;;  %vm2905_vm0 = vcmp.eq.s32.totalorder %v2903_v63, 0  ;;  %v10040_v21 = vld [vmem:[#allocation16_spill] sm:$0xff] }
 0x1f4   : > { %v8713_v37 = vsub.s32 %v2248_v39, %v2251_v28  ;;  %v1250_v26 = vsel %vm1243_vm8, %v1246_v23, %v1249_v51  ;;  %v2907_v43 = vsel %vm2905_vm0, %v10035_v32, %v1245_v47  ;;  %vm2908_vm6 = vcmp.eq.s32.totalorder %v2903_v63, 2 }
 0x1f5   : > { %v2366_v36 = vshrl.u32 %v2348_v53, %v2364_v44  ;;  %vm10037_vm15 = vweird.f32 %v10029_v61  ;;  %vm2904_vm12 = vcmp.lt.s32.totalorder %v2903_v63, 2  ;;  %v2910_v4 = vsel %vm2908_vm6, %v1248_v52, %v10034_v0  ;;  %v797_v63 = vpop.permute.xlu1 %796 }
 0x1f6   : > { %v1251_v19 = vsel %vm10037_vm15, nan, %v1250_v26  ;;  %v2369_v2 = vadd.s32 127, %v2368_v22  ;;  %v2254_v13 = vsub.s32 0, %v8713_v37  ;;  %v2911_v33 = vsel %vm2904_vm12, %v2907_v43, %v2910_v4  ;;  %vm10038_vm14 = vmmov %vm10037_vm15 }
 0x1f7   : > { %v1341_v24 = vsel %vm7973_vm13, 0, %v1339_v59  ;;  %v2912_v39 = vsel %vm10038_vm14, nan, %v2911_v33  ;;  %v1349_v55 = vxor.u32 2147483648, %v8154_v31  ;;  %v1352_v53 = vxor.u32 2147483648, %v8143_v6  ;;  %v8726_v17 = vpop.eup %6987 }
 0x1f8   : > { %v1345_v27 = vadd.s32 3, %v1341_v24  ;;  %v2365_v41 = vshll.u32 %v8638_v12, %v2363_v42  ;;  %v6269_v0 = vmin.u32 %v2254_v13, %v8713_v37  ;;  %v4260_v47 = vsel %vm8322_vm1, %v1251_v19, %v2912_v39  ;;  %v8732_v7 = vpop.eup %6989 }
 0x1f9   : > { %v3006_v32 = vand.u32 3, %v1341_v24  ;;  %v2244_v61 = vadd.s32 %v8629_v18, %v8644_v20  ;;  %vm10039_vm13 = vcmask 195584   ;;  %v1442_v44 = vsub.s32 4, %v10040_v21 }
 0x1fa   : > { %6629 = vmatprep.mubr.msk.f32.mxu0 %vm10039_vm13, %v4260_v47  ;;  %v1346_v52 = vand.u32 3, %v1345_v27  ;;  %v8739_v12 = vor.u32 %v2366_v36, %v2365_v41  ;;  %v2370_v42 = vshll.u32 %v2369_v2, 23  ;;  %v2256_v59 = vclz %v6269_v0 }
 0x1fb   : > { %vm3008_vm6 = vcmp.eq.s32.totalorder %v3006_v32, 0  ;;  %v8741_v22 = vpop.eup %6991  ;;  %vm3011_vm15 = vcmp.eq.s32.totalorder %v3006_v32, 2  ;;  %vm3007_vm14 = vcmp.lt.s32.totalorder %v3006_v32, 2  ;;  %vm10041_vm13 = vcmp.lt.s32.totalorder %v7619_v11, 0 }
 0x1fc   : > { %vm1347_vm11 = vcmp.lt.s32.totalorder %v1346_v52, 2  ;;  %vm1348_vm8 = vcmp.eq.s32.totalorder %v1346_v52, 0  ;;  %vm1351_vm0 = vcmp.eq.s32.totalorder %v1346_v52, 2  ;;  %v6270_v18 = vadd.s32 4294967294, %v2256_v59 }
 0x1fd   : > { %v1350_v20 = vsel %vm1348_vm8, %v8143_v6, %v1349_v55  ;;  %v1353_v28 = vsel %vm1351_vm0, %v1352_v53, %v8154_v31  ;;  %v3010_v23 = vsel %vm3008_vm6, %v8143_v6, %v1349_v55  ;;  %v8746_v51 = vpop.eup %6993  ;;  %v3013_v43 = vsel %vm3011_vm15, %v1352_v53, %v8154_v31  ;;  %v801_v31 = vpop.permute.xlu1 %800 }
 0x1fe   : > { %v1354_v26 = vsel %vm1347_vm11, %v1350_v20, %v1353_v28  ;;  %v1443_v36 = vsel %vm10041_vm13, %v1442_v44, %v10040_v21  ;;  %vm6271_vm12 = vcmp.lt.s32.totalorder %v6270_v18, 0  ;;  %vm10042_vm10 = vweird.f32 %v7422_v29  ;;  %v10045_v21 = vld [vmem:[#allocation11_spill] sm:$0xff] }
 0x1ff   : > { %v1355_v19 = vsel %vm10042_vm10, nan, %v1354_v26  ;;  %v3014_v4 = vsel %vm3007_vm14, %v3010_v23, %v3013_v43  ;;  %v1445_v2 = vsel %vm8126_vm4, 0, %v1443_v36  ;;  %v2259_v13 = vsel %vm6271_vm12, 0, %v6270_v18  ;;  %vm10043_vm6 = vmmov %vm10042_vm10 }
 0x200   : > { %v3015_v6 = vsel %vm10043_vm6, nan, %v3014_v4  ;;  %v821_v33 = vmul.f32 %v7294_v25, %v797_v63  ;;  %v1449_v24 = vadd.s32 3, %v1445_v2  ;;  %v2371_v39 = vor.u32 4788187, %v2370_v42 }
 0x201   : > { %v2260_v27 = vsub.s32 32, %v2259_v13  ;;  %v2264_v55 = vsub.s32 4294967266, %v2259_v13  ;;  %v4261_v53 = vsel %vm8322_vm1, %v1355_v19, %v3015_v6  ;;  %vm10044_vm11 = vcmask 195584  }
 0x202   : > { %6630 = vmatmul.mubr.msk.f32.gmra.mxu0 %vm10044_vm11, %v4261_v53  ;;  %v1450_v41 = vand.u32 3, %v1449_v24  ;;  %v1453_v49 = vxor.u32 2147483648, %v8242_v60  ;;  %v1456_v0 = vxor.u32 2147483648, %v8238_v56  ;;  %v3109_v47 = vand.u32 3, %v1445_v2 }
 0x203   : > { %v2261_v29 = vshll.u32 %v8713_v37, %v2259_v13  ;;  %v2262_v32 = vshrl.u32 %v2244_v61, %v2260_v27  ;;  %v2265_v52 = vadd.s32 127, %v2264_v55  ;;  %v822_v63 = vmul.f32 %v7294_v25, %v801_v31  ;;  %v10046_v37 = vld [vmem:[#allocation8_spill] sm:$0xff] }
 0x204   : > { %vm1451_vm4 = vcmp.lt.s32.totalorder %v1450_v41, 2  ;;  %vm1452_vm10 = vcmp.eq.s32.totalorder %v1450_v41, 0  ;;  %vm1455_vm12 = vcmp.eq.s32.totalorder %v1450_v41, 2  ;;  %v1546_v44 = vsub.s32 4, %v10045_v21  ;;  %v897_v41 = vpop.permute.xlu1 %896 }
 0x205   : > { %v2263_v42 = vor.u32 %v2262_v32, %v2261_v29  ;;  %v2266_v59 = vshll.u32 %v2265_v52, 23  ;;  %v1454_v18 = vsel %vm1452_vm10, %v8238_v56, %v1453_v49  ;;  %v1457_v20 = vsel %vm1455_vm12, %v1456_v0, %v8242_v60  ;;  %v10049_v29 = vld [vmem:[#allocation25_spill] sm:$0xff] }
 0x206   : > { %vm1448_vm8 = vweird.f32 %v7619_v11  ;;  %v1458_v28 = vsel %vm1451_vm4, %v1454_v18, %v1457_v20  ;;  %vm3111_vm0 = vcmp.eq.s32.totalorder %v3109_v47, 0  ;;  %v838_v61 = vadd.f32 %v822_v63, %v10046_v37  ;;  %v10051_v18 = vld [vmem:[#allocation23_spill] sm:$0xff] }
 0x207   : > { %v2267_v23 = vor.u32 4788187, %v2266_v59  ;;  %vm3110_vm15 = vcmp.lt.s32.totalorder %v3109_v47, 2  ;;  %v3113_v25 = vsel %vm3111_vm0, %v8238_v56, %v1453_v49  ;;  %vm3114_vm14 = vcmp.eq.s32.totalorder %v3109_v47, 2 }
 0x208   : > { %v1459_v26 = vsel %vm1448_vm8, nan, %v1458_v28  ;;  %v3116_v43 = vsel %vm3114_vm14, %v1456_v0, %v8242_v60  ;;  %v8776_v36 = vadd.f32 %v8479_v62, %v838_v61  ;;  %vm10047_vm13 = vcmp.lt.s32.totalorder %v7519_v45, 0 }
 0x209   : > { %v1547_v19 = vsel %vm10047_vm13, %v1546_v44, %v10045_v21  ;;  %v2268_v4 = vand.u32 2147483647, %v2267_v23  ;;  %v2270_v2 = vcvt.s32.f32 %v2263_v42  ;;  %v3117_v13 = vsel %vm3110_vm15, %v3113_v25, %v3116_v43  ;;  %v10050_v21 = vld [vmem:[#allocation4_spill] sm:$0xff] }
 0x20a   : > { %v1549_v6 = vsel %vm8066_vm3, 0, %v1547_v19  ;;  %v2372_v56 = vand.u32 2147483647, %v2371_v39  ;;  %v3118_v24 = vsel %vm1448_vm8, nan, %v3117_v13  ;;  %v2500_v31 = vand.u32 2147483647, %v8776_v36 }
 0x20b   : > { %v2503_v60 = vand.u32 2139095040, %v8776_v36  ;;  %v2374_v62 = vcvt.s32.f32 %v8739_v12  ;;  %v2271_v27 = vmul.f32 %v2270_v2, %v2268_v4  ;;  %v4262_v55 = vsel %vm8322_vm1, %v1459_v26, %v3118_v24  ;;  %v10048_v39 = vld [vmem:[#allocation29_spill] sm:$0xff] }
 0x20c   : > { %v1553_v53 = vadd.s32 3, %v1549_v6  ;;  %vm2190_vm6 = vcmp.lt.s32.totalorder %v8444_v16, 0  ;;  %6632 = vmatprep.mubr.msk.f32.mxu0 %vm10044_vm11, %v4262_v55  ;;  %v2507_v11 = vand.u32 8388607, %v2500_v31  ;;  %v1557_v49 = vxor.u32 2147483648, %v10048_v39 }
 0x20d   : > { %v2504_v40 = vshrl.u32 %v2503_v60, 23  ;;  %v3212_v0 = vand.u32 3, %v1549_v6  ;;  %6995 = vsinq.f32 %v8689_v34  ;;  %v837_v12 = vadd.f32 %v821_v33, %v8704_v1  ;;  %v10052_v60 = vld [vmem:[#allocation14_spill] sm:$0xff] }
 0x20e   : > { %v1554_v47 = vand.u32 3, %v1553_v53  ;;  %v1560_v32 = vxor.u32 2147483648, %v10049_v29  ;;  %v8798_v52 = vmul.f32 %v2374_v62, %v2372_v56  ;;  %vm1552_vm3 = vweird.f32 %v7519_v45 }
 0x20f   : > { %v6280_v63 = vadd.s32 4294967169, %v2504_v40  ;;  %v921_v44 = vmul.f32 %v10050_v21, %v897_v41  ;;  %v2272_v42 = vxor.u32 2147483648, %v2271_v27  ;;  %v2508_v59 = vor.u32 8388608, %v2507_v11 }
 0x210   : > { %vm1556_vm4 = vcmp.eq.s32.totalorder %v1554_v47, 0  ;;  %v1650_v20 = vsub.s32 4, %v10051_v18  ;;  %vm1559_vm10 = vcmp.eq.s32.totalorder %v1554_v47, 2  ;;  %vm3214_vm12 = vcmp.eq.s32.totalorder %v3212_v0, 0 }
 0x211   : > { %v2510_v28 = vadd.s32 1, %v6280_v63  ;;  %v1558_v34 = vsel %vm1556_vm4, %v10049_v29, %v1557_v49  ;;  %vm1555_vm8 = vcmp.lt.s32.totalorder %v1554_v47, 2  ;;  %v1561_v1 = vsel %vm1559_vm10, %v1560_v32, %v10048_v39 }
 0x212   : > { %v3216_v33 = vsel %vm3214_vm12, %v10049_v29, %v1557_v49  ;;  %vm3217_vm0 = vcmp.eq.s32.totalorder %v3212_v0, 2  ;;  %v1562_v37 = vsel %vm1555_vm8, %v1558_v34, %v1561_v1  ;;  %vm3213_vm14 = vcmp.lt.s32.totalorder %v3212_v0, 2  ;;  %v10054_v49 = vld [vmem:[#allocation33_spill] sm:$0xff] }
 0x213   : > { %vm2511_vm15 = vcmp.gt.s32.totalorder %v2510_v28, 0  ;;  %v3219_v61 = vsel %vm3217_vm0, %v1560_v32, %v10048_v39  ;;  %v1563_v25 = vsel %vm1552_vm3, nan, %v1562_v37  ;;  %v8809_v43 = vadd.f32 %v921_v44, %v837_v12 }
 0x214   : > { %v2512_v23 = vsel %vm2511_vm15, %v2510_v28, 0  ;;  %v3220_v26 = vsel %vm3213_vm14, %v3216_v33, %v3219_v61  ;;  %v2376_v19 = vxor.u32 2147483648, %v8798_v52  ;;  %v2273_v6 = vsel %vm2190_vm6, %v2272_v42, %v2271_v27 }
 0x215   : > { %v2513_v4 = vshrl.u32 %v2512_v23, 5  ;;  %v2514_v2 = vand.u32 31, %v2512_v23  ;;  %v3221_v13 = vsel %vm1552_vm3, nan, %v3220_v26  ;;  %v8816_v56 = vshll.u32 %v2508_v59, 8 }
 0x216   : > { %v4263_v24 = vsel %vm8322_vm1, %v1563_v25, %v3221_v13  ;;  %vm10053_vm13 = vcmp.lt.s32.totalorder %v10052_v60, 0  ;;  %v2396_v45 = vand.u32 2147483647, %v8809_v43  ;;  %v2399_v41 = vand.u32 2139095040, %v8809_v43 }
 0x217   : > { %v1651_v62 = vsel %vm10053_vm13, %v1650_v20, %v10051_v18  ;;  %v2515_v55 = vsub.s32 32, %v2514_v2  ;;  %v2517_v53 = vshll.u32 %v9929_v46, %v2514_v2  ;;  %6633 = vmatmul.mubr.msk.f32.gmra.mxu0 %vm10044_vm11, %v4263_v24  ;;  %v2520_v27 = vshll.u32 %v9930_v8, %v2514_v2 }
 0x218   : > { %v2523_v40 = vshll.u32 %v9931_v57, %v2514_v2  ;;  %v2526_v11 = vshll.u32 %v9932_v38, %v2514_v2  ;;  %v2529_v39 = vshll.u32 %v9967_v14, %v2514_v2  ;;  %vm2294_vm3 = vcmp.lt.s32.totalorder %v10054_v49, 0 }
 0x219   : > { %v10055_v0 = vand.u32 2147483647, %v8444_v16  ;;  %v2518_v47 = vshrl.u32 %v9930_v8, %v2515_v55  ;;  %v2521_v29 = vshrl.u32 %v9931_v57, %v2515_v55  ;;  %v2524_v32 = vshrl.u32 %v9932_v38, %v2515_v55 }
 0x21a   : > { %vm2532_vm10 = vcmp.lt.s32.totalorder %v2513_v4, 1  ;;  %v2516_v63 = vshrl.u32 %v9929_v46, %v2515_v55  ;;  %v2527_v21 = vshrl.u32 %v9967_v14, %v2515_v55  ;;  %v2530_v44 = vshrl.u32 %v9934_v3, %v2515_v55  ;;  %v8844_v42 = vpop.eup %6995 }
 0x21b   : > { %vm8834_vm4 = vcmp.le.f32.partialorder %v10055_v0, 0.7853982  ;;  %vm2534_vm12 = vcmp.lt.s32.totalorder %v2513_v4, 3  ;;  %v2519_v59 = vor.u32 %v2518_v47, %v2517_v53  ;;  %v2522_v18 = vor.u32 %v2521_v29, %v2520_v27 }
 0x21c   : > { %v2525_v20 = vor.u32 %v2524_v32, %v2523_v40  ;;  %vm2535_vm8 = vcmp.lt.s32.totalorder %v2513_v4, 4  ;;  %v2528_v28 = vor.u32 %v2527_v21, %v2526_v11  ;;  %v2531_v34 = vor.u32 %v2530_v44, %v2529_v39 }
 0x21d   : > { %v2400_v1 = vshrl.u32 %v2399_v41, 23  ;;  %v2403_v33 = vand.u32 8388607, %v2396_v45  ;;  %v2536_v37 = vsel %vm2532_vm10, %v2516_v63, %v2519_v59  ;;  %v2540_v23 = vsel %vm2532_vm10, %v2519_v59, %v2522_v18  ;;  %v625_v59 = vld [vmem:[%s8858_s23 + $0x30] sm:$0xff] }
 0x21e   : > { %v2537_v61 = vsel %vm2535_vm8, %v2525_v20, 2102212464  ;;  %v2544_v25 = vsel %vm2532_vm10, %v2522_v18, %v2525_v20  ;;  %v2541_v2 = vsel %vm2535_vm8, %v2528_v28, 920167782  ;;  %v2545_v13 = vsel %vm2535_vm8, %v2531_v34, 1326507024 }
 0x21f   : > { %v2538_v26 = vsel %vm2534_vm12, %v2522_v18, %v2537_v61  ;;  %v6276_v24 = vadd.s32 4294967169, %v2400_v1  ;;  %vm2533_vm0 = vcmp.lt.s32.totalorder %v2513_v4, 2  ;;  %v2542_v55 = vsel %vm2534_vm12, %v2525_v20, %v2541_v2  ;;  %v626_v1 = vld [vmem:[%s8858_s23 + $0x38] sm:$0xff] }
 0x220   : > { %v2546_v53 = vsel %vm2534_vm12, %v2528_v28, %v2545_v13  ;;  %v2404_v41 = vor.u32 8388608, %v2403_v33  ;;  %v2539_v27 = vsel %vm2533_vm0, %v2536_v37, %v2538_v26  ;;  %v2543_v40 = vsel %vm2533_vm0, %v2540_v23, %v2542_v55  ;;  %v10060_v37 = vld [vmem:[#allocation32_spill] sm:$0xff]  ;;  %v10061_v13 = vld [vmem:[#allocation21_spill] sm:$0xff] }
 0x221   : > { %v2547_v11 = vsel %vm2533_vm0, %v2544_v25, %v2546_v53  ;;  %v2406_v39 = vadd.s32 1, %v6276_v24  ;;  %v8865_v4 = vmul.u32.u64.low %v8816_v56, %v2543_v40  ;;  %v8866_v29 = vmul.u32.u64.high %v8816_v56, %v2543_v40, %v8865_v4  ;;  %v628_v40 = vld [vmem:[%s8858_s23 + $0x48] sm:$0xff] }
 0x222   : > { %v8861_v0 = vmul.u32.u64.low %v8816_v56, %v2547_v11  ;;  %v8862_v47 = vmul.u32.u64.high %v8816_v56, %v2547_v11, %v8861_v0  ;;  %v8871_v32 = vsel %vm2294_vm3, %v2376_v19, %v8798_v52  ;;  %v8876_v63 = vsel %vm8834_vm4, %v8444_v16, %v2273_v6  ;;  %v10059_v52 = vld [vmem:[#allocation15_spill] sm:$0xff]  ;;  %v627_v6 = vld [vmem:[%s8858_s23 + $0x40] sm:$0xff] }
 0x223   : > { %vm2407_vm15 = vcmp.gt.s32.totalorder %v2406_v39, 0  ;;  %v1653_v44 = vsel %vm8202_vm5, 0, %v1651_v62  ;;  %v2555_v18 = vmul.u32 %v8816_v56, %v2539_v27  ;;  %v8882_v28 = vshll.u32 %v2404_v41, 8 }
 0x224   : > { %v2408_v20 = vsel %vm2407_vm15, %v2406_v39, 0  ;;  %v1657_v34 = vadd.s32 3, %v1653_v44  ;;  %v1661_v19 = vxor.u32 2147483648, %v10059_v52  ;;  %v1664_v61 = vxor.u32 2147483648, %v10060_v37 }
 0x225   : > { %v2410_v33 = vand.u32 31, %v2408_v20  ;;  %vm9915_vm14 = vcmask 64512   ;;  %vm2557_vm13 = vc.u32 %v8862_v47, %v8865_v4  ;;  %v2558_v62 = vadd.s32 1, %v8866_v29 }
 0x226   : > { %v8890_v23 = vshrl.u32 %v2408_v20, 5  ;;  %v8892_v56 = vand.u32 3, %v1653_v44  ;;  %6661 = vmatprep.mubr.msk.f32.mxu1 %vm9915_vm14, %v625_v59  ;;  %v8896_v25 = vadd.s32 %v8865_v4, %v8862_v47  ;;  %v8898_v2 = vand.u32 3, %v1657_v34  ;;  %v629_v4 = vld [vmem:[%s8858_s23 + $0x50] sm:$0xff] }
 0x227   : > { %v2411_v26 = vsub.s32 32, %v2410_v33  ;;  %v1754_v24 = vsub.s32 4, %v10061_v13  ;;  %6662 = vmatmul.mubr.msk.f32.vlgmr.msra.gmra.mxu1 %vm9915_vm14, %v626_v1  ;;  %v2559_v55 = vsel %vm2557_vm13, %v2558_v62, %v8866_v29  ;;  %v2413_v53 = vshll.u32 %v9929_v46, %v2410_v33 }
 0x228   : > { %v2416_v41 = vshll.u32 %v9930_v8, %v2410_v33  ;;  %v2419_v27 = vshll.u32 %v9931_v57, %v2410_v33  ;;  %6664 = vmatprep.mubr.msk.f32.mxu1 %vm9915_vm14, %v627_v6  ;;  %v2560_v11 = vadd.s32 %v2559_v55, %v2555_v18  ;;  %v2422_v47 = vshll.u32 %v9932_v38, %v2410_v33 }
 0x229   : > { %v2414_v39 = vshrl.u32 %v9930_v8, %v2411_v26  ;;  %v2417_v0 = vshrl.u32 %v9931_v57, %v2411_v26  ;;  %v2420_v29 = vshrl.u32 %v9932_v38, %v2411_v26  ;;  %v2423_v21 = vshrl.u32 %v9967_v14, %v2411_v26  ;;  %v630_v38 = vld [vmem:[%s8858_s23 + $0x58] sm:$0xff]  ;;  %6677 = vmatpush3.msra.mxu1 %v4704_v54 }
 0x22a   : > { %v2425_v44 = vshll.u32 %v9967_v14, %v2410_v33  ;;  %v2426_v59 = vshrl.u32 %v9934_v3, %v2411_v26  ;;  %v2561_v20 = vadd.s32 536870912, %v2560_v11  ;;  %vm2428_vm5 = vcmp.lt.s32.totalorder %v8890_v23, 1  ;;  %v631_v14 = vld [vmem:[%s8858_s23 + $0x60] sm:$0xff] }
 0x22b   : > { %v2415_v34 = vor.u32 %v2414_v39, %v2413_v53  ;;  %v2418_v18 = vor.u32 %v2417_v0, %v2416_v41  ;;  %6665 = vmatmul.mubr.msk.f32.gmra.mxu1 %vm9915_vm14, %v628_v40  ;;  %v2412_v8 = vshrl.u32 %v9929_v46, %v2411_v26  ;;  %v2421_v57 = vor.u32 %v2420_v29, %v2419_v27 }
 0x22c   : > { %v2424_v1 = vor.u32 %v2423_v21, %v2422_v47  ;;  %v2427_v6 = vor.u32 %v2426_v59, %v2425_v44  ;;  %6667 = vmatprep.mubr.msk.f32.mxu1 %vm9915_vm14, %v629_v4  ;;  %v8921_v62 = vshrl.u32 %v2561_v20, 30  ;;  %vm2430_vm11 = vcmp.lt.s32.totalorder %v8890_v23, 3  ;;  %v632_v4 = vld [vmem:[%s8858_s23 + $0x68] sm:$0xff]  ;;  %v633_v59 = vld [vmem:[%s8858_s23 + $0x70] sm:$0xff] }
 0x22d   : > { %vm2431_vm10 = vcmp.lt.s32.totalorder %v8890_v23, 4  ;;  %v2436_v3 = vsel %vm2428_vm5, %v2415_v34, %v2418_v18  ;;  %vm1656_vm12 = vweird.f32 %v10052_v60  ;;  %v2440_v26 = vsel %vm2428_vm5, %v2418_v18, %v2421_v57 }
 0x22e   : > { %v2433_v46 = vsel %vm2431_vm10, %v2421_v57, 2102212464  ;;  %v2437_v33 = vsel %vm2431_vm10, %v2424_v1, 920167782  ;;  %v2441_v55 = vsel %vm2431_vm10, %v2427_v6, 1326507024  ;;  %v2432_v40 = vsel %vm2428_vm5, %v2412_v8, %v2415_v34 }
 0x22f   : > { %v2563_v53 = vshll.u32 %v8921_v62, 30  ;;  %vm2429_vm8 = vcmp.lt.s32.totalorder %v8890_v23, 2  ;;  %v2438_v41 = vsel %vm2430_vm11, %v2421_v57, %v2437_v33  ;;  %v2442_v27 = vsel %vm2430_vm11, %v2424_v1, %v2441_v55  ;;  %6668 = vmatmul.mubr.msk.f32.gmra.mxu1 %vm9915_vm14, %v630_v38 }
 0x230   : > { %v2434_v39 = vsel %vm2430_vm11, %v2418_v18, %v2433_v46  ;;  %v2439_v0 = vsel %vm2429_vm8, %v2436_v3, %v2438_v41  ;;  %v2443_v47 = vsel %vm2429_vm8, %v2440_v26, %v2442_v27  ;;  %6670 = vmatprep.mubr.msk.f32.mxu1 %vm9915_vm14, %v631_v14  ;;  %vm1660_vm0 = vcmp.eq.s32.totalorder %v8898_v2, 0  ;;  %v634_v3 = vld [vmem:[%s8858_s23 + $0x78] sm:$0xff]  ;;  %v10065_v27 = vld [vmem:[#allocation31_spill] sm:$0xff] }
 0x231   : > { %v8942_v29 = vsub.s32 %v2560_v11, %v2563_v53  ;;  %v8945_v21 = vmul.u32.u64.low %v8882_v28, %v2443_v47  ;;  %v8946_v44 = vmul.u32.u64.high %v8882_v28, %v2443_v47, %v8945_v21  ;;  %v1662_v18 = vsel %vm1660_vm0, %v10060_v37, %v1661_v19 }
 0x232   : > { %v8951_v20 = vmul.u32.u64.low %v8882_v28, %v2439_v0  ;;  %v8952_v34 = vmul.u32.u64.high %v8882_v28, %v2439_v0, %v8951_v20  ;;  %vm1663_vm15 = vcmp.eq.s32.totalorder %v8898_v2, 2  ;;  %vm1659_vm13 = vcmp.lt.s32.totalorder %v8898_v2, 2  ;;  %v10062_v2 = vld [vmem:[#allocation12_spill] sm:$0xff] }
 0x233   : > { %v2566_v11 = vsub.s32 0, %v8942_v29  ;;  %v1665_v8 = vsel %vm1663_vm15, %v1664_v61, %v10059_v52  ;;  %vm3317_vm5 = vcmp.eq.s32.totalorder %v8892_v56, 0  ;;  %6671 = vmatmul.mubr.msk.f32.gmra.mxu1 %vm9915_vm14, %v632_v4  ;;  %v2435_v57 = vsel %vm2429_vm8, %v2432_v40, %v2434_v39  ;;  %v10068_v4 = vld [vmem:[#allocation28_spill] sm:$0xff] }
 0x234   : > { %v1666_v1 = vsel %vm1659_vm13, %v1662_v18, %v1665_v8  ;;  %v3319_v6 = vsel %vm3317_vm5, %v10060_v37, %v1661_v19  ;;  %vm10063_vm11 = vcmp.lt.s32.totalorder %v10062_v2, 0  ;;  %6673 = vmatprep.mubr.msk.f32.mxu1 %vm9915_vm14, %v633_v59  ;;  %vm2453_vm10 = vc.u32 %v8946_v44, %v8951_v20 }
 0x235   : > { %v1755_v38 = vsel %vm10063_vm11, %v1754_v24, %v10061_v13  ;;  %v6281_v14 = vmin.u32 %v2566_v11, %v8942_v29  ;;  %vm3316_vm8 = vcmp.lt.s32.totalorder %v8892_v56, 2  ;;  %vm3320_vm0 = vcmp.eq.s32.totalorder %v8892_v56, 2 }
 0x236   : > { %v2454_v19 = vadd.s32 1, %v8952_v34  ;;  %v1667_v23 = vsel %vm1656_vm12, nan, %v1666_v1  ;;  %v3322_v13 = vsel %vm3320_vm0, %v1664_v61, %v10059_v52  ;;  %v1757_v46 = vsel %vm8182_vm2, 0, %v1755_v38  ;;  %v10069_v38 = vld [vmem:[#allocation22_spill] sm:$0xff] }
 0x237   : > { %v2568_v33 = vclz %v6281_v14  ;;  %v2451_v26 = vmul.u32 %v8882_v28, %v2435_v57  ;;  %v3323_v55 = vsel %vm3316_vm8, %v3319_v6, %v3322_v13  ;;  %v1761_v53 = vadd.s32 3, %v1757_v46  ;;  %6674 = vmatmul.mubr.msk.f32.gmra.mxu1 %vm9915_vm14, %v634_v3  ;;  %v10067_v28 = vld [vmem:[#allocation30_spill] sm:$0xff] }
 0x238   : > { %v2455_v56 = vsel %vm2453_vm10, %v2454_v19, %v8952_v34  ;;  %v3324_v41 = vsel %vm1656_vm12, nan, %v3323_v55  ;;  %v1765_v40 = vxor.u32 2147483648, %v10065_v27  ;;  %v3418_v39 = vand.u32 3, %v1757_v46 }
 0x239   : > { %v6282_v37 = vadd.s32 4294967294, %v2568_v33  ;;  %v2456_v52 = vadd.s32 %v2455_v56, %v2451_v26  ;;  %v4264_v61 = vsel %vm8322_vm1, %v1667_v23, %v3324_v41  ;;  %v1762_v0 = vand.u32 3, %v1761_v53  ;;  %v10077_v26 = vld [vmem:[#allocation9_spill] sm:$0xff] }
 0x23a   : > { %vm10066_vm2 = vcmask 195584   ;;  %vm1760_vm15 = vweird.f32 %v10062_v2  ;;  %v1768_v47 = vxor.u32 2147483648, %v10067_v28  ;;  %vm3419_vm13 = vcmp.lt.s32.totalorder %v3418_v39, 2 }
 0x23b   : > { %6635 = vmatprep.mubr.msk.f32.mxu0 %vm10066_vm2, %v4264_v61  ;;  %v1858_v21 = vsub.s32 4, %v10068_v4  ;;  %vm6283_vm5 = vcmp.lt.s32.totalorder %v6282_v37, 0  ;;  %v2457_v60 = vadd.s32 536870912, %v2456_v52  ;;  %vm1764_vm12 = vcmp.eq.s32.totalorder %v1762_v0, 0 }
 0x23c   : > { %vm3420_vm11 = vcmp.eq.s32.totalorder %v3418_v39, 0  ;;  %v2571_v59 = vsel %vm6283_vm5, 0, %v6282_v37  ;;  %v1766_v34 = vsel %vm1764_vm12, %v10067_v28, %v1765_v40  ;;  %vm1767_vm10 = vcmp.eq.s32.totalorder %v1762_v0, 2 }
 0x23d   : > { %vm3423_vm8 = vcmp.eq.s32.totalorder %v3418_v39, 2  ;;  %v2572_v18 = vsub.s32 32, %v2571_v59  ;;  %v2576_v11 = vsub.s32 4294967266, %v2571_v59  ;;  %v9004_v8 = vshrl.u32 %v2457_v60, 30 }
 0x23e   : > { %v3422_v57 = vsel %vm3420_vm11, %v10067_v28, %v1765_v40  ;;  %vm1763_vm0 = vcmp.lt.s32.totalorder %v1762_v0, 2  ;;  %v1769_v1 = vsel %vm1767_vm10, %v1768_v47, %v10065_v27  ;;  %v3425_v6 = vsel %vm3423_vm8, %v1768_v47, %v10065_v27 }
 0x23f   : > { %vm10070_vm2 = vcmp.lt.s32.totalorder %v10069_v38, 0  ;;  %v2574_v14 = vshrl.u32 %v8896_v25, %v2572_v18  ;;  %v2577_v19 = vadd.s32 127, %v2576_v11  ;;  %v2459_v23 = vshll.u32 %v9004_v8, 30 }
 0x240   : > { %v1859_v3 = vsel %vm10070_vm2, %v1858_v21, %v10068_v4  ;;  %v1770_v13 = vsel %vm1763_vm0, %v1766_v34, %v1769_v1  ;;  %v2573_v24 = vshll.u32 %v8942_v29, %v2571_v59  ;;  %v3426_v33 = vsel %vm3419_vm13, %v3422_v57, %v3425_v6  ;;  %v10074_v1 = vld [vmem:[#allocation20_spill] sm:$0xff] }
 0x241   : > { %v1771_v46 = vsel %vm1760_vm15, nan, %v1770_v13  ;;  %v1861_v55 = vsel %vm8415_vm7, 0, %v1859_v3  ;;  %v2578_v53 = vshll.u32 %v2577_v19, 23  ;;  %v9020_v56 = vsub.s32 %v2456_v52, %v2459_v23  ;;  %v10073_v52 = vld [vmem:[#allocation24_spill] sm:$0xff] }
 0x242   : > { %v3427_v25 = vsel %vm1760_vm15, nan, %v3426_v33  ;;  %v1869_v41 = vxor.u32 2147483648, %v8726_v17  ;;  %v1865_v29 = vadd.s32 3, %v1861_v55  ;;  %v1872_v40 = vxor.u32 2147483648, %v8532_v50 }
 0x243   : > { %v4265_v27 = vsel %vm8322_vm1, %v1771_v46, %v3427_v25  ;;  %v3521_v37 = vand.u32 3, %v1861_v55  ;;  %6997 = vcosq.f32 %v8876_v63  ;;  %v9029_v39 = vor.u32 %v2574_v14, %v2573_v24 }
 0x244   : > { %v2462_v61 = vsub.s32 0, %v9020_v56  ;;  %vm10072_vm7 = vcmask 195584   ;;  %vm1864_vm13 = vweird.f32 %v10069_v38  ;;  %v1866_v2 = vand.u32 3, %v1865_v29 }
 0x245   : > { %6636 = vmatmul.mubr.msk.f32.gmra.mxu0 %vm10072_vm7, %v4265_v27  ;;  %vm3523_vm15 = vcmp.eq.s32.totalorder %v3521_v37, 0  ;;  %vm3526_vm5 = vcmp.eq.s32.totalorder %v3521_v37, 2  ;;  %v1962_v0 = vsub.s32 4, %v10073_v52  ;;  %vm3522_vm12 = vcmp.lt.s32.totalorder %v3521_v37, 2 }
 0x246   : > { %v6277_v28 = vmin.u32 %v2462_v61, %v9020_v56  ;;  %v3525_v47 = vsel %vm3523_vm15, %v8532_v50, %v1869_v41  ;;  %v3528_v4 = vsel %vm3526_vm5, %v1872_v40, %v8726_v17  ;;  %v9038_v21 = vor.u32 4788187, %v2578_v53 }
 0x247   : > { %vm1868_vm11 = vcmp.eq.s32.totalorder %v1866_v2, 0  ;;  %vm1871_vm10 = vcmp.eq.s32.totalorder %v1866_v2, 2  ;;  %v3529_v60 = vsel %vm3522_vm12, %v3525_v47, %v3528_v4  ;;  %vm1867_vm8 = vcmp.lt.s32.totalorder %v1866_v2, 2 }
 0x248   : > { %v2464_v59 = vclz %v6277_v28  ;;  %v1870_v34 = vsel %vm1868_vm11, %v8532_v50, %v1869_v41  ;;  %v1873_v18 = vsel %vm1871_vm10, %v1872_v40, %v8726_v17  ;;  %6999 = vsinq.f32 %v8876_v63 }
 0x249   : > { %v1874_v11 = vsel %vm1867_vm8, %v1870_v34, %v1873_v18  ;;  %v3530_v57 = vsel %vm1864_vm13, nan, %v3529_v60  ;;  %vm10075_vm0 = vcmp.lt.s32.totalorder %v10074_v1, 0  ;;  %v2452_v3 = vadd.s32 %v8951_v20, %v8946_v44  ;;  %v10080_v34 = vld [vmem:[#allocation35_spill] sm:$0xff] }
 0x24a   : > { %v1963_v6 = vsel %vm10075_vm0, %v1962_v0, %v10073_v52  ;;  %v6278_v14 = vadd.s32 4294967294, %v2464_v59  ;;  %v1875_v19 = vsel %vm1864_vm13, nan, %v1874_v11  ;;  %v2580_v63 = vand.u32 2147483647, %v9038_v21 }
 0x24b   : > { %v1965_v17 = vsel %vm8390_vm9, 0, %v1963_v6  ;;  %v2582_v23 = vcvt.s32.f32 %v9029_v39  ;;  %v4266_v13 = vsel %vm8322_vm1, %v1875_v19, %v3530_v57  ;;  %v1973_v44 = vxor.u32 2147483648, %v8527_v9 }
 0x24c   : > { %v1969_v24 = vadd.s32 3, %v1965_v17  ;;  %vm6279_vm2 = vcmp.lt.s32.totalorder %v6278_v14, 0  ;;  %6638 = vmatprep.mubr.msk.f32.mxu0 %vm10072_vm7, %v4266_v13  ;;  %v1976_v20 = vxor.u32 2147483648, %v8522_v5  ;;  %v3624_v38 = vand.u32 3, %v1965_v17 }
 0x24d   : > { %v2467_v46 = vsel %vm6279_vm2, 0, %v6278_v14  ;;  %vm1968_vm13 = vweird.f32 %v10074_v1  ;;  %v2066_v55 = vsub.s32 4, %v10077_v26  ;;  %vm10078_vm8 = vcmp.lt.s32.totalorder %v8240_v15, 0 }
 0x24e   : > { %v1970_v33 = vand.u32 3, %v1969_v24  ;;  %v2468_v53 = vsub.s32 32, %v2467_v46  ;;  %v2469_v25 = vshll.u32 %v9020_v56, %v2467_v46  ;;  %v2472_v41 = vsub.s32 4294967266, %v2467_v46 }
 0x24f   : > { %vm3625_vm9 = vcmp.lt.s32.totalorder %v3624_v38, 2  ;;  %vm3626_vm11 = vcmp.eq.s32.totalorder %v3624_v38, 0  ;;  %vm3629_vm10 = vcmp.eq.s32.totalorder %v3624_v38, 2  ;;  %v2067_v56 = vsel %vm10078_vm8, %v2066_v55, %v10077_v26 }
 0x250   : > { %vm1971_vm15 = vcmp.lt.s32.totalorder %v1970_v33, 2  ;;  %vm1972_vm5 = vcmp.eq.s32.totalorder %v1970_v33, 0  ;;  %vm1975_vm12 = vcmp.eq.s32.totalorder %v1970_v33, 2  ;;  %v2470_v27 = vshrl.u32 %v2452_v3, %v2468_v53  ;;  %v9066_v61 = vpop.eup %6997 }
 0x251   : > { %v2473_v29 = vadd.s32 127, %v2472_v41  ;;  %v1974_v40 = vsel %vm1972_vm5, %v8522_v5, %v1973_v44  ;;  %v1977_v37 = vsel %vm1975_vm12, %v1976_v20, %v8527_v9  ;;  %v3628_v52 = vsel %vm3626_vm11, %v8522_v5, %v1973_v44 }
 0x252   : > { %v1978_v2 = vsel %vm1971_vm15, %v1974_v40, %v1977_v37  ;;  %v2471_v0 = vor.u32 %v2470_v27, %v2469_v25  ;;  %v3631_v4 = vsel %vm3629_vm10, %v1976_v20, %v8527_v9  ;;  %vm2072_vm0 = vweird.f32 %v8240_v15 }
 0x253   : > { %v2474_v28 = vshll.u32 %v2473_v29, 23  ;;  %v1979_v47 = vsel %vm1968_vm13, nan, %v1978_v2  ;;  %vm2398_vm2 = vcmp.lt.s32.totalorder %v8809_v43, 0  ;;  %v3632_v60 = vsel %vm3625_vm9, %v3628_v52, %v3631_v4 }
 0x254   : > { %vm10079_vm7 = vnez %v10018_v30  ;;  %v2077_v59 = vxor.u32 2147483648, %v8844_v42  ;;  %v2170_v18 = vsub.s32 4, %v10080_v34  ;;  %vm9084_vm15 = vcmp.le.f32.partialorder %v2396_v45, 0.7853982 }
 0x255   : > { %v2069_v5 = vsel %vm10079_vm7, 0, %v2067_v56  ;;  %v2475_v9 = vor.u32 4788187, %v2474_v28  ;;  %v3633_v57 = vsel %vm1968_vm13, nan, %v3632_v60  ;;  %v2080_v3 = vxor.u32 2147483648, %v8746_v51  ;;  %v9096_v45 = vpop.eup %6999 }
 0x256   : > { %v2073_v6 = vadd.s32 3, %v2069_v5  ;;  %v2478_v14 = vcvt.s32.f32 %v2471_v0  ;;  %v4267_v30 = vsel %vm8322_vm1, %v1979_v47, %v3633_v57  ;;  %v3727_v19 = vand.u32 3, %v2069_v5 }
 0x257   : > { %vm10083_vm9 = vcmp.lt.s32.totalorder %v8236_v48, 0  ;;  %v2476_v17 = vand.u32 2147483647, %v2475_v9  ;;  %vm10084_vm5 = vcmask 195584   ;;  %vm10085_vm13 = vnez %v10014_v35 }
 0x258   : > { %v2171_v50 = vsel %vm10083_vm9, %v2170_v18, %v10080_v34  ;;  %6639 = vmatmul.mubr.msk.f32.gmra.mxu0 %vm10084_vm5, %v4267_v30  ;;  %v2074_v13 = vand.u32 3, %v2073_v6  ;;  %v2181_v24 = vxor.u32 2147483648, %v8741_v22  ;;  %vm3728_vm12 = vcmp.lt.s32.totalorder %v3727_v19, 2 }
 0x259   : > { %v2173_v1 = vsel %vm10085_vm13, 0, %v2171_v50  ;;  %vm3729_vm11 = vcmp.eq.s32.totalorder %v3727_v19, 0  ;;  %vm3732_vm10 = vcmp.eq.s32.totalorder %v3727_v19, 2  ;;  %vm2176_vm8 = vweird.f32 %v8236_v48 }
 0x25a   : > { %v2177_v44 = vadd.s32 3, %v2173_v1  ;;  %v2479_v20 = vmul.f32 %v2478_v14, %v2476_v17  ;;  %vm2075_vm7 = vcmp.lt.s32.totalorder %v2074_v13, 2  ;;  %vm2076_vm9 = vcmp.eq.s32.totalorder %v2074_v13, 0 }
 0x25b   : > { %vm2079_vm14 = vcmp.eq.s32.totalorder %v2074_v13, 2  ;;  %v2078_v38 = vsel %vm2076_vm9, %v8746_v51, %v2077_v59  ;;  %v3731_v33 = vsel %vm3729_vm11, %v8746_v51, %v2077_v59  ;;  %v3734_v35 = vsel %vm3732_vm10, %v2080_v3, %v8844_v42 }
 0x25c   : > { %v2081_v46 = vsel %vm2079_vm14, %v2080_v3, %v8844_v42  ;;  %v2480_v26 = vxor.u32 2147483648, %v2479_v20  ;;  %v3735_v53 = vsel %vm3728_vm12, %v3731_v33, %v3734_v35  ;;  %v2178_v25 = vand.u32 3, %v2177_v44 }
 0x25d   : > { %v2082_v55 = vsel %vm2075_vm7, %v2078_v38, %v2081_v46  ;;  %v3736_v27 = vsel %vm2072_vm0, nan, %v3735_v53  ;;  %v2184_v29 = vxor.u32 2147483648, %v8732_v7  ;;  %v3830_v40 = vand.u32 3, %v2173_v1 }
 0x25e   : > { %v2083_v41 = vsel %vm2072_vm0, nan, %v2082_v55  ;;  %v2481_v37 = vsel %vm2398_vm2, %v2480_v26, %v2479_v20  ;;  %vm2179_vm14 = vcmp.lt.s32.totalorder %v2178_v25, 2  ;;  %vm2180_vm5 = vcmp.eq.s32.totalorder %v2178_v25, 0 }
 0x25f   : > { %v4268_v51 = vsel %vm8322_vm1, %v2083_v41, %v3736_v27  ;;  %v2484_v42 = vsel %vm9084_vm15, %v8809_v43, %v2481_v37  ;;  %vm10086_vm13 = vcmask 195584   ;;  %v2182_v15 = vsel %vm2180_vm5, %v8732_v7, %v2181_v24 }
 0x260   : > { %6641 = vmatprep.mubr.msk.f32.mxu0 %vm10086_vm13, %v4268_v51  ;;  %vm2183_vm0 = vcmp.eq.s32.totalorder %v2178_v25, 2  ;;  %vm3831_vm12 = vcmp.lt.s32.totalorder %v3830_v40, 2  ;;  %7001 = vcosq.f32 %v2484_v42  ;;  %vm3832_vm11 = vcmp.eq.s32.totalorder %v3830_v40, 0 }
 0x261   : > { %v2185_v2 = vsel %vm2183_vm0, %v2184_v29, %v8741_v22  ;;  %vm3835_vm10 = vcmp.eq.s32.totalorder %v3830_v40, 2  ;;  %7003 = vsinq.f32 %v2484_v42  ;;  %v3834_v56 = vsel %vm3832_vm11, %v8732_v7, %v2181_v24 }
 0x262   : > { %v2186_v52 = vsel %vm2179_vm14, %v2182_v15, %v2185_v2  ;;  %v3837_v0 = vsel %vm3835_vm10, %v2184_v29, %v8741_v22  ;;  %v2274_v4 = vsub.s32 4, %v8701_v58  ;;  %v2583_v60 = vmul.f32 %v2582_v23, %v2580_v63 }
 0x263   : > { %v2187_v28 = vsel %vm2176_vm8, nan, %v2186_v52  ;;  %v3838_v47 = vsel %vm3831_vm12, %v3834_v56, %v3837_v0  ;;  %v2285_v59 = vxor.u32 2147483648, %v9096_v45  ;;  %v10087_v7 = vand.u32 2147483647, %v10054_v49 }
 0x264   : > { %v3839_v5 = vsel %vm2176_vm8, nan, %v3838_v47  ;;  %v2275_v21 = vsel %vm2190_vm6, %v2274_v4, %v8701_v58  ;;  %v2378_v39 = vsub.s32 4, %v8601_v10  ;;  %vm10090_vm8 = vmmov %vm10086_vm13  ;;  %v2288_v23 = vxor.u32 2147483648, %v9066_v61 }
 0x265   : > { %vm9136_vm7 = vcmp.le.f32.partialorder %v10087_v7, 0.7853982  ;;  %v4269_v34 = vsel %vm8322_vm1, %v2187_v28, %v3839_v5  ;;  %v2277_v63 = vsel %vm8834_vm4, 0, %v2275_v21  ;;  %v2482_v18 = vsub.s32 4, %v9004_v8 }
 0x266   : > { %v2380_v48 = vsel %vm9136_vm7, %v10054_v49, %v8871_v32  ;;  %6642 = vmatmul.mubr.msk.f32.gmra.mxu0 %vm10090_vm8, %v4269_v34  ;;  %v2281_v9 = vadd.s32 3, %v2277_v63  ;;  %v3933_v57 = vand.u32 3, %v2277_v63  ;;  %v2379_v58 = vsel %vm2294_vm3, %v2378_v39, %v8601_v10 }
 0x267   : > { %7005 = vcosq.f32 %v2380_v48  ;;  %vm2502_vm6 = vcmp.lt.s32.totalorder %v8776_v36, 0  ;;  %v2584_v32 = vxor.u32 2147483648, %v2583_v60  ;;  %vm2280_vm9 = vweird.f32 %v8444_v16 }
 0x268   : > { %7007 = vsinq.f32 %v2380_v48  ;;  %v2381_v12 = vsel %vm9136_vm7, 0, %v2379_v58  ;;  %v2282_v6 = vand.u32 3, %v2281_v9  ;;  %vm3934_vm4 = vcmp.lt.s32.totalorder %v3933_v57, 2 }
 0x269   : > { %vm3935_vm14 = vcmp.eq.s32.totalorder %v3933_v57, 0  ;;  %vm3938_vm5 = vcmp.eq.s32.totalorder %v3933_v57, 2  ;;  %v2385_v30 = vadd.s32 3, %v2381_v12  ;;  %v9164_v19 = vand.u32 3, %v2381_v12 }
 0x26a   : > { %v3937_v3 = vsel %vm3935_vm14, %v9066_v61, %v2285_v59  ;;  %v3940_v14 = vsel %vm3938_vm5, %v2288_v23, %v9096_v45  ;;  %vm2284_vm3 = vcmp.eq.s32.totalorder %v2282_v6, 0  ;;  %vm2287_vm13 = vcmp.eq.s32.totalorder %v2282_v6, 2 }
 0x26b   : > { %v3941_v10 = vsel %vm3934_vm4, %v3937_v3, %v3940_v14  ;;  %v2483_v50 = vsel %vm2398_vm2, %v2482_v18, %v9004_v8  ;;  %vm2283_vm0 = vcmp.lt.s32.totalorder %v2282_v6, 2  ;;  %v2286_v17 = vsel %vm2284_vm3, %v9066_v61, %v2285_v59 }
 0x26c   : > { %v2289_v13 = vsel %vm2287_vm13, %v2288_v23, %v9096_v45  ;;  %v3942_v1 = vsel %vm2280_vm9, nan, %v3941_v10  ;;  %v2585_v24 = vsel %vm2502_vm6, %v2584_v32, %v2583_v60  ;;  %v2386_v20 = vand.u32 3, %v2385_v30  ;;  %v619_v30 = vld [vmem:[%s8858_s23] sm:$0xff]  ;;  %v620_v10 = vld [vmem:[%s8858_s23 + $0x8] sm:$0xff] }
 0x26d   : > { %v2290_v44 = vsel %vm2283_vm0, %v2286_v17, %v2289_v13  ;;  %vm2488_vm12 = vweird.f32 %v8809_v43  ;;  %v7002_v38 = vpop.eup %7001  ;;  %vm4038_vm2 = vcmp.eq.s32.totalorder %v9164_v19, 0  ;;  %vm4041_vm11 = vcmp.eq.s32.totalorder %v9164_v19, 2  ;;  %v623_v17 = vld [vmem:[%s8858_s23 + $0x20] sm:$0xff]  ;;  %v624_v13 = vld [vmem:[%s8858_s23 + $0x28] sm:$0xff] }
 0x26e   : > { %v2291_v46 = vsel %vm2280_vm9, nan, %v2290_v44  ;;  %vm9182_vm10 = vcmp.le.f32.partialorder %v2500_v31, 0.7853982  ;;  %v7004_v61 = vpop.eup %7003  ;;  %vm4037_vm7 = vcmp.lt.s32.totalorder %v9164_v19, 2  ;;  %v2485_v16 = vsel %vm9084_vm15, 0, %v2483_v50  ;;  %v621_v50 = vld [vmem:[%s8858_s23 + $0x10] sm:$0xff] }
 0x26f   : > { %v4270_v45 = vsel %vm8322_vm1, %v2291_v46, %v3942_v1  ;;  %v2496_v33 = vxor.u32 2147483648, %v7002_v38  ;;  %v2586_v35 = vsub.s32 4, %v8921_v62  ;;  %v2489_v26 = vadd.s32 3, %v2485_v16  ;;  %v4703_v1 = vld [vmem:[%s9810_s7 + $0x10] sm:$0xff]  ;;  %v4701_v44 = vld [vmem:[%s9810_s7] sm:$0xff] }
 0x270   : > { %6644 = vmatprep.mubr.msk.f32.mxu0 %vm10090_vm8, %v4270_v45  ;;  %v2493_v55 = vxor.u32 2147483648, %v7004_v61  ;;  %v4139_v31 = vand.u32 3, %v2485_v16  ;;  %v2588_v53 = vsel %vm9182_vm10, %v8776_v36, %v2585_v24  ;;  %vm2388_vm9 = vcmp.eq.s32.totalorder %v2386_v20, 0  ;;  %6678 = vmatprep.subr.mxu1 %v4703_v1  ;;  %v4702_v24 = vld [vmem:[%s9810_s7 + $0x8] sm:$0xff] }
 0x271   : > { %vm2391_vm4 = vcmp.eq.s32.totalorder %v2386_v20, 2  ;;  %v2587_v25 = vsel %vm2502_vm6, %v2586_v35, %v8921_v62  ;;  %7009 = vcosq.f32 %v2588_v53  ;;  %v2490_v11 = vand.u32 3, %v2489_v26  ;;  %6679 = vmatpush3.msra.mxu1 %v4703_v1 }
 0x272   : > { %vm4140_vm15 = vcmp.lt.s32.totalorder %v4139_v31, 2  ;;  %vm4141_vm14 = vcmp.eq.s32.totalorder %v4139_v31, 0  ;;  %vm4144_vm5 = vcmp.eq.s32.totalorder %v4139_v31, 2  ;;  %v2589_v40 = vsel %vm9182_vm10, 0, %v2587_v25  ;;  %6680 = vmatprep.subr.mxu1 %v4702_v24 }
 0x273   : > { %v4143_v27 = vsel %vm4141_vm14, %v7002_v38, %v2493_v55  ;;  %v4146_v29 = vsel %vm4144_vm5, %v2496_v33, %v7004_v61  ;;  %7011 = vsinq.f32 %v2588_v53  ;;  %vm2491_vm3 = vcmp.lt.s32.totalorder %v2490_v11, 2  ;;  %6681 = vmatpush3.msra.mxu1 %v4702_v24 }
 0x274   : > { %v7006_v41 = vpop.eup %7005  ;;  %vm2492_vm13 = vcmp.eq.s32.totalorder %v2490_v11, 0  ;;  %vm2495_vm0 = vcmp.eq.s32.totalorder %v2490_v11, 2  ;;  %v4147_v2 = vsel %vm4140_vm15, %v4143_v27, %v4146_v29  ;;  %vm2387_vm6 = vcmp.lt.s32.totalorder %v2386_v20, 2  ;;  %6682 = vmatprep.subr.mxu1 %v4701_v44 }
 0x275   : > { %v7008_v37 = vpop.eup %7007  ;;  %v2392_v51 = vxor.u32 2147483648, %v7006_v41  ;;  %v2494_v15 = vsel %vm2492_vm13, %v7002_v38, %v2493_v55  ;;  %v2497_v62 = vsel %vm2495_vm0, %v2496_v33, %v7004_v61  ;;  %v4148_v28 = vsel %vm2488_vm12, nan, %v4147_v2  ;;  %6683 = vmatpush3.msra.mxu1 %v4701_v44 }
 0x276   : > { %v2389_v42 = vxor.u32 2147483648, %v7008_v37  ;;  %v2498_v0 = vsel %vm2491_vm3, %v2494_v15, %v2497_v62  ;;  %vm2384_vm10 = vweird.f32 %v10054_v49  ;;  %v2593_v7 = vadd.s32 3, %v2589_v40  ;;  %v9266_v62 = vld [vmem:[%s9809_s6] ss:$0 sm:$0xff] }
 0x277   : > { %v2393_v52 = vsel %vm2391_vm4, %v2392_v51, %v7008_v37  ;;  %v4043_v56 = vsel %vm4041_vm11, %v2392_v51, %v7008_v37  ;;  %v2499_v60 = vsel %vm2488_vm12, nan, %v2498_v0  ;;  %vm10093_vm11 = vmmov %vm10090_vm8  ;;  %v4242_v48 = vand.u32 3, %v2589_v40 }
 0x278   : > { %v2390_v47 = vsel %vm2388_vm9, %v7006_v41, %v2389_v42  ;;  %v4040_v4 = vsel %vm4038_vm2, %v7006_v41, %v2389_v42  ;;  %v4272_v21 = vsel %vm8322_vm1, %v2499_v60, %v4148_v28  ;;  %vm10094_vm2 = vmmov %vm10090_vm8  ;;  %v2594_v43 = vand.u32 3, %v2593_v7 }
 0x279   : > { %v2394_v5 = vsel %vm2387_vm6, %v2390_v47, %v2393_v52  ;;  %v4044_v59 = vsel %vm4037_vm7, %v4040_v4, %v4043_v56  ;;  %vm4247_vm7 = vcmp.eq.s32.totalorder %v4242_v48, 2  ;;  %vm4244_vm9 = vcmp.eq.s32.totalorder %v4242_v48, 0  ;;  %vm10095_vm5 = vmmov %vm10094_vm2 }
 0x27a   : > { %v2395_v22 = vsel %vm2384_vm10, nan, %v2394_v5  ;;  %v4045_v34 = vsel %vm2384_vm10, nan, %v4044_v59  ;;  %vm2599_vm12 = vcmp.eq.s32.totalorder %v2594_v43, 2  ;;  %vm2596_vm8 = vcmp.eq.s32.totalorder %v2594_v43, 0 }
 0x27b   : > { %v4271_v39 = vsel %vm8322_vm1, %v2395_v22, %v4045_v34  ;;  %vm2595_vm4 = vcmp.lt.s32.totalorder %v2594_v43, 2  ;;  %vm4243_vm15 = vcmp.lt.s32.totalorder %v4242_v48, 2  ;;  %vm2592_vm14 = vweird.f32 %v8776_v36  ;;  %v622_v36 = vld [vmem:[%s8858_s23 + $0x18] sm:$0xff] }
 0x27c   : > { %6645 = vmatmul.mubr.msk.f32.gmra.mxu0 %vm10093_vm11, %v4271_v39  ;;  %vm10096_vm3 = vcmask 64512  }
 0x27d   : > { %6647 = vmatprep.mubr.msk.f32.mxu0 %vm10094_vm2, %v4272_v21  ;;  %vm10097_vm13 = vmmov %vm10096_vm3 }
 0x27e   : > { %v7010_v49 = vpop.eup %7009  ;;  %vm10098_vm0 = vmmov %vm10096_vm3 }
 0x27f   : > { %v2600_v63 = vxor.u32 2147483648, %v7010_v49  ;;  %vm10099_vm6 = vmmov %vm10098_vm0 }
 0x280   : > { %v7012_v23 = vpop.eup %7011  ;;  %vm10100_vm10 = vmmov %vm10098_vm0 }
 0x281   : > { %v2597_v18 = vxor.u32 2147483648, %v7012_v23  ;;  %v2601_v9 = vsel %vm2599_vm12, %v2600_v63, %v7012_v23  ;;  %v4249_v57 = vsel %vm4247_vm7, %v2600_v63, %v7012_v23  ;;  %vm10101_vm11 = vmmov %vm10098_vm0 }
 0x283   : > { %v2598_v58 = vsel %vm2596_vm8, %v7010_v49, %v2597_v18  ;;  %v4246_v32 = vsel %vm4244_vm9, %v7010_v49, %v2597_v18  ;;  %vm6124_vm9 = vcmask 31744  }
 0x284   : > { %v2602_v12 = vsel %vm2595_vm4, %v2598_v58, %v2601_v9  ;;  %v4250_v6 = vsel %vm4243_vm15, %v4246_v32, %v4249_v57 }
 0x285   : > { %v2603_v3 = vsel %vm2592_vm14, nan, %v2602_v12  ;;  %v4251_v14 = vsel %vm2592_vm14, nan, %v4250_v6 }
 0x286   : > { %v4273_v19 = vsel %vm8322_vm1, %v2603_v3, %v4251_v14  ;;  %vm4712_vm1 = vcmask 261120  }
 0x287   : > { %6648 = vmatmul.mubr.msk.f32.gmra.mxu0 %vm10095_vm5, %v4273_v19 }
 0x288   : > { %6652 = vmatprep.mubr.msk.f32.mxu0 %vm10096_vm3, %v619_v30 }
 0x28b   : > { %6653 = vmatmul.mubr.msk.f32.vlgmr.msra.gmra.mxu0 %vm10097_vm13, %v620_v10 }
 0x28c   : > { %6655 = vmatprep.mubr.msk.f32.mxu0 %vm10098_vm0, %v621_v50 }
 0x28f   : > { %6656 = vmatmul.mubr.msk.f32.gmra.mxu0 %vm10099_vm6, %v622_v36 }
 0x290   : > { %6658 = vmatprep.mubr.msk.f32.mxu0 %vm10100_vm10, %v623_v17 }
 0x293   : > { %6659 = vmatmul.mubr.msk.f32.gmra.mxu0 %vm10101_vm11, %v624_v13 }
 0x2ae   : > { %v6628_v20 = vpop.f32.mrf.mxu0 }
 0x2b0   : > { %v4389_v38 = vpop.f32.mrf.mxu0 }
 0x2c2   : > { %v6631_v46 = vpop.f32.mrf.mxu0 }
 0x2c4   : > { %v4399_v8 = vpop.f32.mrf.mxu0 }
 0x2d7   : > { %v6634_v61 = vpop.f32.mrf.mxu0 }
 0x2d9   : > { %v4409_v45 = vpop.f32.mrf.mxu0 }
 0x2e7   : > { %v6663_v11 = vpop.f32.mrf.mxu1 }
 0x2e9   : > { %v4613_v29 = vpop.f32.mrf.mxu1 }
 0x2eb   : > { %v6666_v37 = vpop.f32.mrf.mxu1 }
 0x2ed   : > { %v4623_v52 = vpop.f32.mrf.mxu1 }
 0x2ef   : > { %v6669_v4 = vpop.f32.mrf.mxu1 }
 0x2f1   : > { %v4633_v48 = vpop.f32.mrf.mxu1 }
 0x2f3   : > { %v6672_v18 = vpop.f32.mrf.mxu1 }
 0x2f5   : > { %v4643_v30 = vpop.f32.mrf.mxu1 }
 0x2f7   : > { %v6675_v17 = vpop.f32.mrf.mxu1 }
 0x305   : > { %v6637_v16 = vpop.f32.mrf.mxu0 }
 0x306   : > { %v9294_v23 = vadd.f32 %v6663_v11, %v6637_v16 }
 0x307   : > { %v4419_v33 = vpop.f32.mrf.mxu0 }
 0x308   : > { %v9288_v39 = vadd.f32 %v4613_v29, %v4419_v33  ;;  %v4676_v3 = vadd.f32 %v9266_v62, %v9294_v23  ;;  %v4925_v29 = vld [vmem:[%s9812_s9 + $0x18] sm:$0xff] }
 0x309   : > { %6708 = vmatprep.subr.mxu0 %v4925_v29 }
 0x30a   : > { %v4675_v32 = vadd.f32 %v9266_v62, %v9288_v39  ;;  %v4692_v13 = vmax.f32 %v4676_v3, 0.0  ;;  %6709 = vmatpush3.msra.mxu0 %v4925_v29 }
 0x30c   : > { %v4691_v10 = vmax.f32 %v4675_v32, 0.0 }
 0x318   : > { %v6640_v35 = vpop.f32.mrf.mxu0 }
 0x319   : > { %v9312_v14 = vadd.f32 %v6666_v37, %v6640_v35  ;;  %v4923_v37 = vld [vmem:[%s9812_s9 + $0x8] sm:$0xff] }
 0x31a   : > { %v4429_v26 = vpop.f32.mrf.mxu0 }
 0x31b   : > { %v9306_v12 = vadd.f32 %v4623_v52, %v4429_v26  ;;  %v4678_v54 = vadd.f32 %v9266_v62, %v9312_v14 }
 0x31d   : > { %v4677_v50 = vadd.f32 %v9266_v62, %v9306_v12 }
 0x31f   : > { %v4693_v24 = vmax.f32 %v4677_v50, 0.0 }
 0x326   : > { %v9249_v55 = vpop.f32.mrf.mxu0 }
 0x327   : > { %v4639_v1 = vadd.f32 %v6669_v4, %v9249_v55 }
 0x328   : > { %v4439_v31 = vpop.f32.mrf.mxu0 }
 0x329   : > { %v4634_v36 = vadd.f32 %v4633_v48, %v4439_v31 }
 0x32b   : > { %v4679_v44 = vadd.f32 %v9266_v62, %v4634_v36 }
 0x33c   : > { %v9251_v53 = vpop.f32.mrf.mxu0 }
 0x33e   : > { %v9253_v25 = vpop.f32.mrf.mxu0 }
 0x347   : > { %v9255_v41 = vpop.f32.mrf.mxu0 }
 0x348   : > { %v4659_v55 = vadd.f32 %v6675_v17, %v9255_v41 }
 0x349   : > { %v9257_v27 = vpop.f32.mrf.mxu0 }
 0x34a   : > { %v4684_v11 = vadd.f32 %v9266_v62, %v4659_v55 }
 0x34b   : > { %v6654_v40 = vpop.f32.mrf.mxu0 }
 0x34c   : > { %v9259_v51 = vadd.f32 %v6654_v40, %v6628_v20  ;;  %v4644_v20 = vadd.f32 %v4643_v30, %v9253_v25  ;;  %v4700_v41 = vmax.f32 %v4684_v11, 0.0  ;;  %v4924_v40 = vld [vmem:[%s9812_s9 + $0x10] sm:$0xff] }
 0x34d   : > { %v4583_v42 = vpop.f32.mrf.mxu0  ;;  %6710 = vmatprep.subr.mxu0 %v4924_v40 }
 0x34e   : > { %v9261_v15 = vadd.f32 %v4583_v42, %v4389_v38  ;;  %v4670_v56 = vadd.f32 %v9266_v62, %v9259_v51  ;;  %v4653_v38 = vpop.f32.mrf.mxu1  ;;  %v4681_v16 = vadd.f32 %v9266_v62, %v4644_v20  ;;  %6711 = vmatpush3.msra.mxu0 %v4924_v40  ;;  %v5225_v42 = vld [vmem:[%s9814_s11 + $0x18] sm:$0xff] }
 0x34f   : > { %v6657_v2 = vpop.f32.mrf.mxu0  ;;  %v4654_v33 = vadd.f32 %v4653_v38, %v9257_v27  ;;  %6712 = vmatprep.subr.mxu0 %v4923_v37  ;;  %6740 = vmatprep.subr.mxu1 %v5225_v42 }
 0x350   : > { %v4669_v0 = vadd.f32 %v9266_v62, %v9261_v15  ;;  %v9272_v28 = vadd.f32 %v6657_v2, %v6631_v46  ;;  %4943 = vrot.lane.b32.xlu1 %v9261_v15, %s7126_s22  ;;  %v4686_v7 = vmax.f32 %v4670_v56, 0.0  ;;  %v4694_v46 = vmax.f32 %v4678_v54, 0.0  ;;  %6713 = vmatpush3.msra.mxu0 %v4923_v37  ;;  %v6381_v2 = vld [vmem:[%s9811_s8] ss:$0 sm:$0xff] }
 0x351   : > { %v4593_v47 = vpop.f32.mrf.mxu0  ;;  %v4697_v31 = vmax.f32 %v4681_v16, 0.0 }
 0x352   : > { %v4685_v60 = vmax.f32 %v4669_v0, 0.0  ;;  %v9276_v5 = vadd.f32 %v4593_v47, %v4399_v8  ;;  %v4672_v22 = vadd.f32 %v9266_v62, %v9272_v28  ;;  %v4680_v8 = vadd.f32 %v9266_v62, %v4639_v1 }
 0x353   : > { %v6660_v59 = vpop.f32.mrf.mxu0 }
 0x354   : > { %v4671_v34 = vadd.f32 %v9266_v62, %v9276_v5  ;;  %v9282_v21 = vadd.f32 %v6660_v59, %v6634_v61  ;;  %4947 = vrot.lane.b32.xlu0 %v9276_v5, %s7126_s22  ;;  %4945 = vrot.lane.b32.xlu1 %v9259_v51, %s7126_s22  ;;  %v4688_v9 = vmax.f32 %v4672_v22, 0.0  ;;  %v4649_v61 = vadd.f32 %v6672_v18, %v9251_v53 }
 0x355   : > { %6684 = vmatprep.mubr.msk.f32.mxu1 %vm4712_vm1, %v4685_v60  ;;  %v4603_v43 = vpop.f32.mrf.mxu0  ;;  %v4696_v35 = vmax.f32 %v4680_v8, 0.0  ;;  %v4683_v53 = vadd.f32 %v9266_v62, %v4654_v33 }
 0x356   : > { %v4687_v49 = vmax.f32 %v4671_v34, 0.0  ;;  %v9291_v63 = vadd.f32 %v4603_v43, %v4409_v45  ;;  %6685 = vmatmul.mubr.msk.f32.vlgmr.msra.gmra.mxu1 %vm4712_vm1, %v4686_v7  ;;  %v4674_v57 = vadd.f32 %v9266_v62, %v9282_v21  ;;  %v4695_v45 = vmax.f32 %v4679_v44, 0.0 }
 0x357   : > { %v4682_v26 = vadd.f32 %v9266_v62, %v4649_v61  ;;  %v4699_v27 = vmax.f32 %v4683_v53, 0.0  ;;  %6741 = vmatpush3.msra.mxu1 %v5225_v42  ;;  %v5443_v53 = vld [vmem:[%s9816_s13 + $0x8] sm:$0xff]  ;;  %v9425_v42 = vld [vmem:[%s9813_s10] ss:$0 sm:$0xff] }
 0x358   : > { %v4673_v58 = vadd.f32 %v9266_v62, %v9291_v63  ;;  %4951 = vrot.lane.b32.xlu0 %v9291_v63, %s7126_s22  ;;  %4949 = vrot.lane.b32.xlu1 %v9272_v28, %s7126_s22  ;;  %v4690_v19 = vmax.f32 %v4674_v57, 0.0  ;;  %v5223_v62 = vld [vmem:[%s9814_s11 + $0x8] sm:$0xff] }
 0x359   : > { %6687 = vmatprep.mubr.msk.f32.mxu1 %vm4712_vm1, %v4687_v49  ;;  %v4698_v25 = vmax.f32 %v4682_v26, 0.0  ;;  %v5222_v26 = vld [vmem:[%s9814_s11] sm:$0xff] }
 0x35a   : > { %v4689_v6 = vmax.f32 %v4673_v58, 0.0  ;;  %6688 = vmatmul.mubr.msk.f32.gmra.mxu1 %vm4712_vm1, %v4688_v9 }
 0x35c   : > { %4955 = vrot.lane.b32.xlu0 %v9288_v39, %s7126_s22  ;;  %4953 = vrot.lane.b32.xlu1 %v9282_v21, %s7126_s22 }
 0x35d   : > { %6690 = vmatprep.mubr.msk.f32.mxu1 %vm4712_vm1, %v4689_v6 }
 0x35e   : > { %6691 = vmatmul.mubr.msk.f32.gmra.mxu1 %vm4712_vm1, %v4690_v19 }
 0x35f   : > { %6693 = vmatprep.mubr.msk.f32.mxu1 %vm4712_vm1, %v4691_v10 }
 0x360   : > { %4959 = vrot.lane.b32.xlu0 %v9306_v12, %s7126_s22  ;;  %4957 = vrot.lane.b32.xlu1 %v9294_v23, %s7126_s22 }
 0x362   : > { %6694 = vmatmul.mubr.msk.f32.gmra.mxu1 %vm4712_vm1, %v4692_v13 }
 0x363   : > { %6696 = vmatprep.mubr.msk.f32.mxu1 %vm4712_vm1, %v4693_v24 }
 0x364   : > { %4963 = vrot.lane.b32.xlu0 %v4634_v36, %s7126_s22  ;;  %4961 = vrot.lane.b32.xlu1 %v9312_v14, %s7126_s22 }
 0x366   : > { %6697 = vmatmul.mubr.msk.f32.gmra.mxu1 %vm4712_vm1, %v4694_v46 }
 0x367   : > { %6699 = vmatprep.mubr.msk.f32.mxu1 %vm4712_vm1, %v4695_v45 }
 0x368   : > { %4967 = vrot.lane.b32.xlu0 %v4644_v20, %s7126_s22  ;;  %4965 = vrot.lane.b32.xlu1 %v4639_v1, %s7126_s22 }
 0x36a   : > { %6700 = vmatmul.mubr.msk.f32.gmra.mxu1 %vm4712_vm1, %v4696_v35 }
 0x36b   : > { %6702 = vmatprep.mubr.msk.f32.mxu1 %vm4712_vm1, %v4697_v31  ;;  %v5444_v31 = vld [vmem:[%s9816_s13 + $0x10] sm:$0xff] }
 0x36c   : > { %4971 = vrot.lane.b32.xlu0 %v4654_v33, %s7126_s22  ;;  %4969 = vrot.lane.b32.xlu1 %v4649_v61, %s7126_s22 }
 0x36e   : > { %6703 = vmatmul.mubr.msk.f32.gmra.mxu1 %vm4712_vm1, %v4698_v25  ;;  %v5442_v25 = vld [vmem:[%s9816_s13] sm:$0xff] }
 0x36f   : > { %6705 = vmatprep.mubr.msk.f32.mxu1 %vm4712_vm1, %v4699_v27 }
 0x370   : > { %5447 = vrot.lane.b32.xlu0 %v9261_v15, %s7127_s2  ;;  %4973 = vrot.lane.b32.xlu1 %v4659_v55, %s7126_s22  ;;  %v5224_v15 = vld [vmem:[%s9814_s11 + $0x10] sm:$0xff] }
 0x371   : > { %6742 = vmatprep.subr.mxu1 %v5224_v15 }
 0x372   : > { %6706 = vmatmul.mubr.msk.f32.gmra.mxu1 %vm4712_vm1, %v4700_v41 }
 0x373   : > { %6743 = vmatpush3.msra.mxu1 %v5224_v15 }
 0x374   : > { %5451 = vrot.lane.b32.xlu0 %v9276_v5, %s7127_s2  ;;  %5449 = vrot.lane.b32.xlu1 %v9259_v51, %s7127_s2  ;;  %v4922_v51 = vld [vmem:[%s9812_s9] sm:$0xff] }
 0x375   : > { %6714 = vmatprep.subr.mxu0 %v4922_v51  ;;  %6744 = vmatprep.subr.mxu1 %v5223_v62 }
 0x376   : > { %6715 = vmatpush3.msra.mxu0 %v4922_v51  ;;  %6745 = vmatpush3.msra.mxu1 %v5223_v62 }
 0x377   : > { %6746 = vmatprep.subr.mxu1 %v5222_v26 }
 0x378   : > { %5455 = vrot.lane.b32.xlu0 %v9291_v63, %s7127_s2  ;;  %5453 = vrot.lane.b32.xlu1 %v9272_v28, %s7127_s2 }
 0x379   : > { %6747 = vmatpush3.msra.mxu1 %v5222_v26 }
 0x37c   : > { %5459 = vrot.lane.b32.xlu0 %v9288_v39, %s7127_s2  ;;  %5457 = vrot.lane.b32.xlu1 %v9282_v21, %s7127_s2 }
 0x380   : > { %5463 = vrot.lane.b32.xlu0 %v9306_v12, %s7127_s2  ;;  %5461 = vrot.lane.b32.xlu1 %v9294_v23, %s7127_s2 }
 0x384   : > { %5467 = vrot.lane.b32.xlu0 %v4634_v36, %s7127_s2  ;;  %5465 = vrot.lane.b32.xlu1 %v9312_v14, %s7127_s2 }
 0x388   : > { %5471 = vrot.lane.b32.xlu0 %v4644_v20, %s7127_s2  ;;  %5469 = vrot.lane.b32.xlu1 %v4639_v1, %s7127_s2 }
 0x38c   : > { %5475 = vrot.lane.b32.xlu0 %v4654_v33, %s7127_s2  ;;  %5473 = vrot.lane.b32.xlu1 %v4649_v61, %s7127_s2 }
 0x390   : > { %5477 = vrot.lane.b32.xlu1 %v4659_v55, %s7127_s2  ;;  %v5445_v55 = vld [vmem:[%s9816_s13 + $0x18] sm:$0xff] }
 0x391   : > { %6772 = vmatprep.subr.mxu0 %v5445_v55 }
 0x3c2   : > { %v4944_v11 = vpop.permute.xlu1 %4943 }
 0x3c6   : > { %v4946_v27 = vpop.permute.xlu1 %4945  ;;  %v4948_v29 = vpop.permute.xlu0 %4947 }
 0x3ca   : > { %v4950_v41 = vpop.permute.xlu1 %4949  ;;  %v4952_v37 = vpop.permute.xlu0 %4951 }
 0x3ce   : > { %v4954_v40 = vpop.permute.xlu1 %4953 }
 0x416   : > { %v6686_v52 = vpop.f32.mrf.mxu1 }
 0x417   : > { %v4833_v56 = vadd.f32 %v6686_v52, %v6381_v2  ;;  %v4958_v52 = vpop.permute.xlu1 %4957 }
 0x418   : > { %v4827_v0 = vpop.f32.mrf.mxu1 }
 0x419   : > { %v4828_v28 = vadd.f32 %v6381_v2, %v4827_v0  ;;  %v4907_v60 = vmax.f32 %v4833_v56, 0.0 }
 0x41a   : > { %v6689_v47 = vpop.f32.mrf.mxu1 }
 0x41b   : > { %v4906_v4 = vmax.f32 %v4828_v28, 0.0  ;;  %v4843_v5 = vadd.f32 %v6689_v47, %v6381_v2 }
 0x41c   : > { %v4837_v59 = vpop.f32.mrf.mxu1 }
 0x41d   : > { %v4838_v7 = vadd.f32 %v6381_v2, %v4837_v59  ;;  %6716 = vmatprep.mubr.msk.f32.mxu0 %vm4712_vm1, %v4906_v4  ;;  %v4909_v21 = vmax.f32 %v4843_v5, 0.0  ;;  %v4956_v4 = vpop.permute.xlu0 %4955 }
 0x41e   : > { %v6692_v22 = vpop.f32.mrf.mxu1  ;;  %6717 = vmatmul.mubr.msk.f32.vlgmr.msra.gmra.mxu0 %vm4712_vm1, %v4907_v60 }
 0x41f   : > { %v4908_v34 = vmax.f32 %v4838_v7, 0.0  ;;  %v4853_v39 = vadd.f32 %v6692_v22, %v6381_v2  ;;  %6773 = vmatpush3.msra.mxu0 %v5445_v55 }
 0x420   : > { %v4847_v43 = vpop.f32.mrf.mxu1  ;;  %6774 = vmatprep.subr.mxu0 %v5444_v31 }
 0x421   : > { %v4848_v48 = vadd.f32 %v6381_v2, %v4847_v43  ;;  %6719 = vmatprep.mubr.msk.f32.mxu0 %vm4712_vm1, %v4908_v34  ;;  %v4911_v23 = vmax.f32 %v4853_v39, 0.0  ;;  %6775 = vmatpush3.msra.mxu0 %v5444_v31  ;;  %v4962_v43 = vpop.permute.xlu1 %4961 }
 0x422   : > { %v6695_v49 = vpop.f32.mrf.mxu1  ;;  %6720 = vmatmul.mubr.msk.f32.gmra.mxu0 %vm4712_vm1, %v4909_v21  ;;  %6776 = vmatprep.subr.mxu0 %v5443_v53 }
 0x423   : > { %v4910_v63 = vmax.f32 %v4848_v48, 0.0  ;;  %v4863_v18 = vadd.f32 %v6695_v49, %v6381_v2  ;;  %6777 = vmatpush3.msra.mxu0 %v5443_v53 }
 0x424   : > { %v4857_v9 = vpop.f32.mrf.mxu1  ;;  %6778 = vmatprep.subr.mxu0 %v5442_v25 }
 0x425   : > { %v4858_v57 = vadd.f32 %v6381_v2, %v4857_v9  ;;  %6722 = vmatprep.mubr.msk.f32.mxu0 %vm4712_vm1, %v4910_v63  ;;  %v4913_v12 = vmax.f32 %v4863_v18, 0.0  ;;  %6779 = vmatpush3.msra.mxu0 %v5442_v25 }
 0x426   : > { %v6698_v58 = vpop.f32.mrf.mxu1  ;;  %6723 = vmatmul.mubr.msk.f32.gmra.mxu0 %vm4712_vm1, %v4911_v23  ;;  %v4960_v23 = vpop.permute.xlu0 %4959 }
 0x427   : > { %v4912_v32 = vmax.f32 %v4858_v57, 0.0  ;;  %v4873_v6 = vadd.f32 %v6698_v58, %v6381_v2 }
 0x428   : > { %v4867_v3 = vpop.f32.mrf.mxu1 }
 0x429   : > { %v4868_v14 = vadd.f32 %v6381_v2, %v4867_v3  ;;  %6725 = vmatprep.mubr.msk.f32.mxu0 %vm4712_vm1, %v4912_v32  ;;  %v4915_v10 = vmax.f32 %v4873_v6, 0.0 }
 0x42a   : > { %v6701_v30 = vpop.f32.mrf.mxu1  ;;  %6726 = vmatmul.mubr.msk.f32.gmra.mxu0 %vm4712_vm1, %v4913_v12 }
 0x42b   : > { %v4914_v19 = vmax.f32 %v4868_v14, 0.0  ;;  %v4883_v50 = vadd.f32 %v6701_v30, %v6381_v2  ;;  %v4966_v14 = vpop.permute.xlu1 %4965 }
 0x42c   : > { %v4877_v36 = vpop.f32.mrf.mxu1 }
 0x42d   : > { %v4878_v17 = vadd.f32 %v6381_v2, %v4877_v36  ;;  %6728 = vmatprep.mubr.msk.f32.mxu0 %vm4712_vm1, %v4914_v19  ;;  %v4917_v1 = vmax.f32 %v4883_v50, 0.0 }
 0x42e   : > { %v6704_v13 = vpop.f32.mrf.mxu1  ;;  %6729 = vmatmul.mubr.msk.f32.gmra.mxu0 %vm4712_vm1, %v4915_v10 }
 0x42f   : > { %v4916_v54 = vmax.f32 %v4878_v17, 0.0  ;;  %v4893_v24 = vadd.f32 %v6704_v13, %v6381_v2  ;;  %v4964_v17 = vpop.permute.xlu0 %4963 }
 0x430   : > { %v4887_v44 = vpop.f32.mrf.mxu1 }
 0x431   : > { %v4888_v20 = vadd.f32 %v6381_v2, %v4887_v44  ;;  %6731 = vmatprep.mubr.msk.f32.mxu0 %vm4712_vm1, %v4916_v54  ;;  %v4919_v8 = vmax.f32 %v4893_v24, 0.0 }
 0x432   : > { %v6707_v38 = vpop.f32.mrf.mxu1  ;;  %6732 = vmatmul.mubr.msk.f32.gmra.mxu0 %vm4712_vm1, %v4917_v1 }
 0x433   : > { %v4918_v46 = vmax.f32 %v4888_v20, 0.0  ;;  %v4903_v61 = vadd.f32 %v6707_v38, %v6381_v2 }
 0x434   : > { %v4897_v45 = vpop.f32.mrf.mxu1 }
 0x435   : > { %v4898_v16 = vadd.f32 %v6381_v2, %v4897_v45  ;;  %6734 = vmatprep.mubr.msk.f32.mxu0 %vm4712_vm1, %v4918_v46  ;;  %v4921_v35 = vmax.f32 %v4903_v61, 0.0 }
 0x436   : > { %6735 = vmatmul.mubr.msk.f32.gmra.mxu0 %vm4712_vm1, %v4919_v8  ;;  %v4970_v8 = vpop.permute.xlu1 %4969 }
 0x437   : > { %v4920_v33 = vmax.f32 %v4898_v16, 0.0 }
 0x439   : > { %6737 = vmatprep.mubr.msk.f32.mxu0 %vm4712_vm1, %v4920_v33  ;;  %v4968_v33 = vpop.permute.xlu0 %4967 }
 0x43a   : > { %6738 = vmatmul.mubr.msk.f32.gmra.mxu0 %vm4712_vm1, %v4921_v35 }
 0x4de   : > { %v6718_v51 = vpop.f32.mrf.mxu0 }
 0x4df   : > { %v5111_v15 = vadd.f32 %v6718_v51, %v4946_v27 }
 0x4e0   : > { %v5105_v62 = vpop.f32.mrf.mxu0 }
 0x4e1   : > { %v5106_v2 = vadd.f32 %v5105_v62, %v4944_v11  ;;  %v5191_v56 = vadd.f32 %v9425_v42, %v5111_v15  ;;  %v4972_v62 = vpop.permute.xlu0 %4971 }
 0x4e2   : > { %v6721_v0 = vpop.f32.mrf.mxu0 }
 0x4e3   : > { %v5190_v28 = vadd.f32 %v9425_v42, %v5106_v2  ;;  %v5121_v47 = vadd.f32 %v6721_v0, %v4950_v41  ;;  %v5207_v7 = vmax.f32 %v5191_v56, 0.0  ;;  %v4974_v41 = vpop.permute.xlu1 %4973 }
 0x4e4   : > { %v5115_v60 = vpop.f32.mrf.mxu0 }
 0x4e5   : > { %v5206_v5 = vmax.f32 %v5190_v28, 0.0  ;;  %v5116_v59 = vadd.f32 %v5115_v60, %v4948_v29  ;;  %v5193_v22 = vadd.f32 %v9425_v42, %v5121_v47 }
 0x4e6   : > { %v6724_v34 = vpop.f32.mrf.mxu0 }
 0x4e7   : > { %v5192_v21 = vadd.f32 %v9425_v42, %v5116_v59  ;;  %v5131_v39 = vadd.f32 %v6724_v34, %v4954_v40  ;;  %6748 = vmatprep.mubr.msk.f32.mxu1 %vm4712_vm1, %v5206_v5  ;;  %v5209_v18 = vmax.f32 %v5193_v22, 0.0  ;;  %v5729_v5 = vld [vmem:[%s9818_s15 + $0x18] sm:$0xff]  ;;  %v5728_v59 = vld [vmem:[%s9818_s15 + $0x10] sm:$0xff] }
 0x4e8   : > { %v5125_v48 = vpop.f32.mrf.mxu0  ;;  %6749 = vmatmul.mubr.msk.f32.vlgmr.msra.gmra.mxu1 %vm4712_vm1, %v5207_v7  ;;  %6804 = vmatprep.subr.mxu1 %v5729_v5  ;;  %v6415_v7 = vld [vmem:[%s9815_s12] ss:$0 sm:$0xff] }
 0x4e9   : > { %v5208_v49 = vmax.f32 %v5192_v21, 0.0  ;;  %v5126_v63 = vadd.f32 %v5125_v48, %v4952_v37  ;;  %v5195_v9 = vadd.f32 %v9425_v42, %v5131_v39  ;;  %6805 = vmatpush3.msra.mxu1 %v5729_v5 }
 0x4ea   : > { %v6727_v57 = vpop.f32.mrf.mxu0  ;;  %6806 = vmatprep.subr.mxu1 %v5728_v59 }
 0x4eb   : > { %v5194_v58 = vadd.f32 %v9425_v42, %v5126_v63  ;;  %v5141_v32 = vadd.f32 %v6727_v57, %v4958_v52  ;;  %6751 = vmatprep.mubr.msk.f32.mxu1 %vm4712_vm1, %v5208_v49  ;;  %v5211_v30 = vmax.f32 %v5195_v9, 0.0  ;;  %6807 = vmatpush3.msra.mxu1 %v5728_v59 }
 0x4ec   : > { %v5135_v12 = vpop.f32.mrf.mxu0  ;;  %6752 = vmatmul.mubr.msk.f32.gmra.mxu1 %vm4712_vm1, %v5209_v18 }
 0x4ed   : > { %v5210_v6 = vmax.f32 %v5194_v58, 0.0  ;;  %v5136_v3 = vadd.f32 %v5135_v12, %v4956_v4  ;;  %v5197_v19 = vadd.f32 %v9425_v42, %v5141_v32 }
 0x4ee   : > { %v6730_v10 = vpop.f32.mrf.mxu0 }
 0x4ef   : > { %v5196_v50 = vadd.f32 %v9425_v42, %v5136_v3  ;;  %v5151_v36 = vadd.f32 %v6730_v10, %v4962_v43  ;;  %6754 = vmatprep.mubr.msk.f32.mxu1 %vm4712_vm1, %v5210_v6  ;;  %v5213_v24 = vmax.f32 %v5197_v19, 0.0 }
 0x4f0   : > { %v5145_v13 = vpop.f32.mrf.mxu0  ;;  %6755 = vmatmul.mubr.msk.f32.gmra.mxu1 %vm4712_vm1, %v5211_v30 }
 0x4f1   : > { %v5212_v54 = vmax.f32 %v5196_v50, 0.0  ;;  %v5146_v1 = vadd.f32 %v5145_v13, %v4960_v23  ;;  %v5199_v44 = vadd.f32 %v9425_v42, %v5151_v36 }
 0x4f2   : > { %v6733_v20 = vpop.f32.mrf.mxu0 }
 0x4f3   : > { %v5198_v38 = vadd.f32 %v9425_v42, %v5146_v1  ;;  %v5161_v46 = vadd.f32 %v6733_v20, %v4966_v14  ;;  %6757 = vmatprep.mubr.msk.f32.mxu1 %vm4712_vm1, %v5212_v54  ;;  %v5215_v35 = vmax.f32 %v5199_v44, 0.0 }
 0x4f4   : > { %v5155_v61 = vpop.f32.mrf.mxu0  ;;  %6758 = vmatmul.mubr.msk.f32.gmra.mxu1 %vm4712_vm1, %v5213_v24 }
 0x4f5   : > { %v5214_v45 = vmax.f32 %v5198_v38, 0.0  ;;  %v5156_v16 = vadd.f32 %v5155_v61, %v4964_v17  ;;  %v5201_v26 = vadd.f32 %v9425_v42, %v5161_v46 }
 0x4f6   : > { %v6736_v55 = vpop.f32.mrf.mxu0 }
 0x4f7   : > { %v5200_v31 = vadd.f32 %v9425_v42, %v5156_v16  ;;  %v5171_v53 = vadd.f32 %v6736_v55, %v4970_v8  ;;  %6760 = vmatprep.mubr.msk.f32.mxu1 %vm4712_vm1, %v5214_v45  ;;  %v5217_v29 = vmax.f32 %v5201_v26, 0.0 }
 0x4f8   : > { %v5165_v25 = vpop.f32.mrf.mxu0  ;;  %6761 = vmatmul.mubr.msk.f32.gmra.mxu1 %vm4712_vm1, %v5215_v35 }
 0x4f9   : > { %v5216_v11 = vmax.f32 %v5200_v31, 0.0  ;;  %v5166_v27 = vadd.f32 %v5165_v25, %v4968_v33  ;;  %v5203_v40 = vadd.f32 %v9425_v42, %v5171_v53 }
 0x4fa   : > { %v6739_v37 = vpop.f32.mrf.mxu0 }
 0x4fb   : > { %v5202_v51 = vadd.f32 %v9425_v42, %v5166_v27  ;;  %v5181_v15 = vadd.f32 %v6739_v37, %v4974_v41  ;;  %6763 = vmatprep.mubr.msk.f32.mxu1 %vm4712_vm1, %v5216_v11  ;;  %v5219_v0 = vmax.f32 %v5203_v40, 0.0  ;;  %v5726_v37 = vld [vmem:[%s9818_s15] sm:$0xff] }
 0x4fc   : > { %v5175_v2 = vpop.f32.mrf.mxu0  ;;  %6764 = vmatmul.mubr.msk.f32.gmra.mxu1 %vm4712_vm1, %v5217_v29 }
 0x4fd   : > { %v5218_v52 = vmax.f32 %v5202_v51, 0.0  ;;  %v5176_v56 = vadd.f32 %v5175_v2, %v4972_v62  ;;  %v5205_v28 = vadd.f32 %v9425_v42, %v5181_v15  ;;  %v5450_v51 = vpop.permute.xlu1 %5449  ;;  %v5448_v15 = vpop.permute.xlu0 %5447 }
 0x4ff   : > { %v5204_v47 = vadd.f32 %v9425_v42, %v5176_v56  ;;  %6766 = vmatprep.mubr.msk.f32.mxu1 %vm4712_vm1, %v5218_v52  ;;  %v5221_v60 = vmax.f32 %v5205_v28, 0.0  ;;  %v5727_v42 = vld [vmem:[%s9818_s15 + $0x8] sm:$0xff]  ;;  %v9493_v28 = vld [vmem:[%s9817_s14] ss:$0 sm:$0xff] }
 0x500   : > { %6767 = vmatmul.mubr.msk.f32.gmra.mxu1 %vm4712_vm1, %v5219_v0  ;;  %6808 = vmatprep.subr.mxu1 %v5727_v42 }
 0x501   : > { %v5220_v4 = vmax.f32 %v5204_v47, 0.0  ;;  %6809 = vmatpush3.msra.mxu1 %v5727_v42  ;;  %v5454_v62 = vpop.permute.xlu1 %5453  ;;  %v5452_v2 = vpop.permute.xlu0 %5451 }
 0x502   : > { %6810 = vmatprep.subr.mxu1 %v5726_v37 }
 0x503   : > { %6769 = vmatprep.mubr.msk.f32.mxu1 %vm4712_vm1, %v5220_v4  ;;  %6811 = vmatpush3.msra.mxu1 %v5726_v37 }
 0x504   : > { %6770 = vmatmul.mubr.msk.f32.gmra.mxu1 %vm4712_vm1, %v5221_v60 }
 0x505   : > { %v5458_v52 = vpop.permute.xlu1 %5457  ;;  %v5456_v56 = vpop.permute.xlu0 %5455 }
 0x509   : > { %v5462_v5 = vpop.permute.xlu1 %5461 }
 0x5a8   : > { %v6750_v22 = vpop.f32.mrf.mxu1 }
 0x5a9   : > { %v5353_v34 = vadd.f32 %v6750_v22, %v6415_v7 }
 0x5aa   : > { %v5347_v21 = vpop.f32.mrf.mxu1 }
 0x5ab   : > { %v5348_v39 = vadd.f32 %v6415_v7, %v5347_v21  ;;  %v5427_v49 = vmax.f32 %v5353_v34, 0.0  ;;  %v5460_v34 = vpop.permute.xlu0 %5459 }
 0x5ac   : > { %v6753_v43 = vpop.f32.mrf.mxu1 }
 0x5ad   : > { %v5426_v48 = vmax.f32 %v5348_v39, 0.0  ;;  %v5363_v63 = vadd.f32 %v6753_v43, %v6415_v7 }
 0x5ae   : > { %v5357_v23 = vpop.f32.mrf.mxu1 }
 0x5af   : > { %v5358_v18 = vadd.f32 %v6415_v7, %v5357_v23  ;;  %6780 = vmatprep.mubr.msk.f32.mxu0 %vm4712_vm1, %v5426_v48  ;;  %v5429_v58 = vmax.f32 %v5363_v63, 0.0 }
 0x5b0   : > { %v6756_v9 = vpop.f32.mrf.mxu1  ;;  %6781 = vmatmul.mubr.msk.f32.vlgmr.msra.gmra.mxu0 %vm4712_vm1, %v5427_v49 }
 0x5b1   : > { %v5428_v57 = vmax.f32 %v5358_v18, 0.0  ;;  %v5373_v32 = vadd.f32 %v6756_v9, %v6415_v7  ;;  %v5466_v9 = vpop.permute.xlu1 %5465 }
 0x5b2   : > { %v5367_v12 = vpop.f32.mrf.mxu1 }
 0x5b3   : > { %v5368_v6 = vadd.f32 %v6415_v7, %v5367_v12  ;;  %6783 = vmatprep.mubr.msk.f32.mxu0 %vm4712_vm1, %v5428_v57  ;;  %v5431_v30 = vmax.f32 %v5373_v32, 0.0  ;;  %v5464_v12 = vpop.permute.xlu0 %5463 }
 0x5b4   : > { %v6759_v3 = vpop.f32.mrf.mxu1  ;;  %6784 = vmatmul.mubr.msk.f32.gmra.mxu0 %vm4712_vm1, %v5429_v58 }
 0x5b5   : > { %v5430_v14 = vmax.f32 %v5368_v6, 0.0  ;;  %v5383_v19 = vadd.f32 %v6759_v3, %v6415_v7 }
 0x5b6   : > { %v5377_v10 = vpop.f32.mrf.mxu1 }
 0x5b7   : > { %v5378_v50 = vadd.f32 %v6415_v7, %v5377_v10  ;;  %6786 = vmatprep.mubr.msk.f32.mxu0 %vm4712_vm1, %v5430_v14  ;;  %v5433_v13 = vmax.f32 %v5383_v19, 0.0 }
 0x5b8   : > { %v6762_v36 = vpop.f32.mrf.mxu1  ;;  %6787 = vmatmul.mubr.msk.f32.gmra.mxu0 %vm4712_vm1, %v5431_v30 }
 0x5b9   : > { %v5432_v17 = vmax.f32 %v5378_v50, 0.0  ;;  %v5393_v54 = vadd.f32 %v6762_v36, %v6415_v7 }
 0x5ba   : > { %v5387_v1 = vpop.f32.mrf.mxu1 }
 0x5bb   : > { %v5388_v24 = vadd.f32 %v6415_v7, %v5387_v1  ;;  %6789 = vmatprep.mubr.msk.f32.mxu0 %vm4712_vm1, %v5432_v17  ;;  %v5435_v38 = vmax.f32 %v5393_v54, 0.0  ;;  %v5470_v17 = vpop.permute.xlu1 %5469 }
 0x5bc   : > { %v6765_v44 = vpop.f32.mrf.mxu1  ;;  %6790 = vmatmul.mubr.msk.f32.gmra.mxu0 %vm4712_vm1, %v5433_v13 }
 0x5bd   : > { %v5434_v20 = vmax.f32 %v5388_v24, 0.0  ;;  %v5403_v46 = vadd.f32 %v6765_v44, %v6415_v7 }
 0x5be   : > { %v5397_v8 = vpop.f32.mrf.mxu1 }
 0x5bf   : > { %v5398_v61 = vadd.f32 %v6415_v7, %v5397_v8  ;;  %6792 = vmatprep.mubr.msk.f32.mxu0 %vm4712_vm1, %v5434_v20  ;;  %v5437_v33 = vmax.f32 %v5403_v46, 0.0  ;;  %v5468_v20 = vpop.permute.xlu0 %5467 }
 0x5c0   : > { %v6768_v45 = vpop.f32.mrf.mxu1  ;;  %6793 = vmatmul.mubr.msk.f32.gmra.mxu0 %vm4712_vm1, %v5435_v38 }
 0x5c1   : > { %v5436_v16 = vmax.f32 %v5398_v61, 0.0  ;;  %v5413_v35 = vadd.f32 %v6768_v45, %v6415_v7 }
 0x5c2   : > { %v5407_v26 = vpop.f32.mrf.mxu1 }
 0x5c3   : > { %v5408_v55 = vadd.f32 %v6415_v7, %v5407_v26  ;;  %6795 = vmatprep.mubr.msk.f32.mxu0 %vm4712_vm1, %v5436_v16  ;;  %v5439_v25 = vmax.f32 %v5413_v35, 0.0  ;;  %v5474_v26 = vpop.permute.xlu1 %5473 }
 0x5c4   : > { %v6771_v31 = vpop.f32.mrf.mxu1  ;;  %6796 = vmatmul.mubr.msk.f32.gmra.mxu0 %vm4712_vm1, %v5437_v33 }
 0x5c5   : > { %v5438_v53 = vmax.f32 %v5408_v55, 0.0  ;;  %v5423_v11 = vadd.f32 %v6771_v31, %v6415_v7 }
 0x5c6   : > { %v5417_v27 = vpop.f32.mrf.mxu1 }
 0x5c7   : > { %v5418_v41 = vadd.f32 %v6415_v7, %v5417_v27  ;;  %6798 = vmatprep.mubr.msk.f32.mxu0 %vm4712_vm1, %v5438_v53  ;;  %v5441_v40 = vmax.f32 %v5423_v11, 0.0 }
 0x5c8   : > { %6799 = vmatmul.mubr.msk.f32.gmra.mxu0 %vm4712_vm1, %v5439_v25  ;;  %v5472_v25 = vpop.permute.xlu0 %5471 }
 0x5c9   : > { %v5440_v29 = vmax.f32 %v5418_v41, 0.0 }
 0x5cb   : > { %6801 = vmatprep.mubr.msk.f32.mxu0 %vm4712_vm1, %v5440_v29 }
 0x5cc   : > { %6802 = vmatmul.mubr.msk.f32.gmra.mxu0 %vm4712_vm1, %v5441_v40 }
 0x670   : > { %v6782_v0 = vpop.f32.mrf.mxu0 }
 0x671   : > { %v5615_v47 = vadd.f32 %v6782_v0, %v5450_v51 }
 0x672   : > { %v5609_v4 = vpop.f32.mrf.mxu0 }
 0x673   : > { %v5610_v60 = vadd.f32 %v5609_v4, %v5448_v15  ;;  %v5695_v59 = vadd.f32 %v9493_v28, %v5615_v47  ;;  %v5476_v4 = vpop.permute.xlu0 %5475 }
 0x674   : > { %v6785_v42 = vpop.f32.mrf.mxu0 }
 0x675   : > { %v5694_v7 = vadd.f32 %v9493_v28, %v5610_v60  ;;  %v5625_v22 = vadd.f32 %v6785_v42, %v5454_v62  ;;  %v5711_v48 = vmax.f32 %v5695_v59, 0.0  ;;  %v5478_v62 = vpop.permute.xlu1 %5477 }
 0x676   : > { %v5619_v21 = vpop.f32.mrf.mxu0 }
 0x677   : > { %v5710_v39 = vmax.f32 %v5694_v7, 0.0  ;;  %v5620_v43 = vadd.f32 %v5619_v21, %v5452_v2  ;;  %v5697_v49 = vadd.f32 %v9493_v28, %v5625_v22 }
 0x678   : > { %v6788_v63 = vpop.f32.mrf.mxu0 }
 0x679   : > { %v5696_v23 = vadd.f32 %v9493_v28, %v5620_v43  ;;  %v5635_v18 = vadd.f32 %v6788_v63, %v5458_v52  ;;  %6812 = vmatprep.mubr.msk.f32.mxu1 %vm4712_vm1, %v5710_v39  ;;  %v5713_v6 = vmax.f32 %v5697_v49, 0.0  ;;  %v9530_v39 = vld [vmem:[%s9819_s16] ss:$0 sm:$0xff] }
 0x67a   : > { %v5629_v57 = vpop.f32.mrf.mxu0  ;;  %6813 = vmatmul.mubr.msk.f32.vlgmr.msra.gmra.mxu1 %vm4712_vm1, %v5711_v48 }
 0x67b   : > { %v5712_v58 = vmax.f32 %v5696_v23, 0.0  ;;  %v5630_v32 = vadd.f32 %v5629_v57, %v5456_v56  ;;  %v5699_v3 = vadd.f32 %v9493_v28, %v5635_v18 }
 0x67c   : > { %v6791_v14 = vpop.f32.mrf.mxu0 }
 0x67d   : > { %v5698_v30 = vadd.f32 %v9493_v28, %v5630_v32  ;;  %v5645_v19 = vadd.f32 %v6791_v14, %v5462_v5  ;;  %6815 = vmatprep.mubr.msk.f32.mxu1 %vm4712_vm1, %v5712_v58  ;;  %v5715_v13 = vmax.f32 %v5699_v3, 0.0 }
 0x67e   : > { %v5639_v10 = vpop.f32.mrf.mxu0  ;;  %6816 = vmatmul.mubr.msk.f32.gmra.mxu1 %vm4712_vm1, %v5713_v6 }
 0x67f   : > { %v5714_v50 = vmax.f32 %v5698_v30, 0.0  ;;  %v5640_v36 = vadd.f32 %v5639_v10, %v5460_v34  ;;  %v5701_v54 = vadd.f32 %v9493_v28, %v5645_v19 }
 0x680   : > { %v6794_v1 = vpop.f32.mrf.mxu0 }
 0x681   : > { %v5700_v24 = vadd.f32 %v9493_v28, %v5640_v36  ;;  %v5655_v44 = vadd.f32 %v6794_v1, %v5466_v9  ;;  %6818 = vmatprep.mubr.msk.f32.mxu1 %vm4712_vm1, %v5714_v50  ;;  %v5717_v61 = vmax.f32 %v5701_v54, 0.0 }
 0x682   : > { %v5649_v38 = vpop.f32.mrf.mxu0  ;;  %6819 = vmatmul.mubr.msk.f32.gmra.mxu1 %vm4712_vm1, %v5715_v13 }
 0x683   : > { %v5716_v46 = vmax.f32 %v5700_v24, 0.0  ;;  %v5650_v8 = vadd.f32 %v5649_v38, %v5464_v12  ;;  %v5703_v45 = vadd.f32 %v9493_v28, %v5655_v44  ;;  %v5930_v24 = vld [vmem:[%s9820_s17] sm:$0x7] }
 0x684   : > { %v6797_v16 = vpop.f32.mrf.mxu0  ;;  %vm5931_vm2 = vcmp.gt.f32.partialorder %v5930_v24, 0.5 }
 0x685   : > { %v5702_v33 = vadd.f32 %v9493_v28, %v5650_v8  ;;  %v5665_v35 = vadd.f32 %v6797_v16, %v5470_v17  ;;  %6821 = vmatprep.mubr.msk.f32.mxu1 %vm4712_vm1, %v5716_v46  ;;  %v5719_v11 = vmax.f32 %v5703_v45, 0.0 }
 0x686   : > { %v5659_v55 = vpop.f32.mrf.mxu0  ;;  %6822 = vmatmul.mubr.msk.f32.gmra.mxu1 %vm4712_vm1, %v5717_v61 }
 0x687   : > { %v5718_v31 = vmax.f32 %v5702_v33, 0.0  ;;  %v5660_v53 = vadd.f32 %v5659_v55, %v5468_v20  ;;  %v5705_v27 = vadd.f32 %v9493_v28, %v5665_v35 }
 0x688   : > { %v6800_v41 = vpop.f32.mrf.mxu0 }
 0x689   : > { %v5704_v29 = vadd.f32 %v9493_v28, %v5660_v53  ;;  %v5675_v40 = vadd.f32 %v6800_v41, %v5474_v26  ;;  %6824 = vmatprep.mubr.msk.f32.mxu1 %vm4712_vm1, %v5718_v31  ;;  %v5721_v2 = vmax.f32 %v5705_v27, 0.0 }
 0x68a   : > { %v5669_v37 = vpop.f32.mrf.mxu0  ;;  %6825 = vmatmul.mubr.msk.f32.gmra.mxu1 %vm4712_vm1, %v5719_v11 }
 0x68b   : > { %v5720_v51 = vmax.f32 %v5704_v29, 0.0  ;;  %v5670_v15 = vadd.f32 %v5669_v37, %v5472_v25  ;;  %v5707_v52 = vadd.f32 %v9493_v28, %v5675_v40  ;;  %v10102_v25 = vmov 0  }
 0x68c   : > { %v6803_v56 = vpop.f32.mrf.mxu0  ;;  %v5948_v11 = vsel %vm5931_vm2, 1, %v10102_v25 }
 0x68d   : > { %v5706_v0 = vadd.f32 %v9493_v28, %v5670_v15  ;;  %v5685_v47 = vadd.f32 %v6803_v56, %v5478_v62  ;;  %6827 = vmatprep.mubr.msk.f32.mxu1 %vm4712_vm1, %v5720_v51  ;;  %v5723_v42 = vmax.f32 %v5707_v52, 0.0 }
 0x68e   : > { %v5679_v60 = vpop.f32.mrf.mxu0  ;;  %6828 = vmatmul.mubr.msk.f32.gmra.mxu1 %vm4712_vm1, %v5721_v2  ;;  %v10103_v2 = vld [vmem:[#allocation3_spill] sm:$0xff] }
 0x68f   : > { %v5722_v5 = vmax.f32 %v5706_v0, 0.0  ;;  %v5680_v59 = vadd.f32 %v5679_v60, %v5476_v4  ;;  %v5709_v7 = vadd.f32 %v9493_v28, %v5685_v47  ;;  %v5952_v52 = vrot.slane %v5948_v11, %v10103_v2 }
 0x691   : > { %v5708_v22 = vadd.f32 %v9493_v28, %v5680_v59  ;;  %6830 = vmatprep.mubr.msk.f32.mxu1 %vm4712_vm1, %v5722_v5  ;;  %v5725_v21 = vmax.f32 %v5709_v7, 0.0  ;;  %v10104_v5 = vld [vmem:[#allocation2_spill] sm:$0xff]  ;;  %vm9605_vm12 = vcmp.eq.s32.totalorder %v5952_v52, 1 }
 0x692   : > { %6831 = vmatmul.mubr.msk.f32.gmra.mxu1 %vm4712_vm1, %v5723_v42  ;;  %v10105_v59 = vsub.s32 1, %v10104_v5  ;;  %v10106_v7 = vsub.s32 2, %v10104_v5 }
 0x693   : > { %v5724_v34 = vmax.f32 %v5708_v22, 0.0 }
 0x694   : > { %v9595_v42 = vrot.slane %v5948_v11, %v10105_v59  ;;  %v9599_v22 = vrot.slane %v5948_v11, %v10106_v7 }
 0x695   : > { %6833 = vmatprep.mubr.msk.f32.mxu1 %vm4712_vm1, %v5724_v34 }
 0x696   : > { %6834 = vmatmul.mubr.msk.f32.gmra.mxu1 %vm4712_vm1, %v5725_v21  ;;  %vm6070_vm7 = vcmp.eq.s32.totalorder %v9595_v42, 1  ;;  %vm6107_vm8 = vcmp.eq.s32.totalorder %v9599_v22, 1 }
 0x73a   : > { %v6814_v43 = vpop.f32.mrf.mxu1 }
 0x73b   : > { %v9533_v48 = vadd.f32 %v6814_v43, %v9530_v39 }
 0x73c   : > { %v5851_v28 = vpop.f32.mrf.mxu1 }
 0x73d   : > { %v6467_v49 = vmul.f32 -1.442695, %v9533_v48  ;;  %v9537_v63 = vadd.f32 %v9530_v39, %v5851_v28  ;;  %v5933_v43 = vmax.f32 %v9533_v48, 0.0 }
 0x73e   : > { %v6817_v23 = vpop.f32.mrf.mxu1 }
 0x73f   : > { %7013 = vpow2.f32 %v6467_v49  ;;  %v6466_v18 = vmul.f32 -1.442695, %v9537_v63  ;;  %v9541_v9 = vadd.f32 %v6817_v23, %v9530_v39  ;;  %v5932_v23 = vmax.f32 %v9537_v63, 0.0 }
 0x740   : > { %v5861_v57 = vpop.f32.mrf.mxu1 }
 0x741   : > { %7015 = vpow2.f32 %v6466_v18  ;;  %v9544_v58 = vadd.f32 %v9530_v39, %v5861_v57  ;;  %v6469_v32 = vmul.f32 -1.442695, %v9541_v9  ;;  %v5935_v24 = vmax.f32 %v9541_v9, 0.0 }
 0x742   : > { %v6820_v12 = vpop.f32.mrf.mxu1 }
 0x743   : > { %v6468_v6 = vmul.f32 -1.442695, %v9544_v58  ;;  %v9549_v3 = vadd.f32 %v6820_v12, %v9530_v39  ;;  %7017 = vpow2.f32 %v6469_v32 }
 0x744   : > { %v5871_v14 = vpop.f32.mrf.mxu1 }
 0x745   : > { %7019 = vpow2.f32 %v6468_v6  ;;  %v6471_v30 = vmul.f32 -1.442695, %v9549_v3  ;;  %v9554_v19 = vadd.f32 %v9530_v39, %v5871_v14 }
 0x746   : > { %7021 = vtanh.f32 %v9533_v48  ;;  %v6823_v10 = vpop.f32.mrf.mxu1 }
 0x747   : > { %7023 = vpow2.f32 %v6471_v30  ;;  %v9557_v50 = vadd.f32 %v6823_v10, %v9530_v39  ;;  %v6470_v36 = vmul.f32 -1.442695, %v9554_v19  ;;  %v5936_v2 = vmax.f32 %v9554_v19, 0.0 }
 0x748   : > { %7025 = vtanh.f32 %v9537_v63  ;;  %v5881_v17 = vpop.f32.mrf.mxu1 }
 0x749   : > { %7027 = vtanh.f32 %v9541_v9  ;;  %v6473_v13 = vmul.f32 -1.442695, %v9557_v50  ;;  %v9564_v54 = vadd.f32 %v9530_v39, %v5881_v17 }
 0x74a   : > { %7029 = vpow2.f32 %v6470_v36  ;;  %v6826_v1 = vpop.f32.mrf.mxu1  ;;  %v5955_v36 = vsel %vm9605_vm12, %v5933_v43, %v9533_v48 }
 0x74b   : > { %7031 = vpow2.f32 %v6473_v13  ;;  %v6472_v44 = vmul.f32 -1.442695, %v9564_v54  ;;  %v9572_v38 = vadd.f32 %v6826_v1, %v9530_v39  ;;  %v5954_v1 = vsel %vm9605_vm12, %v5932_v23, %v9537_v63 }
 0x74c   : > { %v7014_v20 = vpop.eup %7013  ;;  %7033 = vtanh.f32 %v9544_v58  ;;  %v5891_v46 = vpop.f32.mrf.mxu1 }
 0x74d   : > { %v6019_v8 = vadd.f32 1.0, %v7014_v20  ;;  %7035 = vpow2.f32 %v6472_v44  ;;  %v9575_v61 = vadd.f32 %v9530_v39, %v5891_v46  ;;  %v6475_v16 = vmul.f32 -1.442695, %v9572_v38 }
 0x74e   : > { %v7016_v45 = vpop.eup %7015  ;;  %7037 = vtanh.f32 %v9549_v3  ;;  %v6829_v33 = vpop.f32.mrf.mxu1 }
 0x74f   : > { %7039 = vrcp.f32 %v6019_v8  ;;  %v6018_v35 = vadd.f32 1.0, %v7016_v45  ;;  %v6474_v26 = vmul.f32 -1.442695, %v9575_v61  ;;  %v9581_v55 = vadd.f32 %v6829_v33, %v9530_v39 }
 0x750   : > { %7041 = vpow2.f32 %v6475_v16  ;;  %v5901_v31 = vpop.f32.mrf.mxu1  ;;  %v7018_v53 = vpop.eup %7017  ;;  %v5934_v8 = vmax.f32 %v9544_v58, 0.0  ;;  %v5937_v33 = vmax.f32 %v9549_v3, 0.0 }
 0x751   : > { %7043 = vrcp.f32 %v6018_v35  ;;  %v9585_v27 = vadd.f32 %v9530_v39, %v5901_v31  ;;  %v6021_v29 = vadd.f32 1.0, %v7018_v53  ;;  %v6477_v40 = vmul.f32 -1.442695, %v9581_v55 }
 0x752   : > { %v7020_v41 = vpop.eup %7019  ;;  %7045 = vpow2.f32 %v6474_v26  ;;  %v6832_v37 = vpop.f32.mrf.mxu1 }
 0x753   : > { %v7022_v51 = vpop.eup %7021  ;;  %v6020_v15 = vadd.f32 1.0, %v7020_v41  ;;  %7047 = vtanh.f32 %v9554_v19  ;;  %v6476_v4 = vmul.f32 -1.442695, %v9585_v27  ;;  %v9602_v34 = vadd.f32 %v6832_v37, %v9530_v39 }
 0x754   : > { %v7024_v62 = vpop.eup %7023  ;;  %7049 = vrcp.f32 %v6021_v29  ;;  %v5911_v56 = vpop.f32.mrf.mxu1  ;;  %v5957_v37 = vsel %vm9605_vm12, %v5935_v24, %v9541_v9 }
 0x755   : > { %v7026_v0 = vpop.eup %7025  ;;  %7051 = vrcp.f32 %v6020_v15  ;;  %v6023_v47 = vadd.f32 1.0, %v7024_v62  ;;  %v9612_v6 = vadd.f32 %v9530_v39, %v5911_v56  ;;  %v6479_v30 = vmul.f32 -1.442695, %v9602_v34 }
 0x756   : > { %v9591_v60 = vpop.eup %7027  ;;  %7053 = vpow2.f32 %v6477_v40  ;;  %v6835_v57 = vpop.f32.mrf.mxu1  ;;  %v5959_v62 = vsel %vm9605_vm12, %v5937_v33, %v9549_v3 }
 0x757   : > { %v7030_v21 = vpop.eup %7029  ;;  %7055 = vrcp.f32 %v6023_v47  ;;  %v9632_v48 = vadd.f32 %v6835_v57, %v9530_v39  ;;  %v6478_v45 = vmul.f32 -1.442695, %v9612_v6  ;;  %v5939_v47 = vmax.f32 %v9557_v50, 0.0 }
 0x758   : > { %v7032_v28 = vpop.eup %7031  ;;  %v6022_v18 = vadd.f32 1.0, %v7030_v21  ;;  %7057 = vtanh.f32 %v9557_v50  ;;  %v5921_v44 = vpop.f32.mrf.mxu1  ;;  %v5938_v21 = vmax.f32 %v9564_v54, 0.0 }
 0x759   : > { %v7034_v32 = vpop.eup %7033  ;;  %v6025_v12 = vadd.f32 1.0, %v7032_v28  ;;  %7059 = vpow2.f32 %v6476_v4  ;;  %v9647_v53 = vadd.f32 %v9530_v39, %v5921_v44  ;;  %v6481_v29 = vmul.f32 -1.442695, %v9632_v48 }
 0x75a   : > { %v7036_v14 = vpop.eup %7035  ;;  %7061 = vrcp.f32 %v6022_v18  ;;  %v5956_v39 = vsel %vm9605_vm12, %v5934_v8, %v9544_v58  ;;  %v5958_v28 = vsel %vm9605_vm12, %v5936_v2, %v9554_v19  ;;  %v5941_v19 = vmax.f32 %v9572_v38, 0.0 }
 0x75b   : > { %v7038_v10 = vpop.eup %7037  ;;  %7063 = vrcp.f32 %v6025_v12  ;;  %v6024_v17 = vadd.f32 1.0, %v7036_v14  ;;  %v6480_v56 = vmul.f32 -1.442695, %v9647_v53 }
 0x75c   : > { %v7040_v13 = vpop.eup %7039  ;;  %7065 = vtanh.f32 %v9564_v54 }
 0x75d   : > { %v7042_v20 = vpop.eup %7041  ;;  %v6072_v46 = vsel %vm6070_vm7, %v7040_v13, %v5955_v36  ;;  %7067 = vrcp.f32 %v6024_v17  ;;  %v5940_v17 = vmax.f32 %v9575_v61, 0.0 }
 0x75e   : > { %v7044_v16 = vpop.eup %7043  ;;  %v6109_v63 = vsel %vm6107_vm8, %v7022_v51, %v6072_v46  ;;  %v6027_v35 = vadd.f32 1.0, %v7042_v20  ;;  %7069 = vpow2.f32 %v6479_v30 }
 0x75f   : > { %v7046_v26 = vpop.eup %7045  ;;  %6126 = vst.msk [vmem:[%s9624_s19 + $0x8] sm:$0xff] %vm6124_vm9, %v6109_v63  ;;  %v6071_v31 = vsel %vm6070_vm7, %v7044_v16, %v5954_v1  ;;  %7071 = vtanh.f32 %v9572_v38  ;;  %v5962_v16 = vsel %vm9605_vm12, %v5940_v17, %v9575_v61 }
 0x760   : > { %v7048_v25 = vpop.eup %7047  ;;  %v6108_v11 = vsel %vm6107_vm8, %v7026_v0, %v6071_v31  ;;  %7073 = vrcp.f32 %v6027_v35  ;;  %v6026_v41 = vadd.f32 1.0, %v7046_v26  ;;  %v5943_v35 = vmax.f32 %v9581_v55, 0.0 }
 0x761   : > { %v7050_v40 = vpop.eup %7049  ;;  %6125 = vst.msk [vmem:[%s9624_s19] sm:$0xff] %vm6124_vm9, %v6108_v11  ;;  %7075 = vpow2.f32 %v6478_v45 }
 0x762   : > { %v7052_v51 = vpop.eup %7051  ;;  %v6074_v15 = vsel %vm6070_vm7, %v7050_v40, %v5957_v37  ;;  %7077 = vrcp.f32 %v6026_v41  ;;  %v5942_v41 = vmax.f32 %v9585_v27, 0.0  ;;  %v5965_v37 = vsel %vm9605_vm12, %v5943_v35, %v9581_v55 }
 0x763   : > { %v7054_v52 = vpop.eup %7053  ;;  %v6111_v9 = vsel %vm6107_vm8, %v9591_v60, %v6074_v15  ;;  %v6073_v58 = vsel %vm6070_vm7, %v7052_v51, %v5956_v39  ;;  %7079 = vtanh.f32 %v9575_v61 }
 0x764   : > { %v7056_v0 = vpop.eup %7055  ;;  %6128 = vst.msk [vmem:[%s9624_s19 + $0x18] sm:$0xff] %vm6124_vm9, %v6111_v9  ;;  %v6110_v3 = vsel %vm6107_vm8, %v7034_v32, %v6073_v58  ;;  %v6029_v4 = vadd.f32 1.0, %v7054_v52  ;;  %7081 = vpow2.f32 %v6481_v29  ;;  %v5961_v32 = vsel %vm9605_vm12, %v5939_v47, %v9557_v50 }
 0x765   : > { %v7058_v5 = vpop.eup %7057  ;;  %6127 = vst.msk [vmem:[%s9624_s19 + $0x10] sm:$0xff] %vm6124_vm9, %v6110_v3  ;;  %v6076_v60 = vsel %vm6070_vm7, %v7056_v0, %v5959_v62  ;;  %7083 = vtanh.f32 %v9581_v55  ;;  %v5960_v50 = vsel %vm9605_vm12, %v5938_v21, %v9564_v54  ;;  %v5963_v54 = vsel %vm9605_vm12, %v5941_v19, %v9572_v38 }
 0x766   : > { %v7060_v59 = vpop.eup %7059  ;;  %v6113_v7 = vsel %vm6107_vm8, %v7038_v10, %v6076_v60  ;;  %7085 = vrcp.f32 %v6029_v4  ;;  %v5964_v52 = vsel %vm9605_vm12, %v5942_v41, %v9585_v27  ;;  %v5945_v58 = vmax.f32 %v9602_v34, 0.0 }
 0x767   : > { %v7062_v43 = vpop.eup %7061  ;;  %6130 = vst.msk [vmem:[%s9624_s19 + $0x28] sm:$0xff] %vm6124_vm9, %v6113_v7  ;;  %v6028_v23 = vadd.f32 1.0, %v7060_v59  ;;  %7087 = vpow2.f32 %v6480_v56  ;;  %v5944_v0 = vmax.f32 %v9612_v6, 0.0  ;;  %v5947_v60 = vmax.f32 %v9632_v48, 0.0 }
 0x768   : > { %v7064_v18 = vpop.eup %7063  ;;  %v6075_v57 = vsel %vm6070_vm7, %v7062_v43, %v5958_v28  ;;  %v5946_v28 = vmax.f32 %v9647_v53, 0.0 }
 0x769   : > { %v7066_v12 = vpop.eup %7065  ;;  %v6112_v14 = vsel %vm6107_vm8, %v7048_v25, %v6075_v57  ;;  %v6078_v30 = vsel %vm6070_vm7, %v7064_v18, %v5961_v32  ;;  %7089 = vrcp.f32 %v6028_v23  ;;  %v5966_v7 = vsel %vm9605_vm12, %v5944_v0, %v9612_v6 }
 0x76a   : > { %v7068_v10 = vpop.eup %7067  ;;  %6129 = vst.msk [vmem:[%s9624_s19 + $0x20] sm:$0xff] %vm6124_vm9, %v6112_v14  ;;  %v6115_v36 = vsel %vm6107_vm8, %v7058_v5, %v6078_v30  ;;  %7091 = vtanh.f32 %v9585_v27  ;;  %v5967_v27 = vsel %vm9605_vm12, %v5945_v58, %v9602_v34  ;;  %v5969_v18 = vsel %vm9605_vm12, %v5947_v60, %v9632_v48 }
 0x76b   : > { %v7070_v13 = vpop.eup %7069  ;;  %6132 = vst.msk [vmem:[%s9624_s19 + $0x38] sm:$0xff] %vm6124_vm9, %v6115_v36  ;;  %v6077_v1 = vsel %vm6070_vm7, %v7068_v10, %v5960_v50  ;;  %v5968_v14 = vsel %vm9605_vm12, %v5946_v28, %v9647_v53 }
 0x76c   : > { %v7072_v24 = vpop.eup %7071  ;;  %v6114_v44 = vsel %vm6107_vm8, %v7066_v12, %v6077_v1  ;;  %v6031_v20 = vadd.f32 1.0, %v7070_v13 }
 0x76d   : > { %v7074_v46 = vpop.eup %7073  ;;  %6131 = vst.msk [vmem:[%s9624_s19 + $0x30] sm:$0xff] %vm6124_vm9, %v6114_v44 }
 0x76e   : > { %v7076_v8 = vpop.eup %7075  ;;  %v6080_v45 = vsel %vm6070_vm7, %v7074_v46, %v5963_v54  ;;  %7093 = vrcp.f32 %v6031_v20 }
 0x76f   : > { %v7078_v63 = vpop.eup %7077  ;;  %v6117_v33 = vsel %vm6107_vm8, %v7072_v24, %v6080_v45  ;;  %7095 = vtanh.f32 %v9602_v34  ;;  %v6030_v26 = vadd.f32 1.0, %v7076_v8 }
 0x770   : > { %v7080_v38 = vpop.eup %7079  ;;  %6134 = vst.msk [vmem:[%s9624_s19 + $0x48] sm:$0xff] %vm6124_vm9, %v6117_v33  ;;  %v6079_v31 = vsel %vm6070_vm7, %v7078_v63, %v5962_v16 }
 0x771   : > { %v7082_v25 = vpop.eup %7081  ;;  %v6116_v61 = vsel %vm6107_vm8, %v7080_v38, %v6079_v31  ;;  %7097 = vrcp.f32 %v6030_v26 }
 0x772   : > { %v7084_v11 = vpop.eup %7083  ;;  %6133 = vst.msk [vmem:[%s9624_s19 + $0x40] sm:$0xff] %vm6124_vm9, %v6116_v61  ;;  %7099 = vtanh.f32 %v9612_v6  ;;  %v6033_v29 = vadd.f32 1.0, %v7082_v25 }
 0x773   : > { %v7086_v40 = vpop.eup %7085 }
 0x774   : > { %v7088_v39 = vpop.eup %7087  ;;  %v6082_v51 = vsel %vm6070_vm7, %v7086_v40, %v5965_v37  ;;  %7101 = vrcp.f32 %v6033_v29 }
 0x775   : > { %v6119_v15 = vsel %vm6107_vm8, %v7084_v11, %v6082_v51  ;;  %7103 = vtanh.f32 %v9632_v48  ;;  %v6032_v62 = vadd.f32 1.0, %v7088_v39 }
 0x776   : > { %v7090_v2 = vpop.eup %7089  ;;  %6136 = vst.msk [vmem:[%s9624_s19 + $0x58] sm:$0xff] %vm6124_vm9, %v6119_v15 }
 0x777   : > { %v7092_v55 = vpop.eup %7091  ;;  %v6081_v9 = vsel %vm6070_vm7, %v7090_v2, %v5964_v52  ;;  %7105 = vrcp.f32 %v6032_v62 }
 0x778   : > { %v6118_v56 = vsel %vm6107_vm8, %v7092_v55, %v6081_v9  ;;  %7107 = vtanh.f32 %v9647_v53 }
 0x779   : > { %6135 = vst.msk [vmem:[%s9624_s19 + $0x50] sm:$0xff] %vm6124_vm9, %v6118_v56 }
 0x77b   : > { %v7094_v3 = vpop.eup %7093 }
 0x77c   : > { %v7096_v47 = vpop.eup %7095  ;;  %v6084_v4 = vsel %vm6070_vm7, %v7094_v3, %v5967_v27 }
 0x77d   : > { %v6121_v5 = vsel %vm6107_vm8, %v7096_v47, %v6084_v4 }
 0x77e   : > { %v7098_v59 = vpop.eup %7097  ;;  %6138 = vst.msk [vmem:[%s9624_s19 + $0x68] sm:$0xff] %vm6124_vm9, %v6121_v5 }
 0x77f   : > { %v7100_v21 = vpop.eup %7099  ;;  %v6083_v34 = vsel %vm6070_vm7, %v7098_v59, %v5966_v7 }
 0x780   : > { %v6120_v43 = vsel %vm6107_vm8, %v7100_v21, %v6083_v34 }
 0x781   : > { %v7102_v23 = vpop.eup %7101  ;;  %6137 = vst.msk [vmem:[%s9624_s19 + $0x60] sm:$0xff] %vm6124_vm9, %v6120_v43 }
 0x782   : > { %v7104_v57 = vpop.eup %7103  ;;  %v6086_v6 = vsel %vm6070_vm7, %v7102_v23, %v5969_v18 }
 0x783   : > { %v6123_v32 = vsel %vm6107_vm8, %v7104_v57, %v6086_v6 }
 0x784   : > { %v7106_v12 = vpop.eup %7105  ;;  %6140 = vst.msk [vmem:[%s9624_s19 + $0x78] sm:$0xff] %vm6124_vm9, %v6123_v32 }
 0x785   : > { %v7108_v30 = vpop.eup %7107  ;;  %v6085_v19 = vsel %vm6070_vm7, %v7106_v12, %v5968_v14 }
 0x786   : > { %v6122_v48 = vsel %vm6107_vm8, %v7108_v30, %v6085_v19 }
 0x787   : > { %6139 = vst.msk [vmem:[%s9624_s19 + $0x70] sm:$0xff] %vm6124_vm9, %v6122_v48 }
 0x788 PF: > { %s28_s27 = sadd.s32 1, %s7115_s27  }
 0x789   : > { %p25_p4 = scmp.ge.s32.totalorder %s28_s27, 4  }
 0x78b   :  { %27 = sbr.rel (!%p25_p4) target bundleno = 4 (0x4), region = 125 }

</bundles_post_ra>
